<compile_context>
chip_gen: v7x
topology: tpu7x:2x2x1
jax: 0.10.0
libtpu: 0.0.40
codegen_flags: <defaults>
</compile_context>

<pallas_src>
import jax
import jax.numpy as jnp
import numpy as np
from jax.experimental import pallas as pl
from jax.experimental.pallas import tpu as pltpu

EPS = 1e-5
LANE = 128


def _round_up(x, m):
  return (x + m - 1) // m * m


# ----------------------------------------------------------------------------
# Fused Pallas kernel
# ----------------------------------------------------------------------------
def _make_fused_aspp_kernel(TH, W, Cin, Cp, branch_taps, conv_x_off,
                            compute_dtype):
  """One kernel computing relu(bn(conv_x(x))) + relu(bn(conv_f(cat(branches))))."""
  nb = len(branch_taps)

  def kernel(*refs):
    x_ref = refs[0]                       # (1, Hp, Wp, Cin)  shared padded input
    w_refs = refs[1:1 + nb]               # per-branch (ntaps, Cin, Cp)
    (sb_ref, bb_ref,                      # (nb, 1, Cp) folded BN per branch
     wf_ref,                              # (nb, Cp, Cp) conv_f split per branch
     sf_ref, bf_ref,                      # (1, Cp)
     wx_ref, sx_ref, bx_ref,              # (Cin, Cp), (1, Cp), (1, Cp)
     o_ref) = refs[1 + nb:]               # (1, TH, W, Cp)

    t = pl.program_id(1)
    row0 = pl.multiple_of(t * TH, TH)     # start row of this output tile

    # conv_f over the (virtual) concat, decomposed into per-branch chunks so
    # the 4*planes fusion tensor never exists in VMEM or HBM.
    acc_f = jnp.zeros((TH * W, Cp), jnp.float32)
    for b in range(nb):
      acc_b = jnp.zeros((TH * W, Cp), jnp.float32)
      for ti, (oy, ox) in enumerate(branch_taps[b]):
        # TODO(synk): per-tap slab extraction is a VMEM re-layout copy; fine at
        # these sizes, could be replaced by sublane rolls at production scale.
        slab = x_ref[0, pl.ds(row0 + oy, TH), pl.ds(ox, W), :]
        slab = slab.reshape(TH * W, Cin)
        acc_b = acc_b + jnp.dot(slab, w_refs[b][ti],
                                preferred_element_type=jnp.float32)
      yb = jnp.maximum(acc_b * sb_ref[b] + bb_ref[b], 0.0)     # branch BN+ReLU
      acc_f = acc_f + jnp.dot(yb.astype(compute_dtype), wf_ref[b],
                              preferred_element_type=jnp.float32)
    y = jnp.maximum(acc_f * sf_ref[...] + bf_ref[...], 0.0)    # conv_f BN+ReLU

    # conv_x path (1x1 on the unpadded center window of the same input tile).
    oy, ox = conv_x_off
    xc = x_ref[0, pl.ds(row0 + oy, TH), pl.ds(ox, W), :].reshape(TH * W, Cin)
    yx = jnp.dot(xc, wx_ref[...], preferred_element_type=jnp.float32)
    y = y + jnp.maximum(yx * sx_ref[...] + bx_ref[...], 0.0)   # conv_x BN+ReLU

    o_ref[...] = y.reshape(1, TH, W, Cp).astype(o_ref.dtype)

  return kernel


# ----------------------------------------------------------------------------
# Parameter folding helpers
# ----------------------------------------------------------------------------
def fold_bn(gamma, beta, mean, var, conv_bias=None):
  """Return (scale, bias) with shape (1, C): y*scale+bias == BN(conv+b)."""
  scale = gamma / jnp.sqrt(var + EPS)
  bias = beta - mean * scale
  if conv_bias is not None:
    bias = bias + conv_bias * scale
  return scale[None, :], bias[None, :]


def torch_weight_to_taps(w_oihw):
  """(O, I, kh, kw) -> (kh*kw, I, O), ky-major tap ordering."""
  O, I, kh, kw = w_oihw.shape
  return jnp.transpose(w_oihw, (2, 3, 1, 0)).reshape(kh * kw, I, O)


def _pad_last(a, cp):
  pad = cp - a.shape[-1]
  if pad == 0:
    return a
  return jnp.pad(a, [(0, 0)] * (a.ndim - 1) + [(0, pad)])


def _pick_row_tile(h):
  for th in (8, 16, 32, 64):
    if h % th == 0:
      return th
  return h


# ----------------------------------------------------------------------------
# ASPP forward (single fused pallas_call)
# ----------------------------------------------------------------------------
def aspp_forward(x_nchw, params, compute_dtype=jnp.float32):
  x_nhwc = jnp.transpose(x_nchw, (0, 2, 3, 1)).astype(jnp.float32)
  N, H, W, Cin = x_nhwc.shape
  planes = params["conv_x"]["w"].shape[0]
  Cp = _round_up(max(planes, LANE), LANE)      # lane-dense output channels
  nb = 4

  rates = [params[f"aspp{b+1}"]["rate"] for b in range(nb)]
  ksizes = [params[f"aspp{b+1}"]["ksize"] for b in range(nb)]
  P = max([r for r, k in zip(rates, ksizes) if k == 3] + [0])

  # Single shared padded input (one HBM copy reused by every branch + conv_x).
  x_pad = jnp.pad(x_nhwc, ((0, 0), (P, P), (P, P), (0, 0))).astype(compute_dtype)
  Hp, Wp = H + 2 * P, W + 2 * P

  # Per-branch taps / weights / folded BN.
  branch_taps, branch_w, sb, bb = [], [], [], []
  for b in range(nb):
    p = params[f"aspp{b+1}"]
    r, k = p["rate"], p["ksize"]
    if k == 1:
      taps = [(P, P)]
    else:
      taps = [(P + (ky - 1) * r, P + (kx - 1) * r)
              for ky in range(3) for kx in range(3)]
    branch_taps.append(taps)
    branch_w.append(
        _pad_last(torch_weight_to_taps(p["w"]), Cp).astype(compute_dtype))
    s, bia = fold_bn(*p["bn"])
    sb.append(_pad_last(s, Cp))
    bb.append(_pad_last(bia, Cp))
  sb = jnp.stack(sb)                           # (nb, 1, Cp), f32
  bb = jnp.stack(bb)

  pf, px = params["conv_f"], params["conv_x"]
  sf, bf_ = fold_bn(*pf["bn"], conv_bias=pf["b"])
  sx, bx = fold_bn(*px["bn"], conv_bias=px["b"])
  sf, bf_ = _pad_last(sf, Cp), _pad_last(bf_, Cp)
  sx, bx = _pad_last(sx, Cp), _pad_last(bx, Cp)

  # conv_f on the concat == sum over branches of per-branch chunk matmuls.
  wf_full = torch_weight_to_taps(pf["w"])[0]   # (4*planes, planes)
  wf_chunks = []
  for b in range(nb):
    chunk = wf_full[b * planes:(b + 1) * planes, :]
    chunk = jnp.pad(chunk, ((0, Cp - planes), (0, Cp - planes)))
    wf_chunks.append(chunk)
  wf = jnp.stack(wf_chunks).astype(compute_dtype)          # (nb, Cp, Cp)

  wx = _pad_last(torch_weight_to_taps(px["w"])[0], Cp).astype(compute_dtype)

  TH = _pick_row_tile(H)
  T = H // TH
  kernel = _make_fused_aspp_kernel(TH, W, Cin, Cp, branch_taps, (P, P),
                                   compute_dtype)

  in_specs = (
      [pl.BlockSpec((1, Hp, Wp, Cin), lambda n, t: (n, 0, 0, 0))]
      + [pl.BlockSpec(w.shape, lambda n, t: (0, 0, 0)) for w in branch_w]
      + [pl.BlockSpec((nb, 1, Cp), lambda n, t: (0, 0, 0)),   # sb
         pl.BlockSpec((nb, 1, Cp), lambda n, t: (0, 0, 0)),   # bb
         pl.BlockSpec((nb, Cp, Cp), lambda n, t: (0, 0, 0)),  # wf
         pl.BlockSpec((1, Cp), lambda n, t: (0, 0)),          # sf
         pl.BlockSpec((1, Cp), lambda n, t: (0, 0)),          # bf
         pl.BlockSpec((Cin, Cp), lambda n, t: (0, 0)),        # wx
         pl.BlockSpec((1, Cp), lambda n, t: (0, 0)),          # sx
         pl.BlockSpec((1, Cp), lambda n, t: (0, 0))])         # bx

  out_padded = pl.pallas_call(
      kernel,
      out_shape=jax.ShapeDtypeStruct((N, H, W, Cp), jnp.float32),
      grid=(N, T),
      in_specs=in_specs,
      out_specs=pl.BlockSpec((1, TH, W, Cp), lambda n, t: (n, t, 0, 0)),
      compiler_params=pltpu.CompilerParams(
          dimension_semantics=("parallel", "parallel"),
          vmem_limit_bytes=48 * 1024 * 1024),
  )(x_pad, *branch_w, sb, bb, wf, sf, bf_, wx, sx, bx)

  out_nhwc = out_padded[..., :planes]          # drop lane padding
  return jnp.transpose(out_nhwc, (0, 3, 1, 2))  # back to NCHW


# ----------------------------------------------------------------------------
# Deterministic synthetic parameters mirroring the PyTorch module shapes
# ----------------------------------------------------------------------------
def make_aspp_params(key, inplanes, planes, rates):
  params = {}
  keys = jax.random.split(key, 32)
  ki = iter(range(32))

  def bn_params(c):
    gamma = 0.5 + jax.random.uniform(keys[next(ki)], (c,))
    beta = 0.1 * jax.random.normal(keys[next(ki)], (c,))
    mean = 0.1 * jax.random.normal(keys[next(ki)], (c,))
    var = 0.5 + jax.random.uniform(keys[next(ki)], (c,))
    return gamma, beta, mean, var

  for b, rate in enumerate(rates):
    ksz = 1 if rate == 1 else 3
    w = 0.1 * jax.random.normal(keys[next(ki)], (planes, inplanes, ksz, ksz))
    params[f"aspp{b+1}"] = dict(w=w, rate=rate, ksize=ksz, bn=bn_params(planes))

  wf = 0.1 * jax.random.normal(keys[next(ki)], (planes, 4 * planes, 1, 1))
  bf = 0.05 * jax.random.normal(keys[next(ki)], (planes,))
  params["conv_f"] = dict(w=wf, b=bf, bn=bn_params(planes))

  wx = 0.1 * jax.random.normal(keys[next(ki)], (planes, inplanes, 1, 1))
  bx = 0.05 * jax.random.normal(keys[next(ki)], (planes,))
  params["conv_x"] = dict(w=wx, b=bx, bn=bn_params(planes))
  return params


# ----------------------------------------------------------------------------
# Pure-JAX reference (mirrors PyTorch eval-mode forward) for validation
# ----------------------------------------------------------------------------
def ref_conv_bn_relu(x_nchw, w_oihw, conv_b, bn, rate):
  gamma, beta, mean, var = bn
  pad = 0 if w_oihw.shape[-1] == 1 else rate
  y = jax.lax.conv_general_dilated(
      x_nchw, w_oihw, window_strides=(1, 1),
      padding=((pad, pad), (pad, pad)), rhs_dilation=(rate, rate),
      dimension_numbers=("NCHW", "OIHW", "NCHW"))
  if conv_b is not None:
    y = y + conv_b[None, :, None, None]
  s = gamma / jnp.sqrt(var + EPS)
  y = s[None, :, None, None] * (y - mean[None, :, None, None]) \
      + beta[None, :, None, None]
  return jnp.maximum(y, 0.0)


def aspp_reference(x_nchw, params):
  xs = []
  for b in range(4):
    p = params[f"aspp{b+1}"]
    xs.append(ref_conv_bn_relu(x_nchw, p["w"], None, p["bn"], p["rate"]))
  fusion = jnp.concatenate(xs, axis=1)
  px, pf = params["conv_x"], params["conv_f"]
  out_x = ref_conv_bn_relu(x_nchw, px["w"], px["b"], px["bn"], 1)
  out_f = ref_conv_bn_relu(fusion, pf["w"], pf["b"], pf["bn"], 1)
  return out_x + out_f


# ----------------------------------------------------------------------------
if __name__ == "__main__":
  key = jax.random.PRNGKey(0)
  kx, kp = jax.random.split(key)

  N, inplanes, H, W = 2, 4, 16, 16
  planes = 4
  rates = [1, 2, 4, 6]

  x = jax.random.normal(kx, (N, inplanes, H, W), dtype=jnp.float32)  # NCHW
  params = make_aspp_params(kp, inplanes, planes, rates)

  ref = jax.block_until_ready(aspp_reference(x, params))

  # f32 path: tight correctness check.
  out_f32 = jax.block_until_ready(aspp_forward(x, params, jnp.float32))
  assert out_f32.shape == (N, planes, H, W), out_f32.shape
  np.testing.assert_allclose(np.asarray(out_f32), np.asarray(ref),
                             rtol=2e-4, atol=2e-4)

  # bf16 path (MXU-friendly on v5e/v6e/v7x): loose sanity check vs f32 ref.
  out_bf16 = jax.block_until_ready(aspp_forward(x, params, jnp.bfloat16))
  assert out_bf16.shape == (N, planes, H, W), out_bf16.shape
  np.testing.assert_allclose(np.asarray(out_bf16), np.asarray(ref),
                             rtol=1e-1, atol=1.5e-1)

  print("KERNEL_OK")
</pallas_src>

<mosaic_0001>
module attributes {stable_mosaic.version = 11 : i64} {
  func.func @kernel(%arg0: i32, %arg1: i32, %arg2: memref<1x28x28x4xf32, #tpu.memory_space<vmem>>, %arg3: memref<1x4x128xf32, #tpu.memory_space<vmem>>, %arg4: memref<9x4x128xf32, #tpu.memory_space<vmem>>, %arg5: memref<9x4x128xf32, #tpu.memory_space<vmem>>, %arg6: memref<9x4x128xf32, #tpu.memory_space<vmem>>, %arg7: memref<4x1x128xf32, #tpu.memory_space<vmem>>, %arg8: memref<4x1x128xf32, #tpu.memory_space<vmem>>, %arg9: memref<4x128x128xf32, #tpu.memory_space<vmem>>, %arg10: memref<1x128xf32, #tpu.memory_space<vmem>>, %arg11: memref<1x128xf32, #tpu.memory_space<vmem>>, %arg12: memref<4x128xf32, #tpu.memory_space<vmem>>, %arg13: memref<1x128xf32, #tpu.memory_space<vmem>>, %arg14: memref<1x128xf32, #tpu.memory_space<vmem>>, %arg15: memref<1x8x16x128xf32, #tpu.memory_space<vmem>>) attributes {dimension_semantics = [#tpu.dimension_semantics<parallel>, #tpu.dimension_semantics<parallel>], iteration_bounds = array<i64: 2, 2>, scalar_prefetch = 0 : i64, scratch_operands = 0 : i64, tpu.core_type = #tpu.core_type<tc>, window_params = [{transform_indices = @transform_0, window_bounds = array<i64: 1, 28, 28, 4>}, {pipeline_mode = #tpu.pipeline_mode<synchronous>, transform_indices = @transform_1, window_bounds = array<i64: 1, 4, 128>}, {pipeline_mode = #tpu.pipeline_mode<synchronous>, transform_indices = @transform_2, window_bounds = array<i64: 9, 4, 128>}, {pipeline_mode = #tpu.pipeline_mode<synchronous>, transform_indices = @transform_3, window_bounds = array<i64: 9, 4, 128>}, {pipeline_mode = #tpu.pipeline_mode<synchronous>, transform_indices = @transform_4, window_bounds = array<i64: 9, 4, 128>}, {pipeline_mode = #tpu.pipeline_mode<synchronous>, transform_indices = @transform_5, window_bounds = array<i64: 4, 1, 128>}, {pipeline_mode = #tpu.pipeline_mode<synchronous>, transform_indices = @transform_6, window_bounds = array<i64: 4, 1, 128>}, {pipeline_mode = #tpu.pipeline_mode<synchronous>, transform_indices = @transform_7, window_bounds = array<i64: 4, 128, 128>}, {pipeline_mode = #tpu.pipeline_mode<synchronous>, transform_indices = @transform_8, window_bounds = array<i64: 1, 128>}, {pipeline_mode = #tpu.pipeline_mode<synchronous>, transform_indices = @transform_9, window_bounds = array<i64: 1, 128>}, {pipeline_mode = #tpu.pipeline_mode<synchronous>, transform_indices = @transform_10, window_bounds = array<i64: 4, 128>}, {pipeline_mode = #tpu.pipeline_mode<synchronous>, transform_indices = @transform_11, window_bounds = array<i64: 1, 128>}, {pipeline_mode = #tpu.pipeline_mode<synchronous>, transform_indices = @transform_12, window_bounds = array<i64: 1, 128>}, {transform_indices = @transform_13, window_bounds = array<i64: 1, 8, 16, 128>}]} {
    %c8_i32 = arith.constant 8 : i32
    %0 = arith.muli %arg1, %c8_i32 : i32
    %1 = tpu.assume_multiple %0, 8 : i32
    %cst = arith.constant 0.000000e+00 : f32
    %2 = vector.broadcast %cst : f32 to vector<128x128xf32>
    %cst_0 = arith.constant 0.000000e+00 : f32
    %3 = vector.broadcast %cst_0 : f32 to vector<128x128xf32>
    %c6_i32 = arith.constant 6 : i32
    %4 = arith.addi %1, %c6_i32 : i32
    %c0 = arith.constant 0 : index
    %5 = arith.index_cast %4 : i32 to index
    %c6 = arith.constant 6 : index
    %c0_1 = arith.constant 0 : index
    %6 = vector.load %arg2[%c0, %5, %c6, %c0_1] : memref<1x28x28x4xf32, #tpu.memory_space<vmem>>, vector<1x8x16x4xf32>
    %7 = vector.shape_cast %6 : vector<1x8x16x4xf32> to vector<8x16x4xf32>
    %8 = vector.shape_cast %7 : vector<8x16x4xf32> to vector<128x4xf32>
    %c0_2 = arith.constant 0 : index
    %c0_3 = arith.constant 0 : index
    %c0_4 = arith.constant 0 : index
    %9 = vector.load %arg3[%c0_2, %c0_3, %c0_4] : memref<1x4x128xf32, #tpu.memory_space<vmem>>, vector<1x4x128xf32>
    %10 = vector.shape_cast %9 : vector<1x4x128xf32> to vector<4x128xf32>
    %cst_5 = arith.constant dense<0.000000e+00> : vector<128x128xf32>
    %11 = tpu.matmul %8, %10, %cst_5 {dimension_numbers = #tpu.dot_dimension_numbers<[1], [0], [0], [1], [0, 0, 1, 1], [], []>} : vector<128x4xf32>, vector<4x128xf32>, vector<128x128xf32> -> vector<128x128xf32>
    %12 = arith.addf %3, %11 : vector<128x128xf32>
    %c0_6 = arith.constant 0 : index
    %c0_7 = arith.constant 0 : index
    %c0_8 = arith.constant 0 : index
    %13 = vector.load %arg7[%c0_6, %c0_7, %c0_8] : memref<4x1x128xf32, #tpu.memory_space<vmem>>, vector<1x1x128xf32>
    %14 = vector.shape_cast %13 : vector<1x1x128xf32> to vector<1x128xf32>
    %15 = vector.broadcast %14 : vector<1x128xf32> to vector<128x128xf32>
    %16 = arith.mulf %12, %15 : vector<128x128xf32>
    %c0_9 = arith.constant 0 : index
    %c0_10 = arith.constant 0 : index
    %c0_11 = arith.constant 0 : index
    %17 = vector.load %arg8[%c0_9, %c0_10, %c0_11] : memref<4x1x128xf32, #tpu.memory_space<vmem>>, vector<1x1x128xf32>
    %18 = vector.shape_cast %17 : vector<1x1x128xf32> to vector<1x128xf32>
    %19 = vector.broadcast %18 : vector<1x128xf32> to vector<128x128xf32>
    %20 = arith.addf %16, %19 : vector<128x128xf32>
    %cst_12 = arith.constant 0.000000e+00 : f32
    %21 = vector.broadcast %cst_12 : f32 to vector<128x128xf32>
    %22 = arith.maximumf %20, %21 : vector<128x128xf32>
    %c0_13 = arith.constant 0 : index
    %c0_14 = arith.constant 0 : index
    %c0_15 = arith.constant 0 : index
    %23 = vector.load %arg9[%c0_13, %c0_14, %c0_15] : memref<4x128x128xf32, #tpu.memory_space<vmem>>, vector<1x128x128xf32>
    %24 = vector.shape_cast %23 : vector<1x128x128xf32> to vector<128x128xf32>
    %cst_16 = arith.constant dense<0.000000e+00> : vector<128x128xf32>
    %25 = tpu.matmul %22, %24, %cst_16 {dimension_numbers = #tpu.dot_dimension_numbers<[1], [0], [0], [1], [0, 0, 1, 1], [], []>} : vector<128x128xf32>, vector<128x128xf32>, vector<128x128xf32> -> vector<128x128xf32>
    %26 = arith.addf %2, %25 : vector<128x128xf32>
    %cst_17 = arith.constant 0.000000e+00 : f32
    %27 = vector.broadcast %cst_17 : f32 to vector<128x128xf32>
    %c4_i32 = arith.constant 4 : i32
    %28 = arith.addi %1, %c4_i32 : i32
    %c0_18 = arith.constant 0 : index
    %29 = arith.index_cast %28 : i32 to index
    %c4 = arith.constant 4 : index
    %c0_19 = arith.constant 0 : index
    %30 = vector.load %arg2[%c0_18, %29, %c4, %c0_19] : memref<1x28x28x4xf32, #tpu.memory_space<vmem>>, vector<1x8x16x4xf32>
    %31 = vector.shape_cast %30 : vector<1x8x16x4xf32> to vector<8x16x4xf32>
    %32 = vector.shape_cast %31 : vector<8x16x4xf32> to vector<128x4xf32>
    %c0_20 = arith.constant 0 : index
    %c0_21 = arith.constant 0 : index
    %c0_22 = arith.constant 0 : index
    %33 = vector.load %arg4[%c0_20, %c0_21, %c0_22] : memref<9x4x128xf32, #tpu.memory_space<vmem>>, vector<1x4x128xf32>
    %34 = vector.shape_cast %33 : vector<1x4x128xf32> to vector<4x128xf32>
    %cst_23 = arith.constant dense<0.000000e+00> : vector<128x128xf32>
    %35 = tpu.matmul %32, %34, %cst_23 {dimension_numbers = #tpu.dot_dimension_numbers<[1], [0], [0], [1], [0, 0, 1, 1], [], []>} : vector<128x4xf32>, vector<4x128xf32>, vector<128x128xf32> -> vector<128x128xf32>
    %36 = arith.addf %27, %35 : vector<128x128xf32>
    %c4_i32_24 = arith.constant 4 : i32
    %37 = arith.addi %1, %c4_i32_24 : i32
    %c0_25 = arith.constant 0 : index
    %38 = arith.index_cast %37 : i32 to index
    %c6_26 = arith.constant 6 : index
    %c0_27 = arith.constant 0 : index
    %39 = vector.load %arg2[%c0_25, %38, %c6_26, %c0_27] : memref<1x28x28x4xf32, #tpu.memory_space<vmem>>, vector<1x8x16x4xf32>
    %40 = vector.shape_cast %39 : vector<1x8x16x4xf32> to vector<8x16x4xf32>
    %41 = vector.shape_cast %40 : vector<8x16x4xf32> to vector<128x4xf32>
    %c1 = arith.constant 1 : index
    %c0_28 = arith.constant 0 : index
    %c0_29 = arith.constant 0 : index
    %42 = vector.load %arg4[%c1, %c0_28, %c0_29] : memref<9x4x128xf32, #tpu.memory_space<vmem>>, vector<1x4x128xf32>
    %43 = vector.shape_cast %42 : vector<1x4x128xf32> to vector<4x128xf32>
    %cst_30 = arith.constant dense<0.000000e+00> : vector<128x128xf32>
    %44 = tpu.matmul %41, %43, %cst_30 {dimension_numbers = #tpu.dot_dimension_numbers<[1], [0], [0], [1], [0, 0, 1, 1], [], []>} : vector<128x4xf32>, vector<4x128xf32>, vector<128x128xf32> -> vector<128x128xf32>
    %45 = arith.addf %36, %44 : vector<128x128xf32>
    %c4_i32_31 = arith.constant 4 : i32
    %46 = arith.addi %1, %c4_i32_31 : i32
    %c0_32 = arith.constant 0 : index
    %47 = arith.index_cast %46 : i32 to index
    %c8 = arith.constant 8 : index
    %c0_33 = arith.constant 0 : index
    %48 = vector.load %arg2[%c0_32, %47, %c8, %c0_33] : memref<1x28x28x4xf32, #tpu.memory_space<vmem>>, vector<1x8x16x4xf32>
    %49 = vector.shape_cast %48 : vector<1x8x16x4xf32> to vector<8x16x4xf32>
    %50 = vector.shape_cast %49 : vector<8x16x4xf32> to vector<128x4xf32>
    %c2 = arith.constant 2 : index
    %c0_34 = arith.constant 0 : index
    %c0_35 = arith.constant 0 : index
    %51 = vector.load %arg4[%c2, %c0_34, %c0_35] : memref<9x4x128xf32, #tpu.memory_space<vmem>>, vector<1x4x128xf32>
    %52 = vector.shape_cast %51 : vector<1x4x128xf32> to vector<4x128xf32>
    %cst_36 = arith.constant dense<0.000000e+00> : vector<128x128xf32>
    %53 = tpu.matmul %50, %52, %cst_36 {dimension_numbers = #tpu.dot_dimension_numbers<[1], [0], [0], [1], [0, 0, 1, 1], [], []>} : vector<128x4xf32>, vector<4x128xf32>, vector<128x128xf32> -> vector<128x128xf32>
    %54 = arith.addf %45, %53 : vector<128x128xf32>
    %c6_i32_37 = arith.constant 6 : i32
    %55 = arith.addi %1, %c6_i32_37 : i32
    %c0_38 = arith.constant 0 : index
    %56 = arith.index_cast %55 : i32 to index
    %c4_39 = arith.constant 4 : index
    %c0_40 = arith.constant 0 : index
    %57 = vector.load %arg2[%c0_38, %56, %c4_39, %c0_40] : memref<1x28x28x4xf32, #tpu.memory_space<vmem>>, vector<1x8x16x4xf32>
    %58 = vector.shape_cast %57 : vector<1x8x16x4xf32> to vector<8x16x4xf32>
    %59 = vector.shape_cast %58 : vector<8x16x4xf32> to vector<128x4xf32>
    %c3 = arith.constant 3 : index
    %c0_41 = arith.constant 0 : index
    %c0_42 = arith.constant 0 : index
    %60 = vector.load %arg4[%c3, %c0_41, %c0_42] : memref<9x4x128xf32, #tpu.memory_space<vmem>>, vector<1x4x128xf32>
    %61 = vector.shape_cast %60 : vector<1x4x128xf32> to vector<4x128xf32>
    %cst_43 = arith.constant dense<0.000000e+00> : vector<128x128xf32>
    %62 = tpu.matmul %59, %61, %cst_43 {dimension_numbers = #tpu.dot_dimension_numbers<[1], [0], [0], [1], [0, 0, 1, 1], [], []>} : vector<128x4xf32>, vector<4x128xf32>, vector<128x128xf32> -> vector<128x128xf32>
    %63 = arith.addf %54, %62 : vector<128x128xf32>
    %c6_i32_44 = arith.constant 6 : i32
    %64 = arith.addi %1, %c6_i32_44 : i32
    %c0_45 = arith.constant 0 : index
    %65 = arith.index_cast %64 : i32 to index
    %c6_46 = arith.constant 6 : index
    %c0_47 = arith.constant 0 : index
    %66 = vector.load %arg2[%c0_45, %65, %c6_46, %c0_47] : memref<1x28x28x4xf32, #tpu.memory_space<vmem>>, vector<1x8x16x4xf32>
    %67 = vector.shape_cast %66 : vector<1x8x16x4xf32> to vector<8x16x4xf32>
    %68 = vector.shape_cast %67 : vector<8x16x4xf32> to vector<128x4xf32>
    %c4_48 = arith.constant 4 : index
    %c0_49 = arith.constant 0 : index
    %c0_50 = arith.constant 0 : index
    %69 = vector.load %arg4[%c4_48, %c0_49, %c0_50] : memref<9x4x128xf32, #tpu.memory_space<vmem>>, vector<1x4x128xf32>
    %70 = vector.shape_cast %69 : vector<1x4x128xf32> to vector<4x128xf32>
    %cst_51 = arith.constant dense<0.000000e+00> : vector<128x128xf32>
    %71 = tpu.matmul %68, %70, %cst_51 {dimension_numbers = #tpu.dot_dimension_numbers<[1], [0], [0], [1], [0, 0, 1, 1], [], []>} : vector<128x4xf32>, vector<4x128xf32>, vector<128x128xf32> -> vector<128x128xf32>
    %72 = arith.addf %63, %71 : vector<128x128xf32>
    %c6_i32_52 = arith.constant 6 : i32
    %73 = arith.addi %1, %c6_i32_52 : i32
    %c0_53 = arith.constant 0 : index
    %74 = arith.index_cast %73 : i32 to index
    %c8_54 = arith.constant 8 : index
    %c0_55 = arith.constant 0 : index
    %75 = vector.load %arg2[%c0_53, %74, %c8_54, %c0_55] : memref<1x28x28x4xf32, #tpu.memory_space<vmem>>, vector<1x8x16x4xf32>
    %76 = vector.shape_cast %75 : vector<1x8x16x4xf32> to vector<8x16x4xf32>
    %77 = vector.shape_cast %76 : vector<8x16x4xf32> to vector<128x4xf32>
    %c5 = arith.constant 5 : index
    %c0_56 = arith.constant 0 : index
    %c0_57 = arith.constant 0 : index
    %78 = vector.load %arg4[%c5, %c0_56, %c0_57] : memref<9x4x128xf32, #tpu.memory_space<vmem>>, vector<1x4x128xf32>
    %79 = vector.shape_cast %78 : vector<1x4x128xf32> to vector<4x128xf32>
    %cst_58 = arith.constant dense<0.000000e+00> : vector<128x128xf32>
    %80 = tpu.matmul %77, %79, %cst_58 {dimension_numbers = #tpu.dot_dimension_numbers<[1], [0], [0], [1], [0, 0, 1, 1], [], []>} : vector<128x4xf32>, vector<4x128xf32>, vector<128x128xf32> -> vector<128x128xf32>
    %81 = arith.addf %72, %80 : vector<128x128xf32>
    %c8_i32_59 = arith.constant 8 : i32
    %82 = arith.addi %1, %c8_i32_59 : i32
    %c0_60 = arith.constant 0 : index
    %83 = arith.index_cast %82 : i32 to index
    %c4_61 = arith.constant 4 : index
    %c0_62 = arith.constant 0 : index
    %84 = vector.load %arg2[%c0_60, %83, %c4_61, %c0_62] : memref<1x28x28x4xf32, #tpu.memory_space<vmem>>, vector<1x8x16x4xf32>
    %85 = vector.shape_cast %84 : vector<1x8x16x4xf32> to vector<8x16x4xf32>
    %86 = vector.shape_cast %85 : vector<8x16x4xf32> to vector<128x4xf32>
    %c6_63 = arith.constant 6 : index
    %c0_64 = arith.constant 0 : index
    %c0_65 = arith.constant 0 : index
    %87 = vector.load %arg4[%c6_63, %c0_64, %c0_65] : memref<9x4x128xf32, #tpu.memory_space<vmem>>, vector<1x4x128xf32>
    %88 = vector.shape_cast %87 : vector<1x4x128xf32> to vector<4x128xf32>
    %cst_66 = arith.constant dense<0.000000e+00> : vector<128x128xf32>
    %89 = tpu.matmul %86, %88, %cst_66 {dimension_numbers = #tpu.dot_dimension_numbers<[1], [0], [0], [1], [0, 0, 1, 1], [], []>} : vector<128x4xf32>, vector<4x128xf32>, vector<128x128xf32> -> vector<128x128xf32>
    %90 = arith.addf %81, %89 : vector<128x128xf32>
    %c8_i32_67 = arith.constant 8 : i32
    %91 = arith.addi %1, %c8_i32_67 : i32
    %c0_68 = arith.constant 0 : index
    %92 = arith.index_cast %91 : i32 to index
    %c6_69 = arith.constant 6 : index
    %c0_70 = arith.constant 0 : index
    %93 = vector.load %arg2[%c0_68, %92, %c6_69, %c0_70] : memref<1x28x28x4xf32, #tpu.memory_space<vmem>>, vector<1x8x16x4xf32>
    %94 = vector.shape_cast %93 : vector<1x8x16x4xf32> to vector<8x16x4xf32>
    %95 = vector.shape_cast %94 : vector<8x16x4xf32> to vector<128x4xf32>
    %c7 = arith.constant 7 : index
    %c0_71 = arith.constant 0 : index
    %c0_72 = arith.constant 0 : index
    %96 = vector.load %arg4[%c7, %c0_71, %c0_72] : memref<9x4x128xf32, #tpu.memory_space<vmem>>, vector<1x4x128xf32>
    %97 = vector.shape_cast %96 : vector<1x4x128xf32> to vector<4x128xf32>
    %cst_73 = arith.constant dense<0.000000e+00> : vector<128x128xf32>
    %98 = tpu.matmul %95, %97, %cst_73 {dimension_numbers = #tpu.dot_dimension_numbers<[1], [0], [0], [1], [0, 0, 1, 1], [], []>} : vector<128x4xf32>, vector<4x128xf32>, vector<128x128xf32> -> vector<128x128xf32>
    %99 = arith.addf %90, %98 : vector<128x128xf32>
    %c8_i32_74 = arith.constant 8 : i32
    %100 = arith.addi %1, %c8_i32_74 : i32
    %c0_75 = arith.constant 0 : index
    %101 = arith.index_cast %100 : i32 to index
    %c8_76 = arith.constant 8 : index
    %c0_77 = arith.constant 0 : index
    %102 = vector.load %arg2[%c0_75, %101, %c8_76, %c0_77] : memref<1x28x28x4xf32, #tpu.memory_space<vmem>>, vector<1x8x16x4xf32>
    %103 = vector.shape_cast %102 : vector<1x8x16x4xf32> to vector<8x16x4xf32>
    %104 = vector.shape_cast %103 : vector<8x16x4xf32> to vector<128x4xf32>
    %c8_78 = arith.constant 8 : index
    %c0_79 = arith.constant 0 : index
    %c0_80 = arith.constant 0 : index
    %105 = vector.load %arg4[%c8_78, %c0_79, %c0_80] : memref<9x4x128xf32, #tpu.memory_space<vmem>>, vector<1x4x128xf32>
    %106 = vector.shape_cast %105 : vector<1x4x128xf32> to vector<4x128xf32>
    %cst_81 = arith.constant dense<0.000000e+00> : vector<128x128xf32>
    %107 = tpu.matmul %104, %106, %cst_81 {dimension_numbers = #tpu.dot_dimension_numbers<[1], [0], [0], [1], [0, 0, 1, 1], [], []>} : vector<128x4xf32>, vector<4x128xf32>, vector<128x128xf32> -> vector<128x128xf32>
    %108 = arith.addf %99, %107 : vector<128x128xf32>
    %c1_82 = arith.constant 1 : index
    %c0_83 = arith.constant 0 : index
    %c0_84 = arith.constant 0 : index
    %109 = vector.load %arg7[%c1_82, %c0_83, %c0_84] : memref<4x1x128xf32, #tpu.memory_space<vmem>>, vector<1x1x128xf32>
    %110 = vector.shape_cast %109 : vector<1x1x128xf32> to vector<1x128xf32>
    %111 = vector.broadcast %110 : vector<1x128xf32> to vector<128x128xf32>
    %112 = arith.mulf %108, %111 : vector<128x128xf32>
    %c1_85 = arith.constant 1 : index
    %c0_86 = arith.constant 0 : index
    %c0_87 = arith.constant 0 : index
    %113 = vector.load %arg8[%c1_85, %c0_86, %c0_87] : memref<4x1x128xf32, #tpu.memory_space<vmem>>, vector<1x1x128xf32>
    %114 = vector.shape_cast %113 : vector<1x1x128xf32> to vector<1x128xf32>
    %115 = vector.broadcast %114 : vector<1x128xf32> to vector<128x128xf32>
    %116 = arith.addf %112, %115 : vector<128x128xf32>
    %cst_88 = arith.constant 0.000000e+00 : f32
    %117 = vector.broadcast %cst_88 : f32 to vector<128x128xf32>
    %118 = arith.maximumf %116, %117 : vector<128x128xf32>
    %c1_89 = arith.constant 1 : index
    %c0_90 = arith.constant 0 : index
    %c0_91 = arith.constant 0 : index
    %119 = vector.load %arg9[%c1_89, %c0_90, %c0_91] : memref<4x128x128xf32, #tpu.memory_space<vmem>>, vector<1x128x128xf32>
    %120 = vector.shape_cast %119 : vector<1x128x128xf32> to vector<128x128xf32>
    %cst_92 = arith.constant dense<0.000000e+00> : vector<128x128xf32>
    %121 = tpu.matmul %118, %120, %cst_92 {dimension_numbers = #tpu.dot_dimension_numbers<[1], [0], [0], [1], [0, 0, 1, 1], [], []>} : vector<128x128xf32>, vector<128x128xf32>, vector<128x128xf32> -> vector<128x128xf32>
    %122 = arith.addf %26, %121 : vector<128x128xf32>
    %cst_93 = arith.constant 0.000000e+00 : f32
    %123 = vector.broadcast %cst_93 : f32 to vector<128x128xf32>
    %c2_i32 = arith.constant 2 : i32
    %124 = arith.addi %1, %c2_i32 : i32
    %c0_94 = arith.constant 0 : index
    %125 = arith.index_cast %124 : i32 to index
    %c2_95 = arith.constant 2 : index
    %c0_96 = arith.constant 0 : index
    %126 = vector.load %arg2[%c0_94, %125, %c2_95, %c0_96] : memref<1x28x28x4xf32, #tpu.memory_space<vmem>>, vector<1x8x16x4xf32>
    %127 = vector.shape_cast %126 : vector<1x8x16x4xf32> to vector<8x16x4xf32>
    %128 = vector.shape_cast %127 : vector<8x16x4xf32> to vector<128x4xf32>
    %c0_97 = arith.constant 0 : index
    %c0_98 = arith.constant 0 : index
    %c0_99 = arith.constant 0 : index
    %129 = vector.load %arg5[%c0_97, %c0_98, %c0_99] : memref<9x4x128xf32, #tpu.memory_space<vmem>>, vector<1x4x128xf32>
    %130 = vector.shape_cast %129 : vector<1x4x128xf32> to vector<4x128xf32>
    %cst_100 = arith.constant dense<0.000000e+00> : vector<128x128xf32>
    %131 = tpu.matmul %128, %130, %cst_100 {dimension_numbers = #tpu.dot_dimension_numbers<[1], [0], [0], [1], [0, 0, 1, 1], [], []>} : vector<128x4xf32>, vector<4x128xf32>, vector<128x128xf32> -> vector<128x128xf32>
    %132 = arith.addf %123, %131 : vector<128x128xf32>
    %c2_i32_101 = arith.constant 2 : i32
    %133 = arith.addi %1, %c2_i32_101 : i32
    %c0_102 = arith.constant 0 : index
    %134 = arith.index_cast %133 : i32 to index
    %c6_103 = arith.constant 6 : index
    %c0_104 = arith.constant 0 : index
    %135 = vector.load %arg2[%c0_102, %134, %c6_103, %c0_104] : memref<1x28x28x4xf32, #tpu.memory_space<vmem>>, vector<1x8x16x4xf32>
    %136 = vector.shape_cast %135 : vector<1x8x16x4xf32> to vector<8x16x4xf32>
    %137 = vector.shape_cast %136 : vector<8x16x4xf32> to vector<128x4xf32>
    %c1_105 = arith.constant 1 : index
    %c0_106 = arith.constant 0 : index
    %c0_107 = arith.constant 0 : index
    %138 = vector.load %arg5[%c1_105, %c0_106, %c0_107] : memref<9x4x128xf32, #tpu.memory_space<vmem>>, vector<1x4x128xf32>
    %139 = vector.shape_cast %138 : vector<1x4x128xf32> to vector<4x128xf32>
    %cst_108 = arith.constant dense<0.000000e+00> : vector<128x128xf32>
    %140 = tpu.matmul %137, %139, %cst_108 {dimension_numbers = #tpu.dot_dimension_numbers<[1], [0], [0], [1], [0, 0, 1, 1], [], []>} : vector<128x4xf32>, vector<4x128xf32>, vector<128x128xf32> -> vector<128x128xf32>
    %141 = arith.addf %132, %140 : vector<128x128xf32>
    %c2_i32_109 = arith.constant 2 : i32
    %142 = arith.addi %1, %c2_i32_109 : i32
    %c0_110 = arith.constant 0 : index
    %143 = arith.index_cast %142 : i32 to index
    %c10 = arith.constant 10 : index
    %c0_111 = arith.constant 0 : index
    %144 = vector.load %arg2[%c0_110, %143, %c10, %c0_111] : memref<1x28x28x4xf32, #tpu.memory_space<vmem>>, vector<1x8x16x4xf32>
    %145 = vector.shape_cast %144 : vector<1x8x16x4xf32> to vector<8x16x4xf32>
    %146 = vector.shape_cast %145 : vector<8x16x4xf32> to vector<128x4xf32>
    %c2_112 = arith.constant 2 : index
    %c0_113 = arith.constant 0 : index
    %c0_114 = arith.constant 0 : index
    %147 = vector.load %arg5[%c2_112, %c0_113, %c0_114] : memref<9x4x128xf32, #tpu.memory_space<vmem>>, vector<1x4x128xf32>
    %148 = vector.shape_cast %147 : vector<1x4x128xf32> to vector<4x128xf32>
    %cst_115 = arith.constant dense<0.000000e+00> : vector<128x128xf32>
    %149 = tpu.matmul %146, %148, %cst_115 {dimension_numbers = #tpu.dot_dimension_numbers<[1], [0], [0], [1], [0, 0, 1, 1], [], []>} : vector<128x4xf32>, vector<4x128xf32>, vector<128x128xf32> -> vector<128x128xf32>
    %150 = arith.addf %141, %149 : vector<128x128xf32>
    %c6_i32_116 = arith.constant 6 : i32
    %151 = arith.addi %1, %c6_i32_116 : i32
    %c0_117 = arith.constant 0 : index
    %152 = arith.index_cast %151 : i32 to index
    %c2_118 = arith.constant 2 : index
    %c0_119 = arith.constant 0 : index
    %153 = vector.load %arg2[%c0_117, %152, %c2_118, %c0_119] : memref<1x28x28x4xf32, #tpu.memory_space<vmem>>, vector<1x8x16x4xf32>
    %154 = vector.shape_cast %153 : vector<1x8x16x4xf32> to vector<8x16x4xf32>
    %155 = vector.shape_cast %154 : vector<8x16x4xf32> to vector<128x4xf32>
    %c3_120 = arith.constant 3 : index
    %c0_121 = arith.constant 0 : index
    %c0_122 = arith.constant 0 : index
    %156 = vector.load %arg5[%c3_120, %c0_121, %c0_122] : memref<9x4x128xf32, #tpu.memory_space<vmem>>, vector<1x4x128xf32>
    %157 = vector.shape_cast %156 : vector<1x4x128xf32> to vector<4x128xf32>
    %cst_123 = arith.constant dense<0.000000e+00> : vector<128x128xf32>
    %158 = tpu.matmul %155, %157, %cst_123 {dimension_numbers = #tpu.dot_dimension_numbers<[1], [0], [0], [1], [0, 0, 1, 1], [], []>} : vector<128x4xf32>, vector<4x128xf32>, vector<128x128xf32> -> vector<128x128xf32>
    %159 = arith.addf %150, %158 : vector<128x128xf32>
    %c6_i32_124 = arith.constant 6 : i32
    %160 = arith.addi %1, %c6_i32_124 : i32
    %c0_125 = arith.constant 0 : index
    %161 = arith.index_cast %160 : i32 to index
    %c6_126 = arith.constant 6 : index
    %c0_127 = arith.constant 0 : index
    %162 = vector.load %arg2[%c0_125, %161, %c6_126, %c0_127] : memref<1x28x28x4xf32, #tpu.memory_space<vmem>>, vector<1x8x16x4xf32>
    %163 = vector.shape_cast %162 : vector<1x8x16x4xf32> to vector<8x16x4xf32>
    %164 = vector.shape_cast %163 : vector<8x16x4xf32> to vector<128x4xf32>
    %c4_128 = arith.constant 4 : index
    %c0_129 = arith.constant 0 : index
    %c0_130 = arith.constant 0 : index
    %165 = vector.load %arg5[%c4_128, %c0_129, %c0_130] : memref<9x4x128xf32, #tpu.memory_space<vmem>>, vector<1x4x128xf32>
    %166 = vector.shape_cast %165 : vector<1x4x128xf32> to vector<4x128xf32>
    %cst_131 = arith.constant dense<0.000000e+00> : vector<128x128xf32>
    %167 = tpu.matmul %164, %166, %cst_131 {dimension_numbers = #tpu.dot_dimension_numbers<[1], [0], [0], [1], [0, 0, 1, 1], [], []>} : vector<128x4xf32>, vector<4x128xf32>, vector<128x128xf32> -> vector<128x128xf32>
    %168 = arith.addf %159, %167 : vector<128x128xf32>
    %c6_i32_132 = arith.constant 6 : i32
    %169 = arith.addi %1, %c6_i32_132 : i32
    %c0_133 = arith.constant 0 : index
    %170 = arith.index_cast %169 : i32 to index
    %c10_134 = arith.constant 10 : index
    %c0_135 = arith.constant 0 : index
    %171 = vector.load %arg2[%c0_133, %170, %c10_134, %c0_135] : memref<1x28x28x4xf32, #tpu.memory_space<vmem>>, vector<1x8x16x4xf32>
    %172 = vector.shape_cast %171 : vector<1x8x16x4xf32> to vector<8x16x4xf32>
    %173 = vector.shape_cast %172 : vector<8x16x4xf32> to vector<128x4xf32>
    %c5_136 = arith.constant 5 : index
    %c0_137 = arith.constant 0 : index
    %c0_138 = arith.constant 0 : index
    %174 = vector.load %arg5[%c5_136, %c0_137, %c0_138] : memref<9x4x128xf32, #tpu.memory_space<vmem>>, vector<1x4x128xf32>
    %175 = vector.shape_cast %174 : vector<1x4x128xf32> to vector<4x128xf32>
    %cst_139 = arith.constant dense<0.000000e+00> : vector<128x128xf32>
    %176 = tpu.matmul %173, %175, %cst_139 {dimension_numbers = #tpu.dot_dimension_numbers<[1], [0], [0], [1], [0, 0, 1, 1], [], []>} : vector<128x4xf32>, vector<4x128xf32>, vector<128x128xf32> -> vector<128x128xf32>
    %177 = arith.addf %168, %176 : vector<128x128xf32>
    %c10_i32 = arith.constant 10 : i32
    %178 = arith.addi %1, %c10_i32 : i32
    %c0_140 = arith.constant 0 : index
    %179 = arith.index_cast %178 : i32 to index
    %c2_141 = arith.constant 2 : index
    %c0_142 = arith.constant 0 : index
    %180 = vector.load %arg2[%c0_140, %179, %c2_141, %c0_142] : memref<1x28x28x4xf32, #tpu.memory_space<vmem>>, vector<1x8x16x4xf32>
    %181 = vector.shape_cast %180 : vector<1x8x16x4xf32> to vector<8x16x4xf32>
    %182 = vector.shape_cast %181 : vector<8x16x4xf32> to vector<128x4xf32>
    %c6_143 = arith.constant 6 : index
    %c0_144 = arith.constant 0 : index
    %c0_145 = arith.constant 0 : index
    %183 = vector.load %arg5[%c6_143, %c0_144, %c0_145] : memref<9x4x128xf32, #tpu.memory_space<vmem>>, vector<1x4x128xf32>
    %184 = vector.shape_cast %183 : vector<1x4x128xf32> to vector<4x128xf32>
    %cst_146 = arith.constant dense<0.000000e+00> : vector<128x128xf32>
    %185 = tpu.matmul %182, %184, %cst_146 {dimension_numbers = #tpu.dot_dimension_numbers<[1], [0], [0], [1], [0, 0, 1, 1], [], []>} : vector<128x4xf32>, vector<4x128xf32>, vector<128x128xf32> -> vector<128x128xf32>
    %186 = arith.addf %177, %185 : vector<128x128xf32>
    %c10_i32_147 = arith.constant 10 : i32
    %187 = arith.addi %1, %c10_i32_147 : i32
    %c0_148 = arith.constant 0 : index
    %188 = arith.index_cast %187 : i32 to index
    %c6_149 = arith.constant 6 : index
    %c0_150 = arith.constant 0 : index
    %189 = vector.load %arg2[%c0_148, %188, %c6_149, %c0_150] : memref<1x28x28x4xf32, #tpu.memory_space<vmem>>, vector<1x8x16x4xf32>
    %190 = vector.shape_cast %189 : vector<1x8x16x4xf32> to vector<8x16x4xf32>
    %191 = vector.shape_cast %190 : vector<8x16x4xf32> to vector<128x4xf32>
    %c7_151 = arith.constant 7 : index
    %c0_152 = arith.constant 0 : index
    %c0_153 = arith.constant 0 : index
    %192 = vector.load %arg5[%c7_151, %c0_152, %c0_153] : memref<9x4x128xf32, #tpu.memory_space<vmem>>, vector<1x4x128xf32>
    %193 = vector.shape_cast %192 : vector<1x4x128xf32> to vector<4x128xf32>
    %cst_154 = arith.constant dense<0.000000e+00> : vector<128x128xf32>
    %194 = tpu.matmul %191, %193, %cst_154 {dimension_numbers = #tpu.dot_dimension_numbers<[1], [0], [0], [1], [0, 0, 1, 1], [], []>} : vector<128x4xf32>, vector<4x128xf32>, vector<128x128xf32> -> vector<128x128xf32>
    %195 = arith.addf %186, %194 : vector<128x128xf32>
    %c10_i32_155 = arith.constant 10 : i32
    %196 = arith.addi %1, %c10_i32_155 : i32
    %c0_156 = arith.constant 0 : index
    %197 = arith.index_cast %196 : i32 to index
    %c10_157 = arith.constant 10 : index
    %c0_158 = arith.constant 0 : index
    %198 = vector.load %arg2[%c0_156, %197, %c10_157, %c0_158] : memref<1x28x28x4xf32, #tpu.memory_space<vmem>>, vector<1x8x16x4xf32>
    %199 = vector.shape_cast %198 : vector<1x8x16x4xf32> to vector<8x16x4xf32>
    %200 = vector.shape_cast %199 : vector<8x16x4xf32> to vector<128x4xf32>
    %c8_159 = arith.constant 8 : index
    %c0_160 = arith.constant 0 : index
    %c0_161 = arith.constant 0 : index
    %201 = vector.load %arg5[%c8_159, %c0_160, %c0_161] : memref<9x4x128xf32, #tpu.memory_space<vmem>>, vector<1x4x128xf32>
    %202 = vector.shape_cast %201 : vector<1x4x128xf32> to vector<4x128xf32>
    %cst_162 = arith.constant dense<0.000000e+00> : vector<128x128xf32>
    %203 = tpu.matmul %200, %202, %cst_162 {dimension_numbers = #tpu.dot_dimension_numbers<[1], [0], [0], [1], [0, 0, 1, 1], [], []>} : vector<128x4xf32>, vector<4x128xf32>, vector<128x128xf32> -> vector<128x128xf32>
    %204 = arith.addf %195, %203 : vector<128x128xf32>
    %c2_163 = arith.constant 2 : index
    %c0_164 = arith.constant 0 : index
    %c0_165 = arith.constant 0 : index
    %205 = vector.load %arg7[%c2_163, %c0_164, %c0_165] : memref<4x1x128xf32, #tpu.memory_space<vmem>>, vector<1x1x128xf32>
    %206 = vector.shape_cast %205 : vector<1x1x128xf32> to vector<1x128xf32>
    %207 = vector.broadcast %206 : vector<1x128xf32> to vector<128x128xf32>
    %208 = arith.mulf %204, %207 : vector<128x128xf32>
    %c2_166 = arith.constant 2 : index
    %c0_167 = arith.constant 0 : index
    %c0_168 = arith.constant 0 : index
    %209 = vector.load %arg8[%c2_166, %c0_167, %c0_168] : memref<4x1x128xf32, #tpu.memory_space<vmem>>, vector<1x1x128xf32>
    %210 = vector.shape_cast %209 : vector<1x1x128xf32> to vector<1x128xf32>
    %211 = vector.broadcast %210 : vector<1x128xf32> to vector<128x128xf32>
    %212 = arith.addf %208, %211 : vector<128x128xf32>
    %cst_169 = arith.constant 0.000000e+00 : f32
    %213 = vector.broadcast %cst_169 : f32 to vector<128x128xf32>
    %214 = arith.maximumf %212, %213 : vector<128x128xf32>
    %c2_170 = arith.constant 2 : index
    %c0_171 = arith.constant 0 : index
    %c0_172 = arith.constant 0 : index
    %215 = vector.load %arg9[%c2_170, %c0_171, %c0_172] : memref<4x128x128xf32, #tpu.memory_space<vmem>>, vector<1x128x128xf32>
    %216 = vector.shape_cast %215 : vector<1x128x128xf32> to vector<128x128xf32>
    %cst_173 = arith.constant dense<0.000000e+00> : vector<128x128xf32>
    %217 = tpu.matmul %214, %216, %cst_173 {dimension_numbers = #tpu.dot_dimension_numbers<[1], [0], [0], [1], [0, 0, 1, 1], [], []>} : vector<128x128xf32>, vector<128x128xf32>, vector<128x128xf32> -> vector<128x128xf32>
    %218 = arith.addf %122, %217 : vector<128x128xf32>
    %cst_174 = arith.constant 0.000000e+00 : f32
    %219 = vector.broadcast %cst_174 : f32 to vector<128x128xf32>
    %c0_i32 = arith.constant 0 : i32
    %220 = arith.addi %1, %c0_i32 : i32
    %c0_175 = arith.constant 0 : index
    %221 = arith.index_cast %220 : i32 to index
    %c0_176 = arith.constant 0 : index
    %c0_177 = arith.constant 0 : index
    %222 = vector.load %arg2[%c0_175, %221, %c0_176, %c0_177] : memref<1x28x28x4xf32, #tpu.memory_space<vmem>>, vector<1x8x16x4xf32>
    %223 = vector.shape_cast %222 : vector<1x8x16x4xf32> to vector<8x16x4xf32>
    %224 = vector.shape_cast %223 : vector<8x16x4xf32> to vector<128x4xf32>
    %c0_178 = arith.constant 0 : index
    %c0_179 = arith.constant 0 : index
    %c0_180 = arith.constant 0 : index
    %225 = vector.load %arg6[%c0_178, %c0_179, %c0_180] : memref<9x4x128xf32, #tpu.memory_space<vmem>>, vector<1x4x128xf32>
    %226 = vector.shape_cast %225 : vector<1x4x128xf32> to vector<4x128xf32>
    %cst_181 = arith.constant dense<0.000000e+00> : vector<128x128xf32>
    %227 = tpu.matmul %224, %226, %cst_181 {dimension_numbers = #tpu.dot_dimension_numbers<[1], [0], [0], [1], [0, 0, 1, 1], [], []>} : vector<128x4xf32>, vector<4x128xf32>, vector<128x128xf32> -> vector<128x128xf32>
    %228 = arith.addf %219, %227 : vector<128x128xf32>
    %c0_i32_182 = arith.constant 0 : i32
    %229 = arith.addi %1, %c0_i32_182 : i32
    %c0_183 = arith.constant 0 : index
    %230 = arith.index_cast %229 : i32 to index
    %c6_184 = arith.constant 6 : index
    %c0_185 = arith.constant 0 : index
    %231 = vector.load %arg2[%c0_183, %230, %c6_184, %c0_185] : memref<1x28x28x4xf32, #tpu.memory_space<vmem>>, vector<1x8x16x4xf32>
    %232 = vector.shape_cast %231 : vector<1x8x16x4xf32> to vector<8x16x4xf32>
    %233 = vector.shape_cast %232 : vector<8x16x4xf32> to vector<128x4xf32>
    %c1_186 = arith.constant 1 : index
    %c0_187 = arith.constant 0 : index
    %c0_188 = arith.constant 0 : index
    %234 = vector.load %arg6[%c1_186, %c0_187, %c0_188] : memref<9x4x128xf32, #tpu.memory_space<vmem>>, vector<1x4x128xf32>
    %235 = vector.shape_cast %234 : vector<1x4x128xf32> to vector<4x128xf32>
    %cst_189 = arith.constant dense<0.000000e+00> : vector<128x128xf32>
    %236 = tpu.matmul %233, %235, %cst_189 {dimension_numbers = #tpu.dot_dimension_numbers<[1], [0], [0], [1], [0, 0, 1, 1], [], []>} : vector<128x4xf32>, vector<4x128xf32>, vector<128x128xf32> -> vector<128x128xf32>
    %237 = arith.addf %228, %236 : vector<128x128xf32>
    %c0_i32_190 = arith.constant 0 : i32
    %238 = arith.addi %1, %c0_i32_190 : i32
    %c0_191 = arith.constant 0 : index
    %239 = arith.index_cast %238 : i32 to index
    %c12 = arith.constant 12 : index
    %c0_192 = arith.constant 0 : index
    %240 = vector.load %arg2[%c0_191, %239, %c12, %c0_192] : memref<1x28x28x4xf32, #tpu.memory_space<vmem>>, vector<1x8x16x4xf32>
    %241 = vector.shape_cast %240 : vector<1x8x16x4xf32> to vector<8x16x4xf32>
    %242 = vector.shape_cast %241 : vector<8x16x4xf32> to vector<128x4xf32>
    %c2_193 = arith.constant 2 : index
    %c0_194 = arith.constant 0 : index
    %c0_195 = arith.constant 0 : index
    %243 = vector.load %arg6[%c2_193, %c0_194, %c0_195] : memref<9x4x128xf32, #tpu.memory_space<vmem>>, vector<1x4x128xf32>
    %244 = vector.shape_cast %243 : vector<1x4x128xf32> to vector<4x128xf32>
    %cst_196 = arith.constant dense<0.000000e+00> : vector<128x128xf32>
    %245 = tpu.matmul %242, %244, %cst_196 {dimension_numbers = #tpu.dot_dimension_numbers<[1], [0], [0], [1], [0, 0, 1, 1], [], []>} : vector<128x4xf32>, vector<4x128xf32>, vector<128x128xf32> -> vector<128x128xf32>
    %246 = arith.addf %237, %245 : vector<128x128xf32>
    %c6_i32_197 = arith.constant 6 : i32
    %247 = arith.addi %1, %c6_i32_197 : i32
    %c0_198 = arith.constant 0 : index
    %248 = arith.index_cast %247 : i32 to index
    %c0_199 = arith.constant 0 : index
    %c0_200 = arith.constant 0 : index
    %249 = vector.load %arg2[%c0_198, %248, %c0_199, %c0_200] : memref<1x28x28x4xf32, #tpu.memory_space<vmem>>, vector<1x8x16x4xf32>
    %250 = vector.shape_cast %249 : vector<1x8x16x4xf32> to vector<8x16x4xf32>
    %251 = vector.shape_cast %250 : vector<8x16x4xf32> to vector<128x4xf32>
    %c3_201 = arith.constant 3 : index
    %c0_202 = arith.constant 0 : index
    %c0_203 = arith.constant 0 : index
    %252 = vector.load %arg6[%c3_201, %c0_202, %c0_203] : memref<9x4x128xf32, #tpu.memory_space<vmem>>, vector<1x4x128xf32>
    %253 = vector.shape_cast %252 : vector<1x4x128xf32> to vector<4x128xf32>
    %cst_204 = arith.constant dense<0.000000e+00> : vector<128x128xf32>
    %254 = tpu.matmul %251, %253, %cst_204 {dimension_numbers = #tpu.dot_dimension_numbers<[1], [0], [0], [1], [0, 0, 1, 1], [], []>} : vector<128x4xf32>, vector<4x128xf32>, vector<128x128xf32> -> vector<128x128xf32>
    %255 = arith.addf %246, %254 : vector<128x128xf32>
    %c6_i32_205 = arith.constant 6 : i32
    %256 = arith.addi %1, %c6_i32_205 : i32
    %c0_206 = arith.constant 0 : index
    %257 = arith.index_cast %256 : i32 to index
    %c6_207 = arith.constant 6 : index
    %c0_208 = arith.constant 0 : index
    %258 = vector.load %arg2[%c0_206, %257, %c6_207, %c0_208] : memref<1x28x28x4xf32, #tpu.memory_space<vmem>>, vector<1x8x16x4xf32>
    %259 = vector.shape_cast %258 : vector<1x8x16x4xf32> to vector<8x16x4xf32>
    %260 = vector.shape_cast %259 : vector<8x16x4xf32> to vector<128x4xf32>
    %c4_209 = arith.constant 4 : index
    %c0_210 = arith.constant 0 : index
    %c0_211 = arith.constant 0 : index
    %261 = vector.load %arg6[%c4_209, %c0_210, %c0_211] : memref<9x4x128xf32, #tpu.memory_space<vmem>>, vector<1x4x128xf32>
    %262 = vector.shape_cast %261 : vector<1x4x128xf32> to vector<4x128xf32>
    %cst_212 = arith.constant dense<0.000000e+00> : vector<128x128xf32>
    %263 = tpu.matmul %260, %262, %cst_212 {dimension_numbers = #tpu.dot_dimension_numbers<[1], [0], [0], [1], [0, 0, 1, 1], [], []>} : vector<128x4xf32>, vector<4x128xf32>, vector<128x128xf32> -> vector<128x128xf32>
    %264 = arith.addf %255, %263 : vector<128x128xf32>
    %c6_i32_213 = arith.constant 6 : i32
    %265 = arith.addi %1, %c6_i32_213 : i32
    %c0_214 = arith.constant 0 : index
    %266 = arith.index_cast %265 : i32 to index
    %c12_215 = arith.constant 12 : index
    %c0_216 = arith.constant 0 : index
    %267 = vector.load %arg2[%c0_214, %266, %c12_215, %c0_216] : memref<1x28x28x4xf32, #tpu.memory_space<vmem>>, vector<1x8x16x4xf32>
    %268 = vector.shape_cast %267 : vector<1x8x16x4xf32> to vector<8x16x4xf32>
    %269 = vector.shape_cast %268 : vector<8x16x4xf32> to vector<128x4xf32>
    %c5_217 = arith.constant 5 : index
    %c0_218 = arith.constant 0 : index
    %c0_219 = arith.constant 0 : index
    %270 = vector.load %arg6[%c5_217, %c0_218, %c0_219] : memref<9x4x128xf32, #tpu.memory_space<vmem>>, vector<1x4x128xf32>
    %271 = vector.shape_cast %270 : vector<1x4x128xf32> to vector<4x128xf32>
    %cst_220 = arith.constant dense<0.000000e+00> : vector<128x128xf32>
    %272 = tpu.matmul %269, %271, %cst_220 {dimension_numbers = #tpu.dot_dimension_numbers<[1], [0], [0], [1], [0, 0, 1, 1], [], []>} : vector<128x4xf32>, vector<4x128xf32>, vector<128x128xf32> -> vector<128x128xf32>
    %273 = arith.addf %264, %272 : vector<128x128xf32>
    %c12_i32 = arith.constant 12 : i32
    %274 = arith.addi %1, %c12_i32 : i32
    %c0_221 = arith.constant 0 : index
    %275 = arith.index_cast %274 : i32 to index
    %c0_222 = arith.constant 0 : index
    %c0_223 = arith.constant 0 : index
    %276 = vector.load %arg2[%c0_221, %275, %c0_222, %c0_223] : memref<1x28x28x4xf32, #tpu.memory_space<vmem>>, vector<1x8x16x4xf32>
    %277 = vector.shape_cast %276 : vector<1x8x16x4xf32> to vector<8x16x4xf32>
    %278 = vector.shape_cast %277 : vector<8x16x4xf32> to vector<128x4xf32>
    %c6_224 = arith.constant 6 : index
    %c0_225 = arith.constant 0 : index
    %c0_226 = arith.constant 0 : index
    %279 = vector.load %arg6[%c6_224, %c0_225, %c0_226] : memref<9x4x128xf32, #tpu.memory_space<vmem>>, vector<1x4x128xf32>
    %280 = vector.shape_cast %279 : vector<1x4x128xf32> to vector<4x128xf32>
    %cst_227 = arith.constant dense<0.000000e+00> : vector<128x128xf32>
    %281 = tpu.matmul %278, %280, %cst_227 {dimension_numbers = #tpu.dot_dimension_numbers<[1], [0], [0], [1], [0, 0, 1, 1], [], []>} : vector<128x4xf32>, vector<4x128xf32>, vector<128x128xf32> -> vector<128x128xf32>
    %282 = arith.addf %273, %281 : vector<128x128xf32>
    %c12_i32_228 = arith.constant 12 : i32
    %283 = arith.addi %1, %c12_i32_228 : i32
    %c0_229 = arith.constant 0 : index
    %284 = arith.index_cast %283 : i32 to index
    %c6_230 = arith.constant 6 : index
    %c0_231 = arith.constant 0 : index
    %285 = vector.load %arg2[%c0_229, %284, %c6_230, %c0_231] : memref<1x28x28x4xf32, #tpu.memory_space<vmem>>, vector<1x8x16x4xf32>
    %286 = vector.shape_cast %285 : vector<1x8x16x4xf32> to vector<8x16x4xf32>
    %287 = vector.shape_cast %286 : vector<8x16x4xf32> to vector<128x4xf32>
    %c7_232 = arith.constant 7 : index
    %c0_233 = arith.constant 0 : index
    %c0_234 = arith.constant 0 : index
    %288 = vector.load %arg6[%c7_232, %c0_233, %c0_234] : memref<9x4x128xf32, #tpu.memory_space<vmem>>, vector<1x4x128xf32>
    %289 = vector.shape_cast %288 : vector<1x4x128xf32> to vector<4x128xf32>
    %cst_235 = arith.constant dense<0.000000e+00> : vector<128x128xf32>
    %290 = tpu.matmul %287, %289, %cst_235 {dimension_numbers = #tpu.dot_dimension_numbers<[1], [0], [0], [1], [0, 0, 1, 1], [], []>} : vector<128x4xf32>, vector<4x128xf32>, vector<128x128xf32> -> vector<128x128xf32>
    %291 = arith.addf %282, %290 : vector<128x128xf32>
    %c12_i32_236 = arith.constant 12 : i32
    %292 = arith.addi %1, %c12_i32_236 : i32
    %c0_237 = arith.constant 0 : index
    %293 = arith.index_cast %292 : i32 to index
    %c12_238 = arith.constant 12 : index
    %c0_239 = arith.constant 0 : index
    %294 = vector.load %arg2[%c0_237, %293, %c12_238, %c0_239] : memref<1x28x28x4xf32, #tpu.memory_space<vmem>>, vector<1x8x16x4xf32>
    %295 = vector.shape_cast %294 : vector<1x8x16x4xf32> to vector<8x16x4xf32>
    %296 = vector.shape_cast %295 : vector<8x16x4xf32> to vector<128x4xf32>
    %c8_240 = arith.constant 8 : index
    %c0_241 = arith.constant 0 : index
    %c0_242 = arith.constant 0 : index
    %297 = vector.load %arg6[%c8_240, %c0_241, %c0_242] : memref<9x4x128xf32, #tpu.memory_space<vmem>>, vector<1x4x128xf32>
    %298 = vector.shape_cast %297 : vector<1x4x128xf32> to vector<4x128xf32>
    %cst_243 = arith.constant dense<0.000000e+00> : vector<128x128xf32>
    %299 = tpu.matmul %296, %298, %cst_243 {dimension_numbers = #tpu.dot_dimension_numbers<[1], [0], [0], [1], [0, 0, 1, 1], [], []>} : vector<128x4xf32>, vector<4x128xf32>, vector<128x128xf32> -> vector<128x128xf32>
    %300 = arith.addf %291, %299 : vector<128x128xf32>
    %c3_244 = arith.constant 3 : index
    %c0_245 = arith.constant 0 : index
    %c0_246 = arith.constant 0 : index
    %301 = vector.load %arg7[%c3_244, %c0_245, %c0_246] : memref<4x1x128xf32, #tpu.memory_space<vmem>>, vector<1x1x128xf32>
    %302 = vector.shape_cast %301 : vector<1x1x128xf32> to vector<1x128xf32>
    %303 = vector.broadcast %302 : vector<1x128xf32> to vector<128x128xf32>
    %304 = arith.mulf %300, %303 : vector<128x128xf32>
    %c3_247 = arith.constant 3 : index
    %c0_248 = arith.constant 0 : index
    %c0_249 = arith.constant 0 : index
    %305 = vector.load %arg8[%c3_247, %c0_248, %c0_249] : memref<4x1x128xf32, #tpu.memory_space<vmem>>, vector<1x1x128xf32>
    %306 = vector.shape_cast %305 : vector<1x1x128xf32> to vector<1x128xf32>
    %307 = vector.broadcast %306 : vector<1x128xf32> to vector<128x128xf32>
    %308 = arith.addf %304, %307 : vector<128x128xf32>
    %cst_250 = arith.constant 0.000000e+00 : f32
    %309 = vector.broadcast %cst_250 : f32 to vector<128x128xf32>
    %310 = arith.maximumf %308, %309 : vector<128x128xf32>
    %c3_251 = arith.constant 3 : index
    %c0_252 = arith.constant 0 : index
    %c0_253 = arith.constant 0 : index
    %311 = vector.load %arg9[%c3_251, %c0_252, %c0_253] : memref<4x128x128xf32, #tpu.memory_space<vmem>>, vector<1x128x128xf32>
    %312 = vector.shape_cast %311 : vector<1x128x128xf32> to vector<128x128xf32>
    %cst_254 = arith.constant dense<0.000000e+00> : vector<128x128xf32>
    %313 = tpu.matmul %310, %312, %cst_254 {dimension_numbers = #tpu.dot_dimension_numbers<[1], [0], [0], [1], [0, 0, 1, 1], [], []>} : vector<128x128xf32>, vector<128x128xf32>, vector<128x128xf32> -> vector<128x128xf32>
    %314 = arith.addf %218, %313 : vector<128x128xf32>
    %c0_255 = arith.constant 0 : index
    %c0_256 = arith.constant 0 : index
    %315 = vector.load %arg10[%c0_255, %c0_256] : memref<1x128xf32, #tpu.memory_space<vmem>>, vector<1x128xf32>
    %316 = vector.broadcast %315 : vector<1x128xf32> to vector<128x128xf32>
    %317 = arith.mulf %314, %316 : vector<128x128xf32>
    %c0_257 = arith.constant 0 : index
    %c0_258 = arith.constant 0 : index
    %318 = vector.load %arg11[%c0_257, %c0_258] : memref<1x128xf32, #tpu.memory_space<vmem>>, vector<1x128xf32>
    %319 = vector.broadcast %318 : vector<1x128xf32> to vector<128x128xf32>
    %320 = arith.addf %317, %319 : vector<128x128xf32>
    %cst_259 = arith.constant 0.000000e+00 : f32
    %321 = vector.broadcast %cst_259 : f32 to vector<128x128xf32>
    %322 = arith.maximumf %320, %321 : vector<128x128xf32>
    %c6_i32_260 = arith.constant 6 : i32
    %323 = arith.addi %1, %c6_i32_260 : i32
    %c0_261 = arith.constant 0 : index
    %324 = arith.index_cast %323 : i32 to index
    %c6_262 = arith.constant 6 : index
    %c0_263 = arith.constant 0 : index
    %325 = vector.load %arg2[%c0_261, %324, %c6_262, %c0_263] : memref<1x28x28x4xf32, #tpu.memory_space<vmem>>, vector<1x8x16x4xf32>
    %326 = vector.shape_cast %325 : vector<1x8x16x4xf32> to vector<8x16x4xf32>
    %327 = vector.shape_cast %326 : vector<8x16x4xf32> to vector<128x4xf32>
    %c0_264 = arith.constant 0 : index
    %c0_265 = arith.constant 0 : index
    %328 = vector.load %arg12[%c0_264, %c0_265] : memref<4x128xf32, #tpu.memory_space<vmem>>, vector<4x128xf32>
    %cst_266 = arith.constant dense<0.000000e+00> : vector<128x128xf32>
    %329 = tpu.matmul %327, %328, %cst_266 {dimension_numbers = #tpu.dot_dimension_numbers<[1], [0], [0], [1], [0, 0, 1, 1], [], []>} : vector<128x4xf32>, vector<4x128xf32>, vector<128x128xf32> -> vector<128x128xf32>
    %c0_267 = arith.constant 0 : index
    %c0_268 = arith.constant 0 : index
    %330 = vector.load %arg13[%c0_267, %c0_268] : memref<1x128xf32, #tpu.memory_space<vmem>>, vector<1x128xf32>
    %331 = vector.broadcast %330 : vector<1x128xf32> to vector<128x128xf32>
    %332 = arith.mulf %329, %331 : vector<128x128xf32>
    %c0_269 = arith.constant 0 : index
    %c0_270 = arith.constant 0 : index
    %333 = vector.load %arg14[%c0_269, %c0_270] : memref<1x128xf32, #tpu.memory_space<vmem>>, vector<1x128xf32>
    %334 = vector.broadcast %333 : vector<1x128xf32> to vector<128x128xf32>
    %335 = arith.addf %332, %334 : vector<128x128xf32>
    %cst_271 = arith.constant 0.000000e+00 : f32
    %336 = vector.broadcast %cst_271 : f32 to vector<128x128xf32>
    %337 = arith.maximumf %335, %336 : vector<128x128xf32>
    %338 = arith.addf %322, %337 : vector<128x128xf32>
    %339 = vector.shape_cast %338 : vector<128x128xf32> to vector<1x8x16x128xf32>
    %c0_272 = arith.constant 0 : index
    %c0_273 = arith.constant 0 : index
    %c0_274 = arith.constant 0 : index
    %c0_275 = arith.constant 0 : index
    %340 = vector.load %arg15[%c0_272, %c0_273, %c0_274, %c0_275] : memref<1x8x16x128xf32, #tpu.memory_space<vmem>>, vector<1x8x16x128xf32>
    tpu.vector_store %arg15[%c0_272, %c0_273, %c0_274, %c0_275], %339 {strides = array<i32>} : memref<1x8x16x128xf32, #tpu.memory_space<vmem>>, vector<1x8x16x128xf32>,
    return
  }
  func.func @transform_0(%arg0: i32, %arg1: i32) -> (i32, i32, i32, i32) {
    %c0_i32 = arith.constant 0 : i32
    %c0_i32_0 = arith.constant 0 : i32
    %c0_i32_1 = arith.constant 0 : i32
    %c0_i32_2 = arith.constant 0 : i32
    return %arg0, %c0_i32, %c0_i32_0, %c0_i32_1 : i32, i32, i32, i32
  }
  func.func @transform_1(%arg0: i32, %arg1: i32) -> (i32, i32, i32) {
    %c0_i32 = arith.constant 0 : i32
    %c0_i32_0 = arith.constant 0 : i32
    %c0_i32_1 = arith.constant 0 : i32
    %c0_i32_2 = arith.constant 0 : i32
    return %c0_i32, %c0_i32_0, %c0_i32_1 : i32, i32, i32
  }
  func.func @transform_2(%arg0: i32, %arg1: i32) -> (i32, i32, i32) {
    %c0_i32 = arith.constant 0 : i32
    %c0_i32_0 = arith.constant 0 : i32
    %c0_i32_1 = arith.constant 0 : i32
    %c0_i32_2 = arith.constant 0 : i32
    return %c0_i32, %c0_i32_0, %c0_i32_1 : i32, i32, i32
  }
  func.func @transform_3(%arg0: i32, %arg1: i32) -> (i32, i32, i32) {
    %c0_i32 = arith.constant 0 : i32
    %c0_i32_0 = arith.constant 0 : i32
    %c0_i32_1 = arith.constant 0 : i32
    %c0_i32_2 = arith.constant 0 : i32
    return %c0_i32, %c0_i32_0, %c0_i32_1 : i32, i32, i32
  }
  func.func @transform_4(%arg0: i32, %arg1: i32) -> (i32, i32, i32) {
    %c0_i32 = arith.constant 0 : i32
    %c0_i32_0 = arith.constant 0 : i32
    %c0_i32_1 = arith.constant 0 : i32
    %c0_i32_2 = arith.constant 0 : i32
    return %c0_i32, %c0_i32_0, %c0_i32_1 : i32, i32, i32
  }
  func.func @transform_5(%arg0: i32, %arg1: i32) -> (i32, i32, i32) {
    %c0_i32 = arith.constant 0 : i32
    %c0_i32_0 = arith.constant 0 : i32
    %c0_i32_1 = arith.constant 0 : i32
    %c0_i32_2 = arith.constant 0 : i32
    return %c0_i32, %c0_i32_0, %c0_i32_1 : i32, i32, i32
  }
  func.func @transform_6(%arg0: i32, %arg1: i32) -> (i32, i32, i32) {
    %c0_i32 = arith.constant 0 : i32
    %c0_i32_0 = arith.constant 0 : i32
    %c0_i32_1 = arith.constant 0 : i32
    %c0_i32_2 = arith.constant 0 : i32
    return %c0_i32, %c0_i32_0, %c0_i32_1 : i32, i32, i32
  }
  func.func @transform_7(%arg0: i32, %arg1: i32) -> (i32, i32, i32) {
    %c0_i32 = arith.constant 0 : i32
    %c0_i32_0 = arith.constant 0 : i32
    %c0_i32_1 = arith.constant 0 : i32
    %c0_i32_2 = arith.constant 0 : i32
    return %c0_i32, %c0_i32_0, %c0_i32_1 : i32, i32, i32
  }
  func.func @transform_8(%arg0: i32, %arg1: i32) -> (i32, i32) {
    %c0_i32 = arith.constant 0 : i32
    %c0_i32_0 = arith.constant 0 : i32
    %c0_i32_1 = arith.constant 0 : i32
    return %c0_i32, %c0_i32_0 : i32, i32
  }
  func.func @transform_9(%arg0: i32, %arg1: i32) -> (i32, i32) {
    %c0_i32 = arith.constant 0 : i32
    %c0_i32_0 = arith.constant 0 : i32
    %c0_i32_1 = arith.constant 0 : i32
    return %c0_i32, %c0_i32_0 : i32, i32
  }
  func.func @transform_10(%arg0: i32, %arg1: i32) -> (i32, i32) {
    %c0_i32 = arith.constant 0 : i32
    %c0_i32_0 = arith.constant 0 : i32
    %c0_i32_1 = arith.constant 0 : i32
    return %c0_i32, %c0_i32_0 : i32, i32
  }
  func.func @transform_11(%arg0: i32, %arg1: i32) -> (i32, i32) {
    %c0_i32 = arith.constant 0 : i32
    %c0_i32_0 = arith.constant 0 : i32
    %c0_i32_1 = arith.constant 0 : i32
    return %c0_i32, %c0_i32_0 : i32, i32
  }
  func.func @transform_12(%arg0: i32, %arg1: i32) -> (i32, i32) {
    %c0_i32 = arith.constant 0 : i32
    %c0_i32_0 = arith.constant 0 : i32
    %c0_i32_1 = arith.constant 0 : i32
    return %c0_i32, %c0_i32_0 : i32, i32
  }
  func.func @transform_13(%arg0: i32, %arg1: i32) -> (i32, i32, i32, i32) {
    %c0_i32 = arith.constant 0 : i32
    %c0_i32_0 = arith.constant 0 : i32
    %c0_i32_1 = arith.constant 0 : i32
    return %arg0, %arg1, %c0_i32, %c0_i32_0 : i32, i32, i32, i32
  }
}

</mosaic_0001>

<bundles_post_ra>
// kernel: tpu_custom_call.1
= control target key start
LH: loop header
LB: loop body
LE: loop exit
PB: predicated region body
PF: predicated region fallthrough
CT: control target
= control target key end

     0   :  { %18 = vsyncpa [#allocation3], 0  ;;  %s13588_s0 = inlined_call_operand.vmem [shape: f32[2,28,28,4], index: 0, kind: input, shape index: {}]   ;;  %s13589_s1 = inlined_call_operand.vmem [shape: f32[1,4,128], index: 1, kind: input, shape index: {}]   ;;  %s13590_s2 = inlined_call_operand.vmem [shape: f32[9,4,128], index: 2, kind: input, shape index: {}]   ;;  %s13591_s3 = inlined_call_operand.vmem [shape: f32[9,4,128], index: 3, kind: input, shape index: {}]   ;;  %s13592_s4 = inlined_call_operand.vmem [shape: f32[9,4,128], index: 4, kind: input, shape index: {}]   ;;  %s13593_s5 = inlined_call_operand.vmem [shape: f32[4,1,128], index: 5, kind: input, shape index: {}]   ;;  %s13594_s6 = inlined_call_operand.vmem [shape: f32[4,1,128], index: 6, kind: input, shape index: {}]   ;;  %s13595_s7 = inlined_call_operand.vmem [shape: f32[4,128,128], index: 7, kind: input, shape index: {}]   ;;  %s13596_s8 = inlined_call_operand.vmem [shape: f32[1,128], index: 8, kind: input, shape index: {}]   ;;  %s13597_s9 = inlined_call_operand.vmem [shape: f32[1,128], index: 9, kind: input, shape index: {}]   ;;  %s13598_s10 = inlined_call_operand.vmem [shape: f32[4,128], index: 10, kind: input, shape index: {}]   ;;  %s13599_s11 = inlined_call_operand.vmem [shape: f32[1,128], index: 11, kind: input, shape index: {}]   ;;  %s13600_s12 = inlined_call_operand.vmem [shape: f32[1,128], index: 12, kind: input, shape index: {}]   ;;  %s13601_s13 = inlined_call_operand.hbm [shape: f32[2,16,16,128], index: 13, kind: output, shape index: {}]  }
   0x1   :  { %20 = vsyncpa [#allocation3 + $0x1], 0  ;;  %s11355_s25 = smov 0   ;;  %s11357_s26 = smov 0  }
   0x2   :  { %s11359_s27 = smov 0   ;;  %s11361_s28 = smov 0  }
   0x3   :  { %s11363_s29 = smov 0   ;;  %s11365_s30 = smov 0  }
   0x4   :  { %s11367_s14 = smov 0   ;;  %s11369_s15 = smov 0  }
   0x5 LB: > { %13611 = sst [smem:[#allocation5_spill]] %s11272_s30  ;;  %s7966_s16 = sadd.s32 4294967295, %s11280_s15   ;;  %s11280_s15 = sphi %s11369_s15, %s26_s15   ;;  %s11276_s14 = sphi %s11367_s14, %s13642_s14   ;;  %s11272_s30 = sphi %s11365_s30, %s13641_s30   ;;  %s11268_s29 = sphi %s11363_s29, %s13640_s29   ;;  %s11264_s28 = sphi %s11361_s28, %s13639_s28   ;;  %s11260_s27 = sphi %s11359_s27, %s13645_s27   ;;  %s11256_s26 = sphi %s11357_s26, %s13644_s26   ;;  %s11252_s25 = sphi %s11355_s25, %s13643_s25  }
   0x6   : > { %13612 = sst [smem:[#allocation6_spill]] %s11276_s14  ;;  %s7967_s17 = sadd.s32 4294967294, %s11280_s15  }
   0x7   : > { %s35_s18 = sadd.s32 1, %s11272_s30  ;;  %s38_s19 = sadd.s32 1, %s11276_s14 }
   0x8   : > { %p36_p0 = scmp.ge.s32.totalorder %s35_s18, 2  ;;  %p335_p1 = scmp.ne.s32.totalorder %s11260_s27, %s11256_s26 }
   0x9   : > { %p336_p2 = scmp.eq.s32.totalorder %s7966_s16, 3  ;;  %p341_p5 = scmp.ne.s32.totalorder %s11256_s26, %s11252_s25 }
   0xa   : > { %s13647_s18 = smov (%p36_p0, %s35_s18), 0  ;;  %s13649_s19 = smov (!%p36_p0, %s38_s19), %s11276_s14 }
   0xb   : > { %13613 = sst [smem:[#allocation7_spill]] %s13647_s18  ;;  %s321_s20 = ssub.s32 %s11272_s30, %s13647_s18 }
   0xc   : > { %p11406_p3 = por %p336_p2, %p335_p1  ;;  %p40_p4 = scmp.ge.s32.totalorder %s13649_s19, 2 }
   0xd   : > { %p342_p6 = scmp.eq.s32.totalorder %s7967_s17, 3  ;;  %p7970_p7 = scmp.ge.s32.totalorder %s11280_s15, 1 }
   0xe   : > { %s13651_s19 = smov (%p40_p4, %s13649_s19), 0  ;;  %p404_p9 = scmp.lt.s32.totalorder %s11280_s15, 5 }
   0xf   : > { %13615 = sst [smem:[#allocation8_spill]] %s13651_s19  ;;  %p11415_p8 = por %p342_p6, %p341_p5 }
  0x10   : > { %s320_s23 = ssub.s32 %s11276_s14, %s13651_s19  ;;  %s325_s24 = sadd.s32 1, %s11260_s27 }
  0x11   : > { %s13616_s22 = scalar_select %p11415_p8, 1, 0 }
  0x12   : > { %s322_s16 = sor.u32 %s321_s20, %s320_s23  ;;  %p405_p10 = pnand %p7970_p7, %p404_p9 }
  0x13   : > { %13617 = sst [smem:[#allocation9_spill]] %s13616_s22  ;;  %p323_p11 = scmp.eq.s32.totalorder %s322_s16, 0 }
  0x14   : > { %408 = sbr.rel (%p405_p10) target bundleno = 1351 (0x547), region = 72 }
  0x15   : > { %s11424_s18 = scalar_select %p323_p11, %s11260_s27, %s325_s24  }
  0x1b   : > { %vm524_vm0 = vcmask 1043456   ;;  %v770_v0 = vld [vmem:[%s13590_s2] sm:$0xf]  ;;  %p448_p12 = scmp.lt.s32.totalorder %s11268_s29, 1  ;;  %v8096_v1 = vld [vmem:[%s13590_s2 + $0x8] sm:$0xf] }
  0x1c   : > { %9610 = vmatprep.subr.msk.mxu1 %vm524_vm0, %v770_v0  ;;  %s8929_s24 = sshll.u32 %s11264_s28, 8  ;;  %vm475_vm1 = vcmask 31744   ;;  %v8130_v5 = vld [vmem:[%s13590_s2 + $0xc] sm:$0xf]  ;;  %v8148_v23 = vld [vmem:[%s13590_s2 + $0x10] sm:$0xf] }
  0x1d   : > { %9611 = vmatpush3.msk.msra.mxu1 %vm524_vm0, %v770_v0  ;;  %s449_s20 = scalar_select %p448_p12, %s11268_s29, 1  ;;  %v474_v37 = vld [vmem:[%s13589_s1] sm:$0xf]  ;;  %v8045_v38 = vld [vmem:[%s13590_s2 + $0x4] sm:$0xf] }
  0x1e   : > { %9636 = vmatprep.subr.msk.mxu1 %vm524_vm0, %v8096_v1  ;;  %9558 = vmatprep.subr.msk.mxu0 %vm524_vm0, %v474_v37  ;;  %v8182_v40 = vld [vmem:[%s13590_s2 + $0x14] sm:$0xf]  ;;  %v8218_v61 = vld [vmem:[%s13590_s2 + $0x18] sm:$0xf]  ;;  %v8252_v0 = vld [vmem:[%s13590_s2 + $0x1c] sm:$0xf] }
  0x1f   : > { %s11096_s23 = smul.u32 896, %s449_s20  ;;  %9559 = vmatpush3.msk.msra.mxu0 %vm524_vm0, %v474_v37  ;;  %s445_s30 = sand.u32 1, %s11256_s26  }
  0x20   : > { %9584 = vmatprep.subr.msk.mxu0 %vm524_vm0, %v8045_v38  ;;  %s7971_s22 = sshll.u32 %s445_s30, 7 }
  0x21   : > { %s452_s17 = scalar_lea.vmem %s13588_s0, %s11096_s23  ;;  %s13455_s20 = scalar_lea.vmem [#allocation2], %s7971_s22 }
  0x22   : > { %s11441_s14 = scalar_lea.vmem %s452_s17, %s8929_s24  ;;  %s8936_s23 = sshll.u32 %s11264_s28, 4 }
  0x23   : > { %v8013_v2 = vld [vmem:[%s11441_s14 + $0x84] sm:$0xff]  ;;  %v11445_v3 = vld [vmem:[%s11441_s14 + $0x8c] sm:$0xff]  ;;  %s7864_s24 = sshll.u32 %s13455_s20, 4  ;;  %s13536_s22 = scalar_lea.sflag [#allocation3], %s445_s30  ;;  %s13530_s24 = int_to_ptr.vmem [resolvable:$true] %s7864_s24 }
  0x24   : > { %v8015_v4 = vld [vmem:[%s11441_s14 + $0xa4] sm:$0xff]  ;;  %9612 = vmatprep.mubr.msk.f32.mxu1 %vm475_vm1, %v8013_v2  ;;  %v11457_v6 = vld [vmem:[%s11441_s14 + $0xac] sm:$0xff] }
  0x25   : > { %9613 = vmatmul.mubr.msk.f32.vlgmr.msra.gmra.mrb[0].mxu1 %vm475_vm1, %v11445_v3  ;;  %v11460_v7 = vld [vmem:[%s11441_s14 + $0xc4] sm:$0xff]  ;;  %v11468_v8 = vld [vmem:[%s11441_s14 + $0xcc] sm:$0xff] }
  0x26   : > { %9637 = vmatpush3.msk.msra.mxu1 %vm524_vm0, %v8096_v1  ;;  %9615 = vmatprep.mubr.msk.f32.mxu1 %vm475_vm1, %v8015_v4  ;;  %v11471_v9 = vld [vmem:[%s11441_s14 + $0xe4] sm:$0xff]  ;;  %v11478_v10 = vld [vmem:[%s11441_s14 + $0xec] sm:$0xff] }
  0x27   : > { %9662 = vmatprep.subr.msk.mxu1 %vm524_vm0, %v8130_v5  ;;  %v11481_v11 = vld [vmem:[%s11441_s14 + $0x104] sm:$0xff]  ;;  %v11493_v13 = vld [vmem:[%s11441_s14 + $0x10c] sm:$0xff] }
  0x28   : > { %v11484_v12 = vld [vmem:[%s11441_s14 + $0xc6] sm:$0xff]  ;;  %v8081_v21 = vld [vmem:[%s11441_s14 + $0x90] sm:$0xff] }
  0x29   : > { %9616 = vmatmul.mubr.msk.f32.gmra.mrb[2].mxu1 %vm475_vm1, %v11457_v6  ;;  %9560 = vmatprep.mubr.msk.f32.mxu0 %vm475_vm1, %v11484_v12  ;;  %v11496_v14 = vld [vmem:[%s11441_s14 + $0x124] sm:$0xff]  ;;  %v11503_v15 = vld [vmem:[%s11441_s14 + $0x12c] sm:$0xff] }
  0x2a   : > { %9618 = vmatprep.mubr.msk.f32.mxu1 %vm475_vm1, %v11460_v7  ;;  %v11506_v16 = vld [vmem:[%s11441_s14 + $0x144] sm:$0xff]  ;;  %v11513_v17 = vld [vmem:[%s11441_s14 + $0x14c] sm:$0xff] }
  0x2b   : > { %v11516_v18 = vld [vmem:[%s11441_s14 + $0x164] sm:$0xff]  ;;  %v11523_v19 = vld [vmem:[%s11441_s14 + $0x16c] sm:$0xff] }
  0x2c   : > { %v11526_v20 = vld [vmem:[%s11441_s14 + $0x88] sm:$0xff]  ;;  %v8083_v24 = vld [vmem:[%s11441_s14 + $0xb0] sm:$0xff] }
  0x2d   : > { %9619 = vmatmul.mubr.msk.f32.gmra.mrb[4].mxu1 %vm475_vm1, %v11468_v8  ;;  %v11534_v22 = vld [vmem:[%s11441_s14 + $0xa8] sm:$0xff]  ;;  %v11552_v26 = vld [vmem:[%s11441_s14 + $0xd0] sm:$0xff] }
  0x2e   : > { %9621 = vmatprep.mubr.msk.f32.mxu1 %vm475_vm1, %v11471_v9  ;;  %v11545_v25 = vld [vmem:[%s11441_s14 + $0xc8] sm:$0xff]  ;;  %v11562_v28 = vld [vmem:[%s11441_s14 + $0xf0] sm:$0xff] }
  0x2f   : > { %v11555_v27 = vld [vmem:[%s11441_s14 + $0xe8] sm:$0xff]  ;;  %v11572_v30 = vld [vmem:[%s11441_s14 + $0x110] sm:$0xff] }
  0x30   : > { %v11565_v29 = vld [vmem:[%s11441_s14 + $0x108] sm:$0xff]  ;;  %v11582_v32 = vld [vmem:[%s11441_s14 + $0x130] sm:$0xff] }
  0x31   : > { %9622 = vmatmul.mubr.msk.f32.gmra.mrb[6].mxu1 %vm475_vm1, %v11478_v10  ;;  %v11575_v31 = vld [vmem:[%s11441_s14 + $0x128] sm:$0xff]  ;;  %v11592_v34 = vld [vmem:[%s11441_s14 + $0x150] sm:$0xff] }
  0x32   : > { %9624 = vmatprep.mubr.msk.f32.mxu1 %vm475_vm1, %v11481_v11  ;;  %v11585_v33 = vld [vmem:[%s11441_s14 + $0x148] sm:$0xff]  ;;  %v11602_v36 = vld [vmem:[%s11441_s14 + $0x170] sm:$0xff] }
  0x33   : > { %v11595_v35 = vld [vmem:[%s11441_s14 + $0x168] sm:$0xff]  ;;  %v11856_v2 = vld [vmem:[%s11441_s14 + $0x190] sm:$0xff] }
  0x34   : > { %v11616_v39 = vld [vmem:[%s11441_s14 + $0xce] sm:$0xff]  ;;  %v11632_v41 = vld [vmem:[%s11441_s14 + $0xe6] sm:$0xff] }
  0x35   : > { %9625 = vmatmul.mubr.msk.f32.gmra.mrb[8].mxu1 %vm475_vm1, %v11493_v13  ;;  %9561 = vmatmul.mubr.msk.f32.vlgmr.msra.gmra.mrb[0].mxu0 %vm475_vm1, %v11616_v39  ;;  %v11636_v42 = vld [vmem:[%s11441_s14 + $0xee] sm:$0xff]  ;;  %v11641_v43 = vld [vmem:[%s11441_s14 + $0x106] sm:$0xff] }
  0x36   : > { %9627 = vmatprep.mubr.msk.f32.mxu1 %vm475_vm1, %v11496_v14  ;;  %9585 = vmatpush3.msk.msra.mxu0 %vm524_vm0, %v8045_v38  ;;  %v11652_v44 = vld [vmem:[%s11441_s14 + $0x10e] sm:$0xff]  ;;  %v11655_v45 = vld [vmem:[%s11441_s14 + $0x126] sm:$0xff] }
  0x37   : > { %9563 = vmatprep.mubr.msk.f32.mxu0 %vm475_vm1, %v11632_v41  ;;  %v11666_v46 = vld [vmem:[%s11441_s14 + $0x12e] sm:$0xff]  ;;  %v11669_v47 = vld [vmem:[%s11441_s14 + $0x146] sm:$0xff] }
  0x38   : > { %v11680_v48 = vld [vmem:[%s11441_s14 + $0x14e] sm:$0xff]  ;;  %v11683_v49 = vld [vmem:[%s11441_s14 + $0x166] sm:$0xff] }
  0x39   : > { %9628 = vmatmul.mubr.msk.f32.gmra.mrb[10].mxu1 %vm475_vm1, %v11503_v15  ;;  %9564 = vmatmul.mubr.msk.f32.gmra.mrb[2].mxu0 %vm475_vm1, %v11636_v42  ;;  %v11694_v50 = vld [vmem:[%s11441_s14 + $0x184] sm:$0xff]  ;;  %v11697_v51 = vld [vmem:[%s11441_s14 + $0x16e] sm:$0xff] }
  0x3a   : > { %9630 = vmatprep.mubr.msk.f32.mxu1 %vm475_vm1, %v11506_v16  ;;  %9566 = vmatprep.mubr.msk.f32.mxu0 %vm475_vm1, %v11641_v43  ;;  %v11700_v52 = vld [vmem:[%s11441_s14 + $0x186] sm:$0xff]  ;;  %v11717_v55 = vld [vmem:[%s11441_s14 + $0x18e] sm:$0xff] }
  0x3b   : > { %v11711_v53 = vld [vmem:[%s11441_s14 + $0x18c] sm:$0xff]  ;;  %v11714_v54 = vld [vmem:[%s11441_s14 + $0x1a4] sm:$0xff] }
  0x3c   : > { %v11720_v56 = vld [vmem:[%s11441_s14 + $0x1a6] sm:$0xff]  ;;  %v11734_v58 = vld [vmem:[%s11441_s14 + $0x1ae] sm:$0xff] }
  0x3d   : > { %9631 = vmatmul.mubr.msk.f32.gmra.mrb[12].mxu1 %vm475_vm1, %v11513_v17  ;;  %9567 = vmatmul.mubr.msk.f32.gmra.mrb[4].mxu0 %vm475_vm1, %v11652_v44  ;;  %v11731_v57 = vld [vmem:[%s11441_s14 + $0x1ac] sm:$0xff] }
  0x3e   : > { %9633 = vmatprep.mubr.msk.f32.mxu1 %vm475_vm1, %v11516_v18  ;;  %9569 = vmatprep.mubr.msk.f32.mxu0 %vm475_vm1, %v11655_v45  ;;  %v11741_v59 = vld [vmem:[%s11441_s14 + $0x86] sm:$0xff]  ;;  %v11744_v60 = vld [vmem:[%s11441_s14 + $0x8e] sm:$0xff] }
  0x3f   : > { %v11758_v62 = vld [vmem:[%s11441_s14 + $0xa6] sm:$0xff]  ;;  %v11761_v63 = vld [vmem:[%s11441_s14 + $0xae] sm:$0xff] }
  0x40   : > { %v11849_v1 = vld [vmem:[%s11441_s14 + $0x188] sm:$0xff] }
  0x41   : > { %9634 = vmatmul.mubr.msk.f32.gmra.mrb[14].mxu1 %vm475_vm1, %v11523_v19  ;;  %9570 = vmatmul.mubr.msk.f32.gmra.mrb[6].mxu0 %vm475_vm1, %v11666_v46  ;;  %v11859_v4 = vld [vmem:[%s11441_s14 + $0x1a8] sm:$0xff] }
  0x42   : > { %9638 = vmatprep.mubr.msk.f32.mxu1 %vm475_vm1, %v11526_v20  ;;  %9572 = vmatprep.mubr.msk.f32.mxu0 %vm475_vm1, %v11669_v47  ;;  %v5343_v37 = vld [vmem:[%s11441_s14 + $0x26] sm:$0xff] }
  0x45   : > { %9639 = vmatmul.mubr.msk.f32.vlgmr.msra.gmra.mrb[0].mxu1 %vm475_vm1, %v8081_v21  ;;  %9573 = vmatmul.mubr.msk.f32.gmra.mrb[8].mxu0 %vm475_vm1, %v11680_v48  ;;  %v5340_v21 = vld [vmem:[%s13592_s4] sm:$0xf] }
  0x46   : > { %9663 = vmatpush3.msk.msra.mxu1 %vm524_vm0, %v8130_v5  ;;  %9641 = vmatprep.mubr.msk.f32.mxu1 %vm475_vm1, %v11534_v22  ;;  %v11866_v5 = vld [vmem:[%s11441_s14 + $0x1b0] sm:$0xff] }
  0x47   : > { %9688 = vmatprep.subr.msk.mxu1 %vm524_vm0, %v8148_v23  ;;  %9575 = vmatprep.mubr.msk.f32.mxu0 %vm475_vm1, %v11683_v49 }
  0x49   : > { %9642 = vmatmul.mubr.msk.f32.gmra.mrb[2].mxu1 %vm475_vm1, %v8083_v24  ;;  %9576 = vmatmul.mubr.msk.f32.gmra.mrb[10].mxu0 %vm475_vm1, %v11697_v51  ;;  %v8283_v24 = vld [vmem:[%s11441_s14 + $0x1d0] sm:$0xff] }
  0x4a   : > { %9644 = vmatprep.mubr.msk.f32.mxu1 %vm475_vm1, %v11545_v25  ;;  %9578 = vmatprep.mubr.msk.f32.mxu0 %vm475_vm1, %v11700_v52 }
  0x4d   : > { %9645 = vmatmul.mubr.msk.f32.gmra.mrb[4].mxu1 %vm475_vm1, %v11552_v26  ;;  %9579 = vmatmul.mubr.msk.f32.gmra.mrb[12].mxu0 %vm475_vm1, %v11717_v55 }
  0x4e   : > { %9647 = vmatprep.mubr.msk.f32.mxu1 %vm475_vm1, %v11555_v27  ;;  %9581 = vmatprep.mubr.msk.f32.mxu0 %vm475_vm1, %v11720_v56 }
  0x51   : > { %9648 = vmatmul.mubr.msk.f32.gmra.mrb[6].mxu1 %vm475_vm1, %v11562_v28  ;;  %9582 = vmatmul.mubr.msk.f32.gmra.mrb[14].mxu0 %vm475_vm1, %v11734_v58 }
  0x52   : > { %9650 = vmatprep.mubr.msk.f32.mxu1 %vm475_vm1, %v11565_v29  ;;  %9586 = vmatprep.mubr.msk.f32.mxu0 %vm475_vm1, %v11741_v59 }
  0x55   : > { %9651 = vmatmul.mubr.msk.f32.gmra.mrb[8].mxu1 %vm475_vm1, %v11572_v30  ;;  %9587 = vmatmul.mubr.msk.f32.vlgmr.msra.gmra.mrb[16].mxu0 %vm475_vm1, %v11744_v60 }
  0x56   : > { %9653 = vmatprep.mubr.msk.f32.mxu1 %vm475_vm1, %v11575_v31  ;;  %9589 = vmatprep.mubr.msk.f32.mxu0 %vm475_vm1, %v11758_v62 }
  0x59   : > { %9654 = vmatmul.mubr.msk.f32.gmra.mrb[10].mxu1 %vm475_vm1, %v11582_v32  ;;  %9590 = vmatmul.mubr.msk.f32.gmra.mrb[18].mxu0 %vm475_vm1, %v11761_v63 }
  0x5a   : > { %9656 = vmatprep.mubr.msk.f32.mxu1 %vm475_vm1, %v11585_v33  ;;  %9592 = vmatprep.mubr.msk.f32.mxu0 %vm475_vm1, %v11484_v12 }
  0x5d   : > { %9657 = vmatmul.mubr.msk.f32.gmra.mrb[12].mxu1 %vm475_vm1, %v11592_v34  ;;  %9593 = vmatmul.mubr.msk.f32.gmra.mrb[20].mxu0 %vm475_vm1, %v11616_v39 }
  0x5e   : > { %9659 = vmatprep.mubr.msk.f32.mxu1 %vm475_vm1, %v11595_v35  ;;  %9595 = vmatprep.mubr.msk.f32.mxu0 %vm475_vm1, %v11632_v41 }
  0x61   : > { %9660 = vmatmul.mubr.msk.f32.gmra.mrb[14].mxu1 %vm475_vm1, %v11602_v36  ;;  %9596 = vmatmul.mubr.msk.f32.gmra.mrb[22].mxu0 %vm475_vm1, %v11636_v42 }
  0x62   : > { %9664 = vmatprep.mubr.msk.f32.mxu1 %vm475_vm1, %v11460_v7  ;;  %9598 = vmatprep.mubr.msk.f32.mxu0 %vm475_vm1, %v11641_v43  ;;  %v8286_v7 = vld [vmem:[%s13590_s2 + $0x20] sm:$0xf] }
  0x65   : > { %9665 = vmatmul.mubr.msk.f32.vlgmr.msra.gmra.mrb[0].mxu1 %vm475_vm1, %v11468_v8  ;;  %9599 = vmatmul.mubr.msk.f32.gmra.mrb[24].mxu0 %vm475_vm1, %v11652_v44 }
  0x66   : > { %9689 = vmatpush3.msk.msra.mxu1 %vm524_vm0, %v8148_v23  ;;  %9667 = vmatprep.mubr.msk.f32.mxu1 %vm475_vm1, %v11471_v9  ;;  %v8214_v9 = vld [vmem:[%s11441_s14 + $0x1c4] sm:$0xff] }
  0x67   : > { %9714 = vmatprep.subr.msk.mxu1 %vm524_vm0, %v8182_v40  ;;  %9601 = vmatprep.mubr.msk.f32.mxu0 %vm475_vm1, %v11655_v45  ;;  %v11972_v23 = vld [vmem:[%s11441_s14 + $0x1c8] sm:$0xff] }
  0x69   : > { %9668 = vmatmul.mubr.msk.f32.gmra.mrb[2].mxu1 %vm475_vm1, %v11478_v10  ;;  %9602 = vmatmul.mubr.msk.f32.gmra.mrb[26].mxu0 %vm475_vm1, %v11666_v46 }
  0x6a   : > { %9670 = vmatprep.mubr.msk.f32.mxu1 %vm475_vm1, %v11481_v11  ;;  %9604 = vmatprep.mubr.msk.f32.mxu0 %vm475_vm1, %v11669_v47 }
  0x6d   : > { %9671 = vmatmul.mubr.msk.f32.gmra.mrb[4].mxu1 %vm475_vm1, %v11493_v13  ;;  %9605 = vmatmul.mubr.msk.f32.gmra.mrb[28].mxu0 %vm475_vm1, %v11680_v48 }
  0x6e   : > { %9673 = vmatprep.mubr.msk.f32.mxu1 %vm475_vm1, %v11496_v14  ;;  %9607 = vmatprep.mubr.msk.f32.mxu0 %vm475_vm1, %v11683_v49 }
  0x71   : > { %9674 = vmatmul.mubr.msk.f32.gmra.mrb[6].mxu1 %vm475_vm1, %v11503_v15  ;;  %9608 = vmatmul.mubr.msk.f32.gmra.mrb[30].mxu0 %vm475_vm1, %v11697_v51 }
  0x72   : > { %9676 = vmatprep.mubr.msk.f32.mxu1 %vm475_vm1, %v11506_v16 }
  0x75   : > { %9677 = vmatmul.mubr.msk.f32.gmra.mrb[8].mxu1 %vm475_vm1, %v11513_v17 }
  0x76   : > { %9679 = vmatprep.mubr.msk.f32.mxu1 %vm475_vm1, %v11516_v18 }
  0x79   : > { %9680 = vmatmul.mubr.msk.f32.gmra.mrb[10].mxu1 %vm475_vm1, %v11523_v19 }
  0x7a   : > { %9682 = vmatprep.mubr.msk.f32.mxu1 %vm475_vm1, %v11694_v50 }
  0x7d   : > { %9683 = vmatmul.mubr.msk.f32.gmra.mrb[12].mxu1 %vm475_vm1, %v11711_v53 }
  0x7e   : > { %9685 = vmatprep.mubr.msk.f32.mxu1 %vm475_vm1, %v11714_v54 }
  0x81   : > { %9686 = vmatmul.mubr.msk.f32.gmra.mrb[14].mxu1 %vm475_vm1, %v11731_v57 }
  0x82   : > { %9690 = vmatprep.mubr.msk.f32.mxu1 %vm475_vm1, %v11484_v12 }
  0x85   : > { %9691 = vmatmul.mubr.msk.f32.vlgmr.msra.gmra.mrb[0].mxu1 %vm475_vm1, %v11616_v39 }
  0x86   : > { %9715 = vmatpush3.msk.msra.mxu1 %vm524_vm0, %v8182_v40  ;;  %9693 = vmatprep.mubr.msk.f32.mxu1 %vm475_vm1, %v11632_v41  ;;  %v12000_v40 = vld [vmem:[%s13592_s4 + $0x8] sm:$0xf] }
  0x87   : > { %9740 = vmatprep.subr.msk.mxu1 %vm524_vm0, %v8218_v61 }
  0x89   : > { %9694 = vmatmul.mubr.msk.f32.gmra.mrb[2].mxu1 %vm475_vm1, %v11636_v42 }
  0x8a   : > { %9696 = vmatprep.mubr.msk.f32.mxu1 %vm475_vm1, %v11641_v43 }
  0x8d   : > { %9697 = vmatmul.mubr.msk.f32.gmra.mrb[4].mxu1 %vm475_vm1, %v11652_v44 }
  0x8e   : > { %9699 = vmatprep.mubr.msk.f32.mxu1 %vm475_vm1, %v11655_v45 }
  0x91   : > { %9700 = vmatmul.mubr.msk.f32.gmra.mrb[6].mxu1 %vm475_vm1, %v11666_v46 }
  0x92   : > { %9702 = vmatprep.mubr.msk.f32.mxu1 %vm475_vm1, %v11669_v47 }
  0x95   : > { %9703 = vmatmul.mubr.msk.f32.gmra.mrb[8].mxu1 %vm475_vm1, %v11680_v48 }
  0x96   : > { %9705 = vmatprep.mubr.msk.f32.mxu1 %vm475_vm1, %v11683_v49 }
  0x99   : > { %9706 = vmatmul.mubr.msk.f32.gmra.mrb[10].mxu1 %vm475_vm1, %v11697_v51 }
  0x9a   : > { %9708 = vmatprep.mubr.msk.f32.mxu1 %vm475_vm1, %v11700_v52 }
  0x9d   : > { %9709 = vmatmul.mubr.msk.f32.gmra.mrb[12].mxu1 %vm475_vm1, %v11717_v55 }
  0x9e   : > { %9711 = vmatprep.mubr.msk.f32.mxu1 %vm475_vm1, %v11720_v56 }
  0xa1   : > { %9712 = vmatmul.mubr.msk.f32.gmra.mrb[14].mxu1 %vm475_vm1, %v11734_v58 }
  0xa2   : > { %9716 = vmatprep.mubr.msk.f32.mxu1 %vm475_vm1, %v11545_v25 }
  0xa5   : > { %9717 = vmatmul.mubr.msk.f32.vlgmr.msra.gmra.mrb[0].mxu1 %vm475_vm1, %v11552_v26  ;;  %v11980_v26 = vld [vmem:[%s11441_s14 + $0x1e8] sm:$0xff] }
  0xa6   : > { %9741 = vmatpush3.msk.msra.mxu1 %vm524_vm0, %v8218_v61  ;;  %9719 = vmatprep.mubr.msk.f32.mxu1 %vm475_vm1, %v11555_v27 }
  0xa7   : > { %9766 = vmatprep.subr.msk.mxu1 %vm524_vm0, %v8252_v0 }
  0xa9   : > { %9720 = vmatmul.mubr.msk.f32.gmra.mrb[2].mxu1 %vm475_vm1, %v11562_v28  ;;  %v8285_v28 = vld [vmem:[%s11441_s14 + $0x1f0] sm:$0xff] }
  0xaa   : > { %9722 = vmatprep.mubr.msk.f32.mxu1 %vm475_vm1, %v11565_v29 }
  0xad   : > { %9723 = vmatmul.mubr.msk.f32.gmra.mrb[4].mxu1 %vm475_vm1, %v11572_v30 }
  0xae   : > { %9725 = vmatprep.mubr.msk.f32.mxu1 %vm475_vm1, %v11575_v31 }
  0xb1   : > { %9726 = vmatmul.mubr.msk.f32.gmra.mrb[6].mxu1 %vm475_vm1, %v11582_v32 }
  0xb2   : > { %9728 = vmatprep.mubr.msk.f32.mxu1 %vm475_vm1, %v11585_v33 }
  0xb5   : > { %9729 = vmatmul.mubr.msk.f32.gmra.mrb[8].mxu1 %vm475_vm1, %v11592_v34 }
  0xb6   : > { %9731 = vmatprep.mubr.msk.f32.mxu1 %vm475_vm1, %v11595_v35 }
  0xb9   : > { %9732 = vmatmul.mubr.msk.f32.gmra.mrb[10].mxu1 %vm475_vm1, %v11602_v36 }
  0xba   : > { %9734 = vmatprep.mubr.msk.f32.mxu1 %vm475_vm1, %v11849_v1 }
  0xbd   : > { %9735 = vmatmul.mubr.msk.f32.gmra.mrb[12].mxu1 %vm475_vm1, %v11856_v2 }
  0xbe   : > { %9737 = vmatprep.mubr.msk.f32.mxu1 %vm475_vm1, %v11859_v4 }
  0xc1   : > { %9738 = vmatmul.mubr.msk.f32.gmra.mrb[14].mxu1 %vm475_vm1, %v11866_v5 }
  0xc2   : > { %9742 = vmatprep.mubr.msk.f32.mxu1 %vm475_vm1, %v11481_v11  ;;  %v8215_v11 = vld [vmem:[%s11441_s14 + $0x1cc] sm:$0xff] }
  0xc5   : > { %9743 = vmatmul.mubr.msk.f32.vlgmr.msra.gmra.mrb[0].mxu1 %vm475_vm1, %v11493_v13  ;;  %v8216_v13 = vld [vmem:[%s11441_s14 + $0x1e4] sm:$0xff] }
  0xc6   : > { %9767 = vmatpush3.msk.msra.mxu1 %vm524_vm0, %v8252_v0  ;;  %9745 = vmatprep.mubr.msk.f32.mxu1 %vm475_vm1, %v11496_v14  ;;  %v8217_v14 = vld [vmem:[%s11441_s14 + $0x1ec] sm:$0xff] }
  0xc7   : > { %9792 = vmatprep.subr.msk.mxu1 %vm524_vm0, %v8286_v7  ;;  %v12021_v0 = vld [vmem:[%s11441_s14 + $0x4e] sm:$0xff] }
  0xc8   : > { %13619 = vst [vmem:[#allocation11_spill] sm:$0xff] %v12021_v0 }
  0xc9   : > { %9746 = vmatmul.mubr.msk.f32.gmra.mrb[2].mxu1 %vm475_vm1, %v11503_v15  ;;  %v8638_v15 = vld [vmem:[%s13592_s4 + $0x4] sm:$0xf] }
  0xca   : > { %9748 = vmatprep.mubr.msk.f32.mxu1 %vm475_vm1, %v11506_v16  ;;  %v8248_v16 = vld [vmem:[%s11441_s14 + $0x1c6] sm:$0xff] }
  0xcd   : > { %9749 = vmatmul.mubr.msk.f32.gmra.mrb[4].mxu1 %vm475_vm1, %v11513_v17  ;;  %v8249_v17 = vld [vmem:[%s11441_s14 + $0x1ce] sm:$0xff] }
  0xce   : > { %9751 = vmatprep.mubr.msk.f32.mxu1 %vm475_vm1, %v11516_v18  ;;  %v8250_v18 = vld [vmem:[%s11441_s14 + $0x1e6] sm:$0xff] }
  0xd1   : > { %9752 = vmatmul.mubr.msk.f32.gmra.mrb[6].mxu1 %vm475_vm1, %v11523_v19  ;;  %v8251_v19 = vld [vmem:[%s11441_s14 + $0x1ee] sm:$0xff] }
  0xd2   : > { %9754 = vmatprep.mubr.msk.f32.mxu1 %vm475_vm1, %v11694_v50  ;;  %v5344_v50 = vld [vmem:[%s11441_s14 + $0x2e] sm:$0xff] }
  0xd5   : > { %9755 = vmatmul.mubr.msk.f32.gmra.mrb[8].mxu1 %vm475_vm1, %v11711_v53  ;;  %v8310_v53 = vld [vmem:[%s13595_s7 + $0x90] sm:$0xff] }
  0xd6   : > { %9757 = vmatprep.mubr.msk.f32.mxu1 %vm475_vm1, %v11714_v54  ;;  %v8311_v54 = vld [vmem:[%s13595_s7 + $0x98] sm:$0xff] }
  0xd7   : > { %v10540_v61 = vpack.c.bf16 %v8311_v54, %v8310_v53  ;;  %v5327_v53 = vld [vmem:[%s11441_s14 + $0x28] sm:$0xff]  ;;  %v5328_v54 = vld [vmem:[%s11441_s14 + $0x40] sm:$0xff] }
  0xd9   : > { %9758 = vmatmul.mubr.msk.f32.gmra.mrb[10].mxu1 %vm475_vm1, %v11731_v57  ;;  %v12013_v57 = vld [vmem:[%s11441_s14 + $0x46] sm:$0xff] }
  0xda   : > { %9760 = vmatprep.mubr.msk.f32.mxu1 %vm475_vm1, %v8214_v9  ;;  %13618 = vst [vmem:[#allocation10_spill] sm:$0xff] %v12013_v57 }
  0xdd   : > { %9761 = vmatmul.mubr.msk.f32.gmra.mrb[12].mxu1 %vm475_vm1, %v8215_v11  ;;  %v12037_v11 = vld [vmem:[%s11441_s14 + $0x6e] sm:$0xff] }
  0xde   : > { %9763 = vmatprep.mubr.msk.f32.mxu1 %vm475_vm1, %v8216_v13  ;;  %13621 = vst [vmem:[#allocation13_spill] sm:$0xff] %v12037_v11  ;;  %v8314_v13 = vld [vmem:[%s13595_s7 + $0xb0] sm:$0xff] }
  0xe1   : > { %9764 = vmatmul.mubr.msk.f32.gmra.mrb[14].mxu1 %vm475_vm1, %v8217_v14  ;;  %v8315_v14 = vld [vmem:[%s13595_s7 + $0xb8] sm:$0xff] }
  0xe2   : > { %9768 = vmatprep.mubr.msk.f32.mxu1 %vm475_vm1, %v11641_v43 }
  0xe5   : > { %9769 = vmatmul.mubr.msk.f32.vlgmr.msra.gmra.mrb[0].mxu1 %vm475_vm1, %v11652_v44 }
  0xe6   : > { %9793 = vmatpush3.msk.msra.mxu1 %vm524_vm0, %v8286_v7  ;;  %9771 = vmatprep.mubr.msk.f32.mxu1 %vm475_vm1, %v11655_v45  ;;  %v12030_v7 = vld [vmem:[%s11441_s14 + $0x66] sm:$0xff] }
  0xe7   : > { %10220 = vmatprep.subr.msk.mxu1 %vm524_vm0, %v8638_v15  ;;  %13620 = vst [vmem:[#allocation12_spill] sm:$0xff] %v12030_v7 }
  0xe9   : > { %9772 = vmatmul.mubr.msk.f32.gmra.mrb[2].mxu1 %vm475_vm1, %v11666_v46 }
  0xea   : > { %9774 = vmatprep.mubr.msk.f32.mxu1 %vm475_vm1, %v11669_v47 }
  0xed   : > { %9775 = vmatmul.mubr.msk.f32.gmra.mrb[4].mxu1 %vm475_vm1, %v11680_v48 }
  0xee   : > { %9777 = vmatprep.mubr.msk.f32.mxu1 %vm475_vm1, %v11683_v49 }
  0xf1   : > { %9778 = vmatmul.mubr.msk.f32.gmra.mrb[6].mxu1 %vm475_vm1, %v11697_v51 }
  0xf2   : > { %9780 = vmatprep.mubr.msk.f32.mxu1 %vm475_vm1, %v11700_v52 }
  0xf5   : > { %9781 = vmatmul.mubr.msk.f32.gmra.mrb[8].mxu1 %vm475_vm1, %v11717_v55 }
  0xf6   : > { %9783 = vmatprep.mubr.msk.f32.mxu1 %vm475_vm1, %v11720_v56 }
  0xf9   : > { %9784 = vmatmul.mubr.msk.f32.gmra.mrb[10].mxu1 %vm475_vm1, %v11734_v58 }
  0xfa   : > { %9786 = vmatprep.mubr.msk.f32.mxu1 %vm475_vm1, %v8248_v16  ;;  %v8316_v16 = vld [vmem:[%s13595_s7 + $0xc0] sm:$0xff] }
  0xfd   : > { %9787 = vmatmul.mubr.msk.f32.gmra.mrb[12].mxu1 %vm475_vm1, %v8249_v17  ;;  %v8317_v17 = vld [vmem:[%s13595_s7 + $0xc8] sm:$0xff] }
  0xfe   : > { %9789 = vmatprep.mubr.msk.f32.mxu1 %vm475_vm1, %v8250_v18  ;;  %v10552_v18 = vpack.c.bf16 %v8317_v17, %v8316_v16 }
 0x101   : > { %9790 = vmatmul.mubr.msk.f32.gmra.mrb[14].mxu1 %vm475_vm1, %v8251_v19  ;;  %v8319_v19 = vld [vmem:[%s13595_s7 + $0xd8] sm:$0xff] }
 0x102   : > { %9794 = vmatprep.mubr.msk.f32.mxu1 %vm475_vm1, %v11565_v29 }
 0x105   : > { %9795 = vmatmul.mubr.msk.f32.vlgmr.msra.gmra.mrb[0].mxu1 %vm475_vm1, %v11572_v30  ;;  %v5341_v30 = vld [vmem:[%s11441_s14 + $0x6] sm:$0xff] }
 0x106   : > { %9797 = vmatprep.mubr.msk.f32.mxu1 %vm475_vm1, %v11575_v31  ;;  %10221 = vmatpush3.msk.msra.mxu1 %vm524_vm0, %v8638_v15  ;;  %v10548_v15 = vpack.c.bf16 %v8315_v14, %v8314_v13 }
 0x107   : > { %10246 = vmatprep.subr.msk.mxu1 %vm524_vm0, %v5340_v21 }
 0x109   : > { %9798 = vmatmul.mubr.msk.f32.gmra.mrb[2].mxu1 %vm475_vm1, %v11582_v32  ;;  %v5342_v32 = vld [vmem:[%s11441_s14 + $0xe] sm:$0xff] }
 0x10a   : > { %9800 = vmatprep.mubr.msk.f32.mxu1 %vm475_vm1, %v11585_v33 }
 0x10d   : > { %9801 = vmatmul.mubr.msk.f32.gmra.mrb[4].mxu1 %vm475_vm1, %v11592_v34  ;;  %v8308_v34 = vld [vmem:[%s13595_s7 + $0x80] sm:$0xff] }
 0x10e   : > { %9803 = vmatprep.mubr.msk.f32.mxu1 %vm475_vm1, %v11595_v35 }
 0x111   : > { %9804 = vmatmul.mubr.msk.f32.gmra.mrb[6].mxu1 %vm475_vm1, %v11602_v36  ;;  %v8309_v36 = vld [vmem:[%s13595_s7 + $0x88] sm:$0xff] }
 0x112   : > { %9806 = vmatprep.mubr.msk.f32.mxu1 %vm475_vm1, %v11849_v1  ;;  %v10536_v38 = vpack.c.bf16 %v8309_v36, %v8308_v34  ;;  %v5325_v34 = vld [vmem:[%s11441_s14 + $0x8] sm:$0xff]  ;;  %v5326_v36 = vld [vmem:[%s11441_s14 + $0x20] sm:$0xff] }
 0x114   : > { %10537 = vmatprep.subr.bf16.mxu0 %v10536_v38 }
 0x115   : > { %9807 = vmatmul.mubr.msk.f32.gmra.mrb[8].mxu1 %vm475_vm1, %v11856_v2  ;;  %10539 = vmatpush3.bf16.msra.mxu0 %v10536_v38  ;;  %v8312_v2 = vld [vmem:[%s13595_s7 + $0xa0] sm:$0xff]  ;;  %v12096_v38 = vld [vmem:[%s13592_s4 + $0xc] sm:$0xf] }
 0x116   : > { %9809 = vmatprep.mubr.msk.f32.mxu1 %vm475_vm1, %v11859_v4  ;;  %10541 = vmatprep.subr.bf16.mxu0 %v10540_v61 }
 0x119   : > { %9810 = vmatmul.mubr.msk.f32.gmra.mrb[10].mxu1 %vm475_vm1, %v11866_v5  ;;  %v8313_v5 = vld [vmem:[%s13595_s7 + $0xa8] sm:$0xff]  ;;  %10543 = vmatpush3.bf16.msra.mxu0 %v10540_v61 }
 0x11a   : > { %9812 = vmatprep.mubr.msk.f32.mxu1 %vm475_vm1, %v11972_v23  ;;  %v10544_v9 = vpack.c.bf16 %v8313_v5, %v8312_v2  ;;  %v5329_v5 = vld [vmem:[%s11441_s14 + $0x48] sm:$0xff] }
 0x11c   : > { %10545 = vmatprep.subr.bf16.mxu0 %v10544_v9 }
 0x11d   : > { %9813 = vmatmul.mubr.msk.f32.gmra.mrb[12].mxu1 %vm475_vm1, %v8283_v24  ;;  %10547 = vmatpush3.bf16.msra.mxu0 %v10544_v9  ;;  %v5330_v9 = vld [vmem:[%s11441_s14 + $0x60] sm:$0xff] }
 0x11e   : > { %9815 = vmatprep.mubr.msk.f32.mxu1 %vm475_vm1, %v11980_v26  ;;  %10549 = vmatprep.subr.bf16.mxu0 %v10548_v15 }
 0x121   : > { %9816 = vmatmul.mubr.msk.f32.gmra.mrb[14].mxu1 %vm475_vm1, %v8285_v28  ;;  %10551 = vmatpush3.bf16.msra.mxu0 %v10548_v15  ;;  %v5332_v15 = vld [vmem:[%s11441_s14 + $0x80] sm:$0xff] }
 0x122   : > { %10222 = vmatprep.mubr.msk.f32.mxu1 %vm475_vm1, %v5341_v30  ;;  %10553 = vmatprep.subr.bf16.mxu0 %v10552_v18  ;;  %v5324_v30 = vld [vmem:[%s11441_s14] sm:$0xff] }
 0x125   : > { %10223 = vmatmul.mubr.msk.f32.vlgmr.msra.gmra.mrb[16].mxu1 %vm475_vm1, %v5342_v32  ;;  %10555 = vmatpush3.bf16.msra.mxu0 %v10552_v18  ;;  %v5334_v18 = vld [vmem:[%s11441_s14 + $0xa0] sm:$0xff] }
 0x126   : > { %10225 = vmatprep.mubr.msk.f32.mxu1 %vm475_vm1, %v5343_v37  ;;  %10247 = vmatpush3.msk.msra.mxu1 %vm524_vm0, %v5340_v21  ;;  %v12065_v21 = vpop.f32.mrb[0].mxu0 }
 0x127   : > { %10272 = vmatprep.subr.msk.mxu1 %vm524_vm0, %v12000_v40 }
 0x129   : > { %10226 = vmatmul.mubr.msk.f32.gmra.mrb[18].mxu1 %vm475_vm1, %v5344_v50 }
 0x12a   : > { %10228 = vmatprep.mubr.msk.f32.mxu1 %vm475_vm1, %v12013_v57 }
 0x12d   : > { %10229 = vmatmul.mubr.msk.f32.gmra.mrb[20].mxu1 %vm475_vm1, %v12021_v0  ;;  %v8725_v0 = vld [vmem:[%s13592_s4 + $0x10] sm:$0xf] }
 0x12e   : > { %10231 = vmatprep.mubr.msk.f32.mxu1 %vm475_vm1, %v12030_v7 }
 0x131   : > { %10232 = vmatmul.mubr.msk.f32.gmra.mrb[22].mxu1 %vm475_vm1, %v12037_v11  ;;  %v5752_v11 = vld [vmem:[%s11441_s14 + $0x14] sm:$0xff] }
 0x132   : > { %10234 = vmatprep.mubr.msk.f32.mxu1 %vm475_vm1, %v11741_v59  ;;  %v8318_v59 = vld [vmem:[%s13595_s7 + $0xd0] sm:$0xff] }
 0x133   : > { %v10556_v24 = vpack.c.bf16 %v8319_v19, %v8318_v59 }
 0x135   : > { %10235 = vmatmul.mubr.msk.f32.gmra.mrb[24].mxu1 %vm475_vm1, %v11744_v60  ;;  %v12067_v60 = vpop.f32.mrb[1].mxu0  ;;  %10557 = vmatprep.subr.bf16.mxu0 %v10556_v24 }
 0x136   : > { %10237 = vmatprep.mubr.msk.f32.mxu1 %vm475_vm1, %v11758_v62  ;;  %v12073_v62 = vpop.f32.mrb[2].mxu0  ;;  %10559 = vmatpush3.bf16.msra.mxu0 %v10556_v24  ;;  %v12139_v24 = vld [vmem:[%s11441_s14 + $0xc0] sm:$0xff] }
 0x137   : > { %v12075_v28 = vpop.f32.mrb[3].mxu0 }
 0x138   : > { %v12082_v32 = vpop.f32.mrb[4].mxu0 }
 0x139   : > { %10238 = vmatmul.mubr.msk.f32.gmra.mrb[26].mxu1 %vm475_vm1, %v11761_v63  ;;  %v12084_v63 = vpop.f32.mrb[5].mxu0 }
 0x13a   : > { %10240 = vmatprep.mubr.msk.f32.mxu1 %vm475_vm1, %v11484_v12  ;;  %v12091_v37 = vpop.f32.mrb[6].mxu0 }
 0x13b   : > { %v12098_v50 = vpop.f32.mrb[7].mxu0 }
 0x13c   : > { %v12108_v61 = vpop.f32.mrb[8].mxu0 }
 0x13d   : > { %10241 = vmatmul.mubr.msk.f32.gmra.mrb[28].mxu1 %vm475_vm1, %v11616_v39  ;;  %v12110_v2 = vpop.f32.mrb[9].mxu0 }
 0x13e   : > { %10243 = vmatprep.mubr.msk.f32.mxu1 %vm475_vm1, %v11632_v41  ;;  %v12116_v13 = vpop.f32.mrb[10].mxu0 }
 0x13f   : > { %13622 = vst [vmem:[#allocation14_spill] sm:$0xff] %v12116_v13  ;;  %v12118_v14 = vpop.f32.mrb[11].mxu0 }
 0x140   : > { %13623 = vst [vmem:[#allocation15_spill] sm:$0xff] %v12118_v14  ;;  %v12124_v16 = vpop.f32.mrb[12].mxu0 }
 0x141   : > { %10244 = vmatmul.mubr.msk.f32.gmra.mrb[30].mxu1 %vm475_vm1, %v11636_v42  ;;  %13624 = vst [vmem:[#allocation16_spill] sm:$0xff] %v12124_v16  ;;  %v12126_v17 = vpop.f32.mrb[13].mxu0 }
 0x142   : > { %10248 = vmatprep.mubr.msk.f32.mxu1 %vm475_vm1, %v5324_v30  ;;  %13625 = vst [vmem:[#allocation17_spill] sm:$0xff] %v12126_v17  ;;  %v12131_v59 = vpop.f32.mrb[14].mxu0 }
 0x143   : > { %13626 = vst [vmem:[#allocation18_spill] sm:$0xff] %v12131_v59  ;;  %v12133_v19 = vpop.f32.mrb[15].mxu0 }
 0x144   : > { %13627 = vst [vmem:[#allocation19_spill] sm:$0xff] %v12133_v19  ;;  %v12141_v30 = vpop.f32.mrb[16].mxu0  ;;  %v5757_v19 = vld [vmem:[%s11441_s14 + $0x6c] sm:$0xff] }
 0x145   : > { %10249 = vmatmul.mubr.msk.f32.vlgmr.msra.gmra.mrb[16].mxu1 %vm475_vm1, %v5325_v34  ;;  %v12143_v34 = vpop.f32.mrb[17].mxu0 }
 0x146   : > { %10251 = vmatprep.mubr.msk.f32.mxu1 %vm475_vm1, %v5326_v36  ;;  %10273 = vmatpush3.msk.msra.mxu1 %vm524_vm0, %v12000_v40  ;;  %v5331_v40 = vld [vmem:[%s11441_s14 + $0x68] sm:$0xff]  ;;  %v8320_v36 = vld [vmem:[%s13595_s7 + $0xe0] sm:$0xff] }
 0x147   : > { %10298 = vmatprep.subr.msk.mxu1 %vm524_vm0, %v12096_v38 }
 0x149   : > { %10252 = vmatmul.mubr.msk.f32.gmra.mrb[18].mxu1 %vm475_vm1, %v5327_v53  ;;  %v8321_v53 = vld [vmem:[%s13595_s7 + $0xe8] sm:$0xff] }
 0x14a   : > { %10254 = vmatprep.mubr.msk.f32.mxu1 %vm475_vm1, %v5328_v54  ;;  %v12156_v54 = vld [vmem:[%s11441_s14 + $0xe0] sm:$0xff] }
 0x14d   : > { %10255 = vmatmul.mubr.msk.f32.gmra.mrb[20].mxu1 %vm475_vm1, %v5329_v5  ;;  %v12158_v5 = vpop.f32.mrb[18].mxu0 }
 0x14e   : > { %10257 = vmatprep.mubr.msk.f32.mxu1 %vm475_vm1, %v5330_v9  ;;  %v12160_v9 = vpop.f32.mrb[19].mxu0 }
 0x151   : > { %10258 = vmatmul.mubr.msk.f32.gmra.mrb[22].mxu1 %vm475_vm1, %v5331_v40  ;;  %v8322_v40 = vld [vmem:[%s13595_s7 + $0xf0] sm:$0xff] }
 0x152   : > { %10260 = vmatprep.mubr.msk.f32.mxu1 %vm475_vm1, %v5332_v15 }
 0x155   : > { %10261 = vmatmul.mubr.msk.f32.gmra.mrb[24].mxu1 %vm475_vm1, %v11526_v20  ;;  %v10560_v20 = vpack.c.bf16 %v8321_v53, %v8320_v36  ;;  %v12173_v36 = vpop.f32.mrb[20].mxu0 }
 0x156   : > { %10263 = vmatprep.mubr.msk.f32.mxu1 %vm475_vm1, %v5334_v18  ;;  %v5751_v18 = vld [vmem:[%s11441_s14 + $0xc] sm:$0xff]  ;;  %v12175_v53 = vpop.f32.mrb[21].mxu0 }
 0x157   : > { %10561 = vmatprep.subr.bf16.mxu0 %v10560_v20  ;;  %v12191_v7 = vpop.f32.mrb[22].mxu0 }
 0x158   : > { %10563 = vmatpush3.bf16.msra.mxu0 %v10560_v20  ;;  %v735_v20 = vld [vmem:[%s13595_s7] sm:$0xff]  ;;  %v12196_v57 = vpop.f32.mrb[23].mxu0 }
 0x159   : > { %10264 = vmatmul.mubr.msk.f32.gmra.mrb[26].mxu1 %vm475_vm1, %v11534_v22  ;;  %v8323_v22 = vld [vmem:[%s13595_s7 + $0xf8] sm:$0xff] }
 0x15a   : > { %10266 = vmatprep.mubr.msk.f32.mxu1 %vm475_vm1, %v12139_v24  ;;  %v10564_v15 = vpack.c.bf16 %v8323_v22, %v8322_v40  ;;  %v736_v40 = vld [vmem:[%s13595_s7 + $0x8] sm:$0xff] }
 0x15b   : > { %v12185_v22 = vpack.c.bf16 %v736_v40, %v735_v20  ;;  %v5755_v20 = vld [vmem:[%s11441_s14 + $0x4c] sm:$0xff]  ;;  %v12205_v40 = vpop.f32.mrb[24].mxu0 }
 0x15c   : > { %10565 = vmatprep.subr.bf16.mxu0 %v10564_v15  ;;  %v12207_v59 = vpop.f32.mrb[25].mxu0 }
 0x15d   : > { %10267 = vmatmul.mubr.msk.f32.gmra.mrb[28].mxu1 %vm475_vm1, %v11545_v25  ;;  %10567 = vmatpush3.bf16.msra.mxu0 %v10564_v15  ;;  %v5753_v15 = vld [vmem:[%s11441_s14 + $0x2c] sm:$0xff] }
 0x15e   : > { %10269 = vmatprep.mubr.msk.f32.mxu1 %vm475_vm1, %v12156_v54  ;;  %10569 = vmatprep.subr.bf16.mxu0 %v12185_v22 }
 0x161   : > { %10270 = vmatmul.mubr.msk.f32.gmra.mrb[30].mxu1 %vm475_vm1, %v11555_v27 }
 0x162   : > { %10274 = vmatprep.mubr.msk.f32.mxu1 %vm475_vm1, %v5751_v18  ;;  %v5754_v18 = vld [vmem:[%s11441_s14 + $0x34] sm:$0xff] }
 0x165   : > { %10275 = vmatmul.mubr.msk.f32.vlgmr.msra.gmra.mrb[16].mxu1 %vm475_vm1, %v5752_v11  ;;  %v5756_v11 = vld [vmem:[%s11441_s14 + $0x54] sm:$0xff] }
 0x166   : > { %10277 = vmatprep.mubr.msk.f32.mxu1 %vm475_vm1, %v5753_v15  ;;  %10299 = vmatpush3.msk.msra.mxu1 %vm524_vm0, %v12096_v38  ;;  %v12213_v15 = vpop.f32.mrb[26].mxu0  ;;  %v5758_v38 = vld [vmem:[%s11441_s14 + $0x74] sm:$0xff] }
 0x167   : > { %10324 = vmatprep.subr.msk.mxu1 %vm524_vm0, %v8725_v0  ;;  %v12215_v16 = vpop.f32.mrb[27].mxu0 }
 0x168   : > { %v12220_v17 = vpop.f32.mrb[28].mxu0 }
 0x169   : > { %10278 = vmatmul.mubr.msk.f32.gmra.mrb[18].mxu1 %vm475_vm1, %v5754_v18  ;;  %v12222_v13 = vpop.f32.mrb[29].mxu0  ;;  %v5760_v18 = vld [vmem:[%s11441_s14 + $0x94] sm:$0xff] }
 0x16a   : > { %10280 = vmatprep.mubr.msk.f32.mxu1 %vm475_vm1, %v5755_v20  ;;  %v12228_v20 = vpop.f32.mrb[30].mxu0 }
 0x16b   : > { %v12230_v14 = vpop.f32.mrb[31].mxu0 }
 0x16d   : > { %10281 = vmatmul.mubr.msk.f32.gmra.mrb[20].mxu1 %vm475_vm1, %v5756_v11  ;;  %v5764_v11 = vld [vmem:[%s11441_s14 + $0xd4] sm:$0xff] }
 0x16e   : > { %10283 = vmatprep.mubr.msk.f32.mxu1 %vm475_vm1, %v5757_v19  ;;  %v5762_v19 = vld [vmem:[%s11441_s14 + $0xb4] sm:$0xff] }
 0x171   : > { %10284 = vmatmul.mubr.msk.f32.gmra.mrb[22].mxu1 %vm475_vm1, %v5758_v38 }
 0x172   : > { %10286 = vmatprep.mubr.msk.f32.mxu1 %vm475_vm1, %v11445_v3  ;;  %v5766_v3 = vld [vmem:[%s11441_s14 + $0xf4] sm:$0xff] }
 0x175   : > { %10287 = vmatmul.mubr.msk.f32.gmra.mrb[24].mxu1 %vm475_vm1, %v5760_v18 }
 0x176   : > { %10289 = vmatprep.mubr.msk.f32.mxu1 %vm475_vm1, %v11457_v6  ;;  %v8759_v6 = vld [vmem:[%s13592_s4 + $0x14] sm:$0xf] }
 0x179   : > { %10290 = vmatmul.mubr.msk.f32.gmra.mrb[26].mxu1 %vm475_vm1, %v5762_v19 }
 0x17a   : > { %10292 = vmatprep.mubr.msk.f32.mxu1 %vm475_vm1, %v11468_v8  ;;  %v8695_v8 = vld [vmem:[%s11441_s14 + $0x100] sm:$0xff] }
 0x17d   : > { %10293 = vmatmul.mubr.msk.f32.gmra.mrb[28].mxu1 %vm475_vm1, %v5764_v11 }
 0x17e   : > { %10295 = vmatprep.mubr.msk.f32.mxu1 %vm475_vm1, %v11478_v10  ;;  %v8697_v10 = vld [vmem:[%s11441_s14 + $0x120] sm:$0xff] }
 0x181   : > { %10296 = vmatmul.mubr.msk.f32.gmra.mrb[30].mxu1 %vm475_vm1, %v5766_v3 }
 0x182   : > { %10300 = vmatprep.mubr.msk.f32.mxu1 %vm475_vm1, %v12139_v24  ;;  %v12377_v24 = vld [vmem:[%s11441_s14 + $0x1ac] sm:$0xff] }
 0x185   : > { %10301 = vmatmul.mubr.msk.f32.vlgmr.msra.gmra.mrb[16].mxu1 %vm475_vm1, %v11545_v25  ;;  %v8699_v25 = vld [vmem:[%s11441_s14 + $0x140] sm:$0xff] }
 0x186   : > { %10303 = vmatprep.mubr.msk.f32.mxu1 %vm475_vm1, %v12156_v54  ;;  %10325 = vmatpush3.msk.msra.mxu1 %vm524_vm0, %v8725_v0  ;;  %v8701_v0 = vld [vmem:[%s11441_s14 + $0x160] sm:$0xff] }
 0x187   : > { %10350 = vmatprep.subr.msk.mxu1 %vm524_vm0, %v8759_v6 }
 0x189   : > { %10304 = vmatmul.mubr.msk.f32.gmra.mrb[18].mxu1 %vm475_vm1, %v11555_v27  ;;  %v12273_v27 = vld [vmem:[%s11441_s14 + $0x180] sm:$0xff] }
 0x18a   : > { %10306 = vmatprep.mubr.msk.f32.mxu1 %vm475_vm1, %v8695_v8 }
 0x18d   : > { %10307 = vmatmul.mubr.msk.f32.gmra.mrb[20].mxu1 %vm475_vm1, %v11565_v29  ;;  %v12280_v29 = vld [vmem:[%s11441_s14 + $0x1a0] sm:$0xff] }
 0x18e   : > { %10309 = vmatprep.mubr.msk.f32.mxu1 %vm475_vm1, %v8697_v10 }
 0x191   : > { %10310 = vmatmul.mubr.msk.f32.gmra.mrb[22].mxu1 %vm475_vm1, %v11575_v31  ;;  %v8795_v31 = vld [vmem:[%s13592_s4 + $0x18] sm:$0xf] }
 0x192   : > { %10312 = vmatprep.mubr.msk.f32.mxu1 %vm475_vm1, %v8699_v25 }
 0x195   : > { %10313 = vmatmul.mubr.msk.f32.gmra.mrb[24].mxu1 %vm475_vm1, %v11585_v33  ;;  %v8745_v33 = vld [vmem:[%s11441_s14 + $0xec] sm:$0xff] }
 0x196   : > { %10315 = vmatprep.mubr.msk.f32.mxu1 %vm475_vm1, %v8701_v0 }
 0x199   : > { %10316 = vmatmul.mubr.msk.f32.gmra.mrb[26].mxu1 %vm475_vm1, %v11595_v35  ;;  %v12331_v35 = vld [vmem:[%s13592_s4 + $0x1c] sm:$0xf] }
 0x19a   : > { %10318 = vmatprep.mubr.msk.f32.mxu1 %vm475_vm1, %v12273_v27 }
 0x19d   : > { %10319 = vmatmul.mubr.msk.f32.gmra.mrb[28].mxu1 %vm475_vm1, %v11849_v1  ;;  %v12373_v1 = vld [vmem:[%s11441_s14 + $0x194] sm:$0xff] }
 0x19e   : > { %10321 = vmatprep.mubr.msk.f32.mxu1 %vm475_vm1, %v12280_v29 }
 0x1a1   : > { %10322 = vmatmul.mubr.msk.f32.gmra.mrb[30].mxu1 %vm475_vm1, %v11859_v4 }
 0x1a2   : > { %10326 = vmatprep.mubr.msk.f32.mxu1 %vm475_vm1, %v11484_v12  ;;  %v8743_v12 = vld [vmem:[%s11441_s14 + $0xcc] sm:$0xff] }
 0x1a5   : > { %10327 = vmatmul.mubr.msk.f32.vlgmr.msra.gmra.mrb[16].mxu1 %vm475_vm1, %v11616_v39  ;;  %v8747_v39 = vld [vmem:[%s11441_s14 + $0x10c] sm:$0xff] }
 0x1a6   : > { %10329 = vmatprep.mubr.msk.f32.mxu1 %vm475_vm1, %v11632_v41  ;;  %10351 = vmatpush3.msk.msra.mxu1 %vm524_vm0, %v8759_v6  ;;  %v8748_v41 = vld [vmem:[%s11441_s14 + $0x114] sm:$0xff] }
 0x1a7   : > { %10376 = vmatprep.subr.msk.mxu1 %vm524_vm0, %v8795_v31  ;;  %v738_v6 = vld [vmem:[%s13595_s7 + $0x18] sm:$0xff] }
 0x1a9   : > { %10330 = vmatmul.mubr.msk.f32.gmra.mrb[18].mxu1 %vm475_vm1, %v11636_v42  ;;  %v8749_v42 = vld [vmem:[%s11441_s14 + $0x12c] sm:$0xff] }
 0x1aa   : > { %10332 = vmatprep.mubr.msk.f32.mxu1 %vm475_vm1, %v11641_v43  ;;  %v8750_v43 = vld [vmem:[%s11441_s14 + $0x134] sm:$0xff] }
 0x1ad   : > { %10333 = vmatmul.mubr.msk.f32.gmra.mrb[20].mxu1 %vm475_vm1, %v11652_v44  ;;  %v8751_v44 = vld [vmem:[%s11441_s14 + $0x14c] sm:$0xff] }
 0x1ae   : > { %10335 = vmatprep.mubr.msk.f32.mxu1 %vm475_vm1, %v11655_v45  ;;  %v8752_v45 = vld [vmem:[%s11441_s14 + $0x154] sm:$0xff] }
 0x1b1   : > { %10336 = vmatmul.mubr.msk.f32.gmra.mrb[22].mxu1 %vm475_vm1, %v11666_v46  ;;  %v8753_v46 = vld [vmem:[%s11441_s14 + $0x16c] sm:$0xff] }
 0x1b2   : > { %10338 = vmatprep.mubr.msk.f32.mxu1 %vm475_vm1, %v11669_v47  ;;  %v8754_v47 = vld [vmem:[%s11441_s14 + $0x174] sm:$0xff] }
 0x1b5   : > { %10339 = vmatmul.mubr.msk.f32.gmra.mrb[24].mxu1 %vm475_vm1, %v11680_v48  ;;  %v12355_v48 = vld [vmem:[%s11441_s14 + $0x18c] sm:$0xff] }
 0x1b6   : > { %10341 = vmatprep.mubr.msk.f32.mxu1 %vm475_vm1, %v11683_v49 }
 0x1b9   : > { %10342 = vmatmul.mubr.msk.f32.gmra.mrb[26].mxu1 %vm475_vm1, %v11697_v51  ;;  %v12360_v51 = vld [vmem:[%s13593_s5 + $0x1] ss:$0 sm:$0xff] }
 0x1ba   : > { %10344 = vmatprep.mubr.msk.f32.mxu1 %vm475_vm1, %v11700_v52 }
 0x1bd   : > { %10345 = vmatmul.mubr.msk.f32.gmra.mrb[28].mxu1 %vm475_vm1, %v11717_v55 }
 0x1be   : > { %10347 = vmatprep.mubr.msk.f32.mxu1 %vm475_vm1, %v11720_v56  ;;  %v12367_v56 = vld [vmem:[%s13594_s6 + $0x1] ss:$0 sm:$0xff] }
 0x1c1   : > { %10348 = vmatmul.mubr.msk.f32.gmra.mrb[30].mxu1 %vm475_vm1, %v11734_v58 }
 0x1c2   : > { %10352 = vmatprep.mubr.msk.f32.mxu1 %vm475_vm1, %v8743_v12 }
 0x1c5   : > { %10353 = vmatmul.mubr.msk.f32.vlgmr.msra.gmra.mrb[16].mxu1 %vm475_vm1, %v5764_v11 }
 0x1c6   : > { %10355 = vmatprep.mubr.msk.f32.mxu1 %vm475_vm1, %v8745_v33  ;;  %10377 = vmatpush3.msk.msra.mxu1 %vm524_vm0, %v8795_v31 }
 0x1c7   : > { %10402 = vmatprep.subr.msk.mxu1 %vm524_vm0, %v12331_v35 }
 0x1c9   : > { %10356 = vmatmul.mubr.msk.f32.gmra.mrb[18].mxu1 %vm475_vm1, %v5766_v3  ;;  %v737_v3 = vld [vmem:[%s13595_s7 + $0x10] sm:$0xff] }
 0x1ca   : > { %10358 = vmatprep.mubr.msk.f32.mxu1 %vm475_vm1, %v8747_v39  ;;  %v10572_v33 = vpack.c.bf16 %v738_v6, %v737_v3 }
 0x1cd   : > { %10359 = vmatmul.mubr.msk.f32.gmra.mrb[20].mxu1 %vm475_vm1, %v8748_v41 }
 0x1ce   : > { %10361 = vmatprep.mubr.msk.f32.mxu1 %vm475_vm1, %v8749_v42 }
 0x1d1   : > { %10362 = vmatmul.mubr.msk.f32.gmra.mrb[22].mxu1 %vm475_vm1, %v8750_v43  ;;  %v739_v43 = vld [vmem:[%s13595_s7 + $0x20] sm:$0xff] }
 0x1d2   : > { %10364 = vmatprep.mubr.msk.f32.mxu1 %vm475_vm1, %v8751_v44  ;;  %v8780_v44 = vld [vmem:[%s11441_s14 + $0x188] sm:$0xff] }
 0x1d5   : > { %10365 = vmatmul.mubr.msk.f32.gmra.mrb[24].mxu1 %vm475_vm1, %v8752_v45 }
 0x1d6   : > { %10367 = vmatprep.mubr.msk.f32.mxu1 %vm475_vm1, %v8753_v46 }
 0x1d8   : > { %v9796_v49 = vpop.f32.mrb[0].mxu1 }
 0x1d9   : > { %v10664_v52 = vadd.f32 %v9796_v49, %v12141_v30  ;;  %v2635_v55 = vpop.f32.mrb[1].mxu1  ;;  %10368 = vmatmul.mubr.msk.f32.gmra.mrb[26].mxu1 %vm475_vm1, %v8754_v47 }
 0x1da   : > { %v10665_v58 = vadd.f32 %v2635_v55, %v12143_v34  ;;  %10370 = vmatprep.mubr.msk.f32.mxu1 %vm475_vm1, %v12355_v48 }
 0x1db   : > { %v2739_v4 = vmul.f32 %v10664_v52, %v12360_v51 }
 0x1dc   : > { %v2738_v30 = vmul.f32 %v10665_v58, %v12360_v51  ;;  %v9799_v54 = vpop.f32.mrb[2].mxu1 }
 0x1dd   : > { %v2763_v38 = vadd.f32 %v12367_v56, %v2739_v4  ;;  %v10666_v18 = vadd.f32 %v9799_v54, %v12158_v5  ;;  %v2645_v19 = vpop.f32.mrb[3].mxu1  ;;  %10371 = vmatmul.mubr.msk.f32.gmra.mrb[28].mxu1 %vm475_vm1, %v12373_v1  ;;  %v12395_v5 = vld [vmem:[%s11441_s14 + $0x1b4] sm:$0xff]  ;;  %v12423_v4 = vld [vmem:[%s13592_s4 + $0x20] sm:$0xf] }
 0x1de   : > { %v10667_v34 = vadd.f32 %v2645_v19, %v12160_v9  ;;  %v2762_v11 = vadd.f32 %v12367_v56, %v2738_v30  ;;  %10373 = vmatprep.mubr.msk.f32.mxu1 %vm475_vm1, %v12377_v24  ;;  %v742_v54 = vld [vmem:[%s13595_s7 + $0x38] sm:$0xff]  ;;  %v8783_v19 = vld [vmem:[%s11441_s14 + $0x1c0] sm:$0xff] }
 0x1df   : > { %v2741_v8 = vmul.f32 %v10666_v18, %v12360_v51  ;;  %v2779_v0 = vmax.f32 %v2763_v38, 0.0  ;;  %v8782_v38 = vld [vmem:[%s11441_s14 + $0x1a8] sm:$0xff] }
 0x1e0   : > { %v2740_v9 = vmul.f32 %v10667_v34, %v12360_v51  ;;  %v9802_v10 = vpop.f32.mrb[4].mxu1  ;;  %v2778_v25 = vmax.f32 %v2762_v11, 0.0 }
 0x1e1   : > { %v10668_v31 = vadd.f32 %v9802_v10, %v12173_v36  ;;  %v2655_v12 = vpop.f32.mrb[5].mxu1  ;;  %v2765_v39 = vadd.f32 %v12367_v56, %v2741_v8  ;;  %10374 = vmatmul.mubr.msk.f32.gmra.mrb[30].mxu1 %vm475_vm1, %v12395_v5  ;;  %v740_v36 = vld [vmem:[%s13595_s7 + $0x28] sm:$0xff] }
 0x1e2   : > { %v10669_v41 = vadd.f32 %v2655_v12, %v12175_v53  ;;  %9850 = vmatprep.mubr.f32.mxu0 %v2778_v25  ;;  %v2764_v42 = vadd.f32 %v12367_v56, %v2740_v9  ;;  %10378 = vmatprep.mubr.msk.f32.mxu1 %vm475_vm1, %v12273_v27  ;;  %v10576_v58 = vpack.c.bf16 %v740_v36, %v739_v43  ;;  %v743_v25 = vld [vmem:[%s13595_s7 + $0x40] sm:$0xff] }
 0x1e3   : > { %v2743_v45 = vmul.f32 %v10668_v31, %v12360_v51  ;;  %9851 = vmatmul.mubr.f32.vlgmr.msra.gmra.mrb[32].mxu0 %v2779_v0  ;;  %v2781_v55 = vmax.f32 %v2765_v39, 0.0  ;;  %v8785_v31 = vld [vmem:[%s11441_s14 + $0x1e0] sm:$0xff] }
 0x1e4   : > { %v2742_v53 = vmul.f32 %v10669_v41, %v12360_v51  ;;  %10571 = vmatpush3.bf16.msra.mxu0 %v12185_v22  ;;  %v9805_v46 = vpop.f32.mrb[6].mxu1  ;;  %v2780_v47 = vmax.f32 %v2764_v42, 0.0 }
 0x1e5   : > { %v10670_v49 = vadd.f32 %v9805_v46, %v12191_v7  ;;  %v2665_v52 = vpop.f32.mrb[7].mxu1  ;;  %10573 = vmatprep.subr.bf16.mxu0 %v10572_v33  ;;  %v2767_v27 = vadd.f32 %v12367_v56, %v2743_v45  ;;  %10379 = vmatmul.mubr.msk.f32.vlgmr.msra.gmra.mrb[16].mxu1 %vm475_vm1, %v8780_v44  ;;  %v741_v7 = vld [vmem:[%s13595_s7 + $0x30] sm:$0xff] }
 0x1e6   : > { %v10671_v22 = vadd.f32 %v2665_v52, %v12196_v57  ;;  %9853 = vmatprep.mubr.f32.mxu0 %v2780_v47  ;;  %v2766_v30 = vadd.f32 %v12367_v56, %v2742_v53  ;;  %10381 = vmatprep.mubr.msk.f32.mxu1 %vm475_vm1, %v12280_v29  ;;  %v10580_v8 = vpack.c.bf16 %v742_v54, %v741_v7  ;;  %v745_v53 = vld [vmem:[%s13595_s7 + $0x50] sm:$0xff]  ;;  %v8787_v47 = vld [vmem:[%s11441_s14 + $0x200] sm:$0xff] }
 0x1e7   : > { %v2745_v18 = vmul.f32 %v10670_v49, %v12360_v51  ;;  %9854 = vmatmul.mubr.f32.gmra.mrb[34].mxu0 %v2781_v55  ;;  %10403 = vmatpush3.msk.msra.mxu1 %vm524_vm0, %v12331_v35  ;;  %v2783_v6 = vmax.f32 %v2767_v27, 0.0  ;;  %v747_v54 = vld [vmem:[%s13595_s7 + $0x60] sm:$0xff] }
 0x1e8   : > { %v2744_v57 = vmul.f32 %v10671_v22, %v12360_v51  ;;  %10575 = vmatpush3.bf16.msra.mxu0 %v10572_v33  ;;  %v9808_v34 = vpop.f32.mrb[8].mxu1  ;;  %v2782_v11 = vmax.f32 %v2766_v30, 0.0  ;;  %10428 = vmatprep.subr.msk.mxu1 %vm524_vm0, %v12423_v4 }
 0x1e9   : > { %v10672_v3 = vadd.f32 %v9808_v34, %v12205_v40  ;;  %v2675_v29 = vpop.f32.mrb[9].mxu1  ;;  %10577 = vmatprep.subr.bf16.mxu0 %v10576_v58  ;;  %v2769_v9 = vadd.f32 %v12367_v56, %v2745_v18  ;;  %10382 = vmatmul.mubr.msk.f32.gmra.mrb[18].mxu1 %vm475_vm1, %v8782_v38  ;;  %v744_v40 = vld [vmem:[%s13595_s7 + $0x48] sm:$0xff]  ;;  %v8789_v18 = vld [vmem:[%s11441_s14 + $0x220] sm:$0xff] }
 0x1ea   : > { %v10673_v35 = vadd.f32 %v2675_v29, %v12207_v59  ;;  %9856 = vmatprep.mubr.f32.mxu0 %v2782_v11  ;;  %v2768_v10 = vadd.f32 %v12367_v56, %v2744_v57  ;;  %10384 = vmatprep.mubr.msk.f32.mxu1 %vm475_vm1, %v8783_v19  ;;  %v10584_v43 = vpack.c.bf16 %v744_v40, %v743_v25  ;;  %v8788_v38 = vld [vmem:[%s11441_s14 + $0x208] sm:$0xff]  ;;  %v750_v25 = vld [vmem:[%s13595_s7 + $0x78] sm:$0xff] }
 0x1eb   : > { %v2747_v0 = vmul.f32 %v10672_v3, %v12360_v51  ;;  %9857 = vmatmul.mubr.f32.gmra.mrb[36].mxu0 %v2783_v6  ;;  %v2785_v42 = vmax.f32 %v2769_v9, 0.0  ;;  %v8790_v40 = vld [vmem:[%s11441_s14 + $0x228] sm:$0xff] }
 0x1ec   : > { %v2746_v12 = vmul.f32 %v10673_v35, %v12360_v51  ;;  %10579 = vmatpush3.bf16.msra.mxu0 %v10576_v58  ;;  %v9811_v59 = vpop.f32.mrb[10].mxu1  ;;  %v2784_v33 = vmax.f32 %v2768_v10, 0.0 }
 0x1ed   : > { %v10674_v39 = vadd.f32 %v9811_v59, %v12213_v15  ;;  %v2685_v41 = vpop.f32.mrb[11].mxu1  ;;  %10581 = vmatprep.subr.bf16.mxu0 %v10580_v8  ;;  %v2771_v36 = vadd.f32 %v12367_v56, %v2747_v0  ;;  %10385 = vmatmul.mubr.msk.f32.gmra.mrb[20].mxu1 %vm475_vm1, %v11972_v23  ;;  %v746_v15 = vld [vmem:[%s13595_s7 + $0x58] sm:$0xff]  ;;  %v8791_v0 = vld [vmem:[%s11441_s14 + $0x240] sm:$0xff] }
 0x1ee   : > { %v10675_v44 = vadd.f32 %v2685_v41, %v12215_v16  ;;  %9859 = vmatprep.mubr.f32.mxu0 %v2784_v33  ;;  %v2770_v45 = vadd.f32 %v12367_v56, %v2746_v12  ;;  %10387 = vmatprep.mubr.msk.f32.mxu1 %vm475_vm1, %v8785_v31  ;;  %v10588_v27 = vpack.c.bf16 %v746_v15, %v745_v53 }
 0x1ef   : > { %v2749_v46 = vmul.f32 %v10674_v39, %v12360_v51  ;;  %9860 = vmatmul.mubr.f32.gmra.mrb[38].mxu0 %v2785_v42  ;;  %v2787_v58 = vmax.f32 %v2771_v36, 0.0  ;;  %v8792_v36 = vld [vmem:[%s11441_s14 + $0x248] sm:$0xff] }
 0x1f0   : > { %v2748_v23 = vmul.f32 %v10675_v44, %v12360_v51  ;;  %10583 = vmatpush3.bf16.msra.mxu0 %v10580_v8  ;;  %v9814_v16 = vpop.f32.mrb[12].mxu1  ;;  %v2786_v49 = vmax.f32 %v2770_v45, 0.0 }
 0x1f1   : > { %v10676_v52 = vadd.f32 %v9814_v16, %v12220_v17  ;;  %v2695_v55 = vpop.f32.mrb[13].mxu1  ;;  %10585 = vmatprep.subr.bf16.mxu0 %v10584_v43  ;;  %v2773_v22 = vadd.f32 %v12367_v56, %v2749_v46  ;;  %10388 = vmatmul.mubr.msk.f32.gmra.mrb[22].mxu1 %vm475_vm1, %v11980_v26  ;;  %v748_v17 = vld [vmem:[%s13595_s7 + $0x68] sm:$0xff]  ;;  %v12491_v26 = vld [vmem:[%s13593_s5] ss:$0 sm:$0xff] }
 0x1f2   : > { %v10677_v30 = vadd.f32 %v2695_v55, %v12222_v13  ;;  %9862 = vmatprep.mubr.f32.mxu0 %v2786_v49  ;;  %v2772_v7 = vadd.f32 %v12367_v56, %v2748_v23  ;;  %10390 = vmatprep.mubr.msk.f32.mxu1 %vm475_vm1, %v8787_v47  ;;  %v10592_v6 = vpack.c.bf16 %v748_v17, %v747_v54  ;;  %v8358_v47 = vld [vmem:[%s13591_s3 + $0x4] sm:$0xf]  ;;  %v8794_v23 = vld [vmem:[%s11441_s14 + $0x268] sm:$0xff] }
 0x1f3   : > { %v2751_v13 = vmul.f32 %v10676_v52, %v12360_v51  ;;  %9863 = vmatmul.mubr.f32.gmra.mrb[40].mxu0 %v2787_v58  ;;  %v2789_v29 = vmax.f32 %v2773_v22, 0.0  ;;  %v680_v9 = vmul.f32 %v12491_v26, %v12067_v60  ;;  %v12514_v60 = vld [vmem:[%s13594_s6] ss:$0 sm:$0xff]  ;;  %v681_v59 = vmul.f32 %v12065_v21, %v12491_v26  ;;  %v12564_v22 = vld [vmem:[%s11441_s14 + $0x1a6] sm:$0xff] }
 0x1f4   : > { %v2750_v19 = vmul.f32 %v10677_v30, %v12360_v51  ;;  %10587 = vmatpush3.bf16.msra.mxu0 %v10584_v43  ;;  %v9817_v57 = vpop.f32.mrb[14].mxu1  ;;  %v2788_v34 = vmax.f32 %v2772_v7, 0.0  ;;  %v682_v43 = vmul.f32 %v12491_v26, %v12075_v28  ;;  %v8793_v21 = vld [vmem:[%s11441_s14 + $0x260] sm:$0xff]  ;;  %v683_v53 = vmul.f32 %v12073_v62, %v12491_v26 }
 0x1f5   : > { %v10678_v11 = vadd.f32 %v9817_v57, %v12228_v20  ;;  %v2705_v3 = vpop.f32.mrb[15].mxu1  ;;  %10589 = vmatprep.subr.bf16.mxu0 %v10588_v27  ;;  %v2775_v8 = vadd.f32 %v12367_v56, %v2751_v13  ;;  %10391 = vmatmul.mubr.msk.f32.gmra.mrb[24].mxu1 %vm475_vm1, %v8788_v38  ;;  %v749_v20 = vld [vmem:[%s13595_s7 + $0x70] sm:$0xff]  ;;  %v703_v42 = vadd.f32 %v12514_v60, %v680_v9  ;;  %v12543_v62 = vld [vmem:[%s11441_s14 + $0x186] sm:$0xff] }
 0x1f6   : > { %v10679_v35 = vadd.f32 %v2705_v3, %v12230_v14  ;;  %9865 = vmatprep.mubr.f32.mxu0 %v2788_v34  ;;  %v2774_v10 = vadd.f32 %v12367_v56, %v2750_v19  ;;  %10393 = vmatprep.mubr.msk.f32.mxu1 %vm475_vm1, %v8789_v18  ;;  %v10596_v39 = vpack.c.bf16 %v750_v25, %v749_v20  ;;  %v12580_v13 = vld [vmem:[%s11441_s14 + $0x1ae] sm:$0xff]  ;;  %v13630_v20 = vld [vmem:[#allocation17_spill] sm:$0xff] }
 0x1f7   : > { %v2753_v14 = vmul.f32 %v10678_v11, %v12360_v51  ;;  %9866 = vmatmul.mubr.f32.gmra.mrb[42].mxu0 %v2789_v29  ;;  %v2791_v33 = vmax.f32 %v2775_v8, 0.0  ;;  %v704_v45 = vadd.f32 %v12514_v60, %v681_v59  ;;  %v719_v28 = vmax.f32 %v703_v42, 0.0  ;;  %v13628_v11 = vld [vmem:[#allocation15_spill] sm:$0xff]  ;;  %v13629_v8 = vld [vmem:[#allocation14_spill] sm:$0xff] }
 0x1f8   : > { %v2752_v31 = vmul.f32 %v10679_v35, %v12360_v51  ;;  %10591 = vmatpush3.bf16.msra.mxu0 %v10588_v27  ;;  %v2790_v12 = vmax.f32 %v2774_v10, 0.0  ;;  %v684_v46 = vmul.f32 %v12491_v26, %v12084_v63  ;;  %v706_v49 = vadd.f32 %v12514_v60, %v683_v53  ;;  %v12558_v27 = vld [vmem:[%s13591_s3] sm:$0xf]  ;;  %v12598_v3 = vld [vmem:[%s11441_s14 + $0x1ce] sm:$0xff]  ;;  %v12601_v29 = vld [vmem:[%s11441_s14 + $0x1e6] sm:$0xff] }
 0x1f9   : > { %10593 = vmatprep.subr.bf16.mxu0 %v10592_v6  ;;  %v2777_v41 = vadd.f32 %v12367_v56, %v2753_v14  ;;  %10394 = vmatmul.mubr.msk.f32.gmra.mrb[26].mxu1 %vm475_vm1, %v8790_v40  ;;  %v720_v16 = vmax.f32 %v704_v45, 0.0  ;;  %v685_v63 = vmul.f32 %v12082_v32, %v12491_v26  ;;  %v686_v58 = vmul.f32 %v12491_v26, %v12098_v50  ;;  %v12561_v32 = vld [vmem:[%s11441_s14 + $0x18e] sm:$0xff]  ;;  %v12617_v14 = vld [vmem:[%s11441_s14 + $0x206] sm:$0xff] }
 0x1fa   : > { %9868 = vmatprep.mubr.f32.mxu0 %v2790_v12  ;;  %v2776_v51 = vadd.f32 %v12367_v56, %v2752_v31  ;;  %10396 = vmatprep.mubr.msk.f32.mxu1 %vm475_vm1, %v8791_v0  ;;  %v705_v56 = vadd.f32 %v12514_v60, %v682_v43  ;;  %v707_v55 = vadd.f32 %v12514_v60, %v684_v46  ;;  %v722_v30 = vmax.f32 %v706_v49, 0.0  ;;  %v12614_v40 = vld [vmem:[%s11441_s14 + $0x1ee] sm:$0xff] }
 0x1fb   : > { %9869 = vmatmul.mubr.f32.gmra.mrb[44].mxu0 %v2791_v33  ;;  %v2793_v15 = vmax.f32 %v2777_v41, 0.0  ;;  %v708_v50 = vadd.f32 %v12514_v60, %v685_v63  ;;  %v687_v7 = vmul.f32 %v12091_v37, %v12491_v26  ;;  %v709_v17 = vadd.f32 %v12514_v60, %v686_v58  ;;  %v12585_v37 = vld [vmem:[%s11441_s14 + $0x1c6] sm:$0xff]  ;;  %v13631_v12 = vld [vmem:[#allocation16_spill] sm:$0xff] }
 0x1fc   : > { %10595 = vmatpush3.bf16.msra.mxu0 %v10592_v6  ;;  %v2792_v44 = vmax.f32 %v2776_v51, 0.0  ;;  %v721_v52 = vmax.f32 %v705_v56, 0.0  ;;  %v723_v54 = vmax.f32 %v707_v55, 0.0  ;;  %v688_v38 = vmul.f32 %v12491_v26, %v12110_v2  ;;  %v13632_v41 = vld [vmem:[#allocation19_spill] sm:$0xff]  ;;  %v13636_v58 = vld [vmem:[#allocation12_spill] sm:$0xff] }
 0x1fd   : > { %10597 = vmatprep.subr.bf16.mxu0 %v10596_v39  ;;  %10397 = vmatmul.mubr.msk.f32.gmra.mrb[28].mxu1 %vm475_vm1, %v8792_v36  ;;  %v724_v18 = vmax.f32 %v708_v50, 0.0  ;;  %v710_v19 = vadd.f32 %v12514_v60, %v687_v7  ;;  %v689_v57 = vmul.f32 %v12108_v61, %v12491_v26  ;;  %v725_v2 = vmax.f32 %v709_v17, 0.0  ;;  %v12630_v43 = vld [vmem:[%s11441_s14 + $0x20e] sm:$0xff]  ;;  %v12633_v51 = vld [vmem:[%s11441_s14 + $0x226] sm:$0xff] }
 0x1fe   : > { %9871 = vmatprep.mubr.f32.mxu0 %v2792_v44  ;;  %10399 = vmatprep.mubr.msk.f32.mxu1 %vm475_vm1, %v8793_v21  ;;  %v711_v34 = vadd.f32 %v12514_v60, %v688_v38  ;;  %v691_v9 = vmul.f32 %v13629_v8, %v12491_v26  ;;  %v692_v25 = vmul.f32 %v12491_v26, %v13630_v20  ;;  %v13633_v44 = vld [vmem:[#allocation18_spill] sm:$0xff]  ;;  %v8828_v63 = vld [vmem:[%s11441_s14 + $0x26e] sm:$0xff] }
 0x1ff   : > { %9872 = vmatmul.mubr.f32.gmra.mrb[46].mxu0 %v2793_v15  ;;  %v726_v61 = vmax.f32 %v710_v19, 0.0  ;;  %v712_v6 = vadd.f32 %v12514_v60, %v689_v57  ;;  %v693_v59 = vmul.f32 %v13631_v12, %v12491_v26  ;;  %v694_v42 = vmul.f32 %v12491_v26, %v13632_v41  ;;  %v8825_v56 = vld [vmem:[%s11441_s14 + $0x246] sm:$0xff]  ;;  %v8347_v50 = vld [vmem:[%s11441_s14 + $0x8e] sm:$0xff] }
 0x200   : > { %10599 = vmatpush3.bf16.msra.mxu0 %v10596_v39  ;;  %9906 = vmatprep.mubr.f32.mxu0 %v719_v28  ;;  %v727_v35 = vmax.f32 %v711_v34, 0.0  ;;  %v714_v31 = vadd.f32 %v12514_v60, %v691_v9  ;;  %v715_v39 = vadd.f32 %v12514_v60, %v692_v25  ;;  %v695_v45 = vmul.f32 %v13633_v44, %v12491_v26  ;;  %v12644_v28 = vld [vmem:[%s11441_s14 + $0x22e] sm:$0xff]  ;;  %v8348_v7 = vld [vmem:[%s11441_s14 + $0xa6] sm:$0xff] }
 0x201   : > { %9930 = vmatprep.subr.msk.mxu0 %vm524_vm0, %v8358_v47  ;;  %10400 = vmatmul.mubr.msk.f32.gmra.mrb[30].mxu1 %vm475_vm1, %v8794_v23  ;;  %v728_v0 = vmax.f32 %v712_v6, 0.0  ;;  %v716_v21 = vadd.f32 %v12514_v60, %v693_v59  ;;  %v717_v15 = vadd.f32 %v12514_v60, %v694_v42  ;;  %v8826_v23 = vld [vmem:[%s11441_s14 + $0x24e] sm:$0xff]  ;;  %v8350_v17 = vld [vmem:[%s11441_s14 + $0xc6] sm:$0xff] }
 0x202   : > { %10404 = vmatprep.mubr.msk.f32.mxu1 %vm475_vm1, %v12543_v62  ;;  %v730_v36 = vmax.f32 %v714_v31, 0.0  ;;  %v731_v53 = vmax.f32 %v715_v39, 0.0  ;;  %v13635_v55 = vld [vmem:[#allocation11_spill] sm:$0xff]  ;;  %v8854_v38 = vld [vmem:[%s11441_s14 + $0x1f4] sm:$0xff] }
 0x203   : > { %9907 = vmatmul.mubr.f32.vlgmr.msra.gmra.mrb[32].mxu0 %v720_v16  ;;  %v732_v46 = vmax.f32 %v716_v21, 0.0  ;;  %v8827_v16 = vld [vmem:[%s11441_s14 + $0x266] sm:$0xff]  ;;  %v8856_v57 = vld [vmem:[%s11441_s14 + $0x214] sm:$0xff] }
 0x204   : > { %9931 = vmatpush3.msk.msra.mxu0 %vm524_vm0, %v8358_v47  ;;  %9909 = vmatprep.mubr.f32.mxu0 %v721_v52  ;;  %v718_v47 = vadd.f32 %v12514_v60, %v695_v45  ;;  %v12664_v52 = vld [vmem:[%s13591_s3 + $0x8] sm:$0xf]  ;;  %v8353_v34 = vld [vmem:[%s11441_s14 + $0xee] sm:$0xff] }
 0x205   : > { %9956 = vmatprep.subr.msk.mxu0 %vm524_vm0, %v12558_v27  ;;  %10405 = vmatmul.mubr.msk.f32.vlgmr.msra.gmra.mrb[16].mxu1 %vm475_vm1, %v12561_v32  ;;  %v8352_v19 = vld [vmem:[%s11441_s14 + $0xe6] sm:$0xff]  ;;  %v8355_v6 = vld [vmem:[%s11441_s14 + $0x10e] sm:$0xff] }
 0x206   : > { %10407 = vmatprep.mubr.msk.f32.mxu1 %vm475_vm1, %v12564_v22  ;;  %10429 = vmatpush3.msk.msra.mxu1 %vm524_vm0, %v12423_v4  ;;  %v690_v4 = vmul.f32 %v12491_v26, %v13628_v11  ;;  %v733_v26 = vmax.f32 %v717_v15, 0.0  ;;  %v734_v49 = vmax.f32 %v718_v47, 0.0  ;;  %v8354_v11 = vld [vmem:[%s11441_s14 + $0x106] sm:$0xff]  ;;  %v8860_v9 = vld [vmem:[%s11441_s14 + $0x254] sm:$0xff] }
 0x207   : > { %9910 = vmatmul.mubr.f32.gmra.mrb[34].mxu0 %v722_v30  ;;  %v8346_v30 = vld [vmem:[%s11441_s14 + $0x86] sm:$0xff]  ;;  %v8862_v25 = vld [vmem:[%s11441_s14 + $0x274] sm:$0xff] }
 0x208   : > { %9912 = vmatprep.mubr.f32.mxu0 %v723_v54  ;;  %v713_v10 = vadd.f32 %v12514_v60, %v690_v4  ;;  %v13634_v60 = vld [vmem:[#allocation10_spill] sm:$0xff]  ;;  %v8349_v54 = vld [vmem:[%s11441_s14 + $0xae] sm:$0xff] }
 0x209   : > { %10408 = vmatmul.mubr.msk.f32.gmra.mrb[18].mxu1 %vm475_vm1, %v12580_v13  ;;  %v8858_v4 = vld [vmem:[%s11441_s14 + $0x234] sm:$0xff]  ;;  %v8356_v8 = vld [vmem:[%s11441_s14 + $0x126] sm:$0xff] }
 0x20a   : > { %10410 = vmatprep.mubr.msk.f32.mxu1 %vm475_vm1, %v12585_v37  ;;  %v729_v33 = vmax.f32 %v713_v10, 0.0  ;;  %v8357_v10 = vld [vmem:[%s11441_s14 + $0x12e] sm:$0xff]  ;;  %v8326_v20 = vld [vmem:[%s11441_s14 + $0x42] sm:$0xff] }
 0x20b   : > { %9913 = vmatmul.mubr.f32.gmra.mrb[36].mxu0 %v724_v18  ;;  %v8351_v18 = vld [vmem:[%s11441_s14 + $0xce] sm:$0xff]  ;;  %v8328_v31 = vld [vmem:[%s11441_s14 + $0x62] sm:$0xff] }
 0x20c   : > { %9915 = vmatprep.mubr.f32.mxu0 %v725_v2  ;;  %v8857_v2 = vld [vmem:[%s11441_s14 + $0x22c] sm:$0xff]  ;;  %v8332_v41 = vld [vmem:[%s11441_s14 + $0xa2] sm:$0xff] }
 0x20d   : > { %10411 = vmatmul.mubr.msk.f32.gmra.mrb[20].mxu1 %vm475_vm1, %v12598_v3  ;;  %v8443_v12 = vld [vmem:[%s13591_s3 + $0xc] sm:$0xf]  ;;  %v8336_v44 = vld [vmem:[%s11441_s14 + $0xe2] sm:$0xff]  ;;  %v8394_v47 = vld [vmem:[%s11441_s14 + $0x52] sm:$0xff] }
 0x20e   : > { %10413 = vmatprep.mubr.msk.f32.mxu1 %vm475_vm1, %v12601_v29  ;;  %v8329_v59 = vld [vmem:[%s11441_s14 + $0x6a] sm:$0xff] }
 0x20f   : > { %9916 = vmatmul.mubr.f32.gmra.mrb[38].mxu0 %v726_v61  ;;  %v8859_v61 = vld [vmem:[%s11441_s14 + $0x24c] sm:$0xff] }
 0x210   : > { %9918 = vmatprep.mubr.f32.mxu0 %v727_v35  ;;  %v8861_v35 = vld [vmem:[%s11441_s14 + $0x26c] sm:$0xff] }
 0x211   : > { %10414 = vmatmul.mubr.msk.f32.gmra.mrb[22].mxu1 %vm475_vm1, %v12614_v40  ;;  %v8331_v39 = vld [vmem:[%s11441_s14 + $0x8a] sm:$0xff] }
 0x212   : > { %10416 = vmatprep.mubr.msk.f32.mxu1 %vm475_vm1, %v12617_v14  ;;  %v8333_v42 = vld [vmem:[%s11441_s14 + $0xaa] sm:$0xff] }
 0x213   : > { %9919 = vmatmul.mubr.f32.gmra.mrb[40].mxu0 %v728_v0  ;;  %v8327_v0 = vld [vmem:[%s11441_s14 + $0x4a] sm:$0xff] }
 0x214   : > { %9921 = vmatprep.mubr.f32.mxu0 %v729_v33  ;;  %v8330_v33 = vld [vmem:[%s11441_s14 + $0x82] sm:$0xff]  ;;  %v12755_v21 = vld [vmem:[%s11441_s14 + $0xca] sm:$0xff] }
 0x215   : > { %10417 = vmatmul.mubr.msk.f32.gmra.mrb[24].mxu1 %vm475_vm1, %v12630_v43  ;;  %v12762_v45 = vld [vmem:[%s11441_s14 + $0xea] sm:$0xff] }
 0x216   : > { %10419 = vmatprep.mubr.msk.f32.mxu1 %vm475_vm1, %v12633_v51  ;;  %v12769_v15 = vld [vmem:[%s11441_s14 + $0x10a] sm:$0xff] }
 0x217   : > { %9922 = vmatmul.mubr.f32.gmra.mrb[42].mxu0 %v730_v36  ;;  %v8334_v36 = vld [vmem:[%s11441_s14 + $0xc2] sm:$0xff] }
 0x218   : > { %9924 = vmatprep.mubr.f32.mxu0 %v731_v53  ;;  %v8338_v53 = vld [vmem:[%s11441_s14 + $0x102] sm:$0xff] }
 0x219   : > { %10420 = vmatmul.mubr.msk.f32.gmra.mrb[26].mxu1 %vm475_vm1, %v12644_v28 }
 0x21a   : > { %10422 = vmatprep.mubr.msk.f32.mxu1 %vm475_vm1, %v8825_v56  ;;  %v8340_v56 = vld [vmem:[%s11441_s14 + $0x122] sm:$0xff] }
 0x21b   : > { %9925 = vmatmul.mubr.f32.gmra.mrb[44].mxu0 %v732_v46  ;;  %v12776_v46 = vld [vmem:[%s11441_s14 + $0x12a] sm:$0xff] }
 0x21c   : > { %9927 = vmatprep.mubr.f32.mxu0 %v733_v26  ;;  %v8461_v26 = vld [vmem:[%s13591_s3 + $0x10] sm:$0xf] }
 0x21d   : > { %10423 = vmatmul.mubr.msk.f32.gmra.mrb[28].mxu1 %vm475_vm1, %v8826_v23  ;;  %v8396_v23 = vld [vmem:[%s11441_s14 + $0x72] sm:$0xff] }
 0x21e   : > { %10425 = vmatprep.mubr.msk.f32.mxu1 %vm475_vm1, %v8827_v16  ;;  %v8398_v16 = vld [vmem:[%s11441_s14 + $0x92] sm:$0xff] }
 0x21f   : > { %9928 = vmatmul.mubr.f32.gmra.mrb[46].mxu0 %v734_v49  ;;  %v8400_v49 = vld [vmem:[%s11441_s14 + $0xb2] sm:$0xff] }
 0x220   : > { %9932 = vmatprep.mubr.msk.f32.mxu0 %vm475_vm1, %v13634_v60  ;;  %v12807_v60 = vld [vmem:[%s11441_s14 + $0xf2] sm:$0xff] }
 0x221   : > { %10426 = vmatmul.mubr.msk.f32.gmra.mrb[30].mxu1 %vm475_vm1, %v8828_v63  ;;  %v12800_v63 = vld [vmem:[%s11441_s14 + $0xd2] sm:$0xff] }
 0x222   : > { %10430 = vmatprep.mubr.msk.f32.mxu1 %vm475_vm1, %v12355_v48  ;;  %v13637_v48 = vld [vmem:[#allocation13_spill] sm:$0xff] }
 0x223   : > { %9933 = vmatmul.mubr.msk.f32.vlgmr.msra.gmra.mrb[48].mxu0 %vm475_vm1, %v13635_v55  ;;  %v12821_v55 = vld [vmem:[%s11441_s14 + $0x132] sm:$0xff] }
 0x224   : > { %9957 = vmatpush3.msk.msra.mxu0 %vm524_vm0, %v12558_v27  ;;  %9935 = vmatprep.mubr.msk.f32.mxu0 %vm475_vm1, %v13636_v58  ;;  %v8851_v27 = vld [vmem:[%s11441_s14 + $0x1cc] sm:$0xff]  ;;  %v8495_v58 = vld [vmem:[%s13591_s3 + $0x14] sm:$0xf] }
 0x225   : > { %9982 = vmatprep.subr.msk.mxu0 %vm524_vm0, %v12664_v52  ;;  %10431 = vmatmul.mubr.msk.f32.vlgmr.msra.gmra.mrb[16].mxu1 %vm475_vm1, %v12373_v1  ;;  %v8852_v1 = vld [vmem:[%s11441_s14 + $0x1d4] sm:$0xff] }
 0x226   : > { %10433 = vmatprep.mubr.msk.f32.mxu1 %vm475_vm1, %v12377_v24  ;;  %v8853_v24 = vld [vmem:[%s11441_s14 + $0x1ec] sm:$0xff] }
 0x227   : > { %9936 = vmatmul.mubr.msk.f32.gmra.mrb[50].mxu0 %vm475_vm1, %v13637_v48  ;;  %v12848_v48 = vld [vmem:[%s11441_s14 + $0x14a] sm:$0xff] }
 0x228   : > { %9938 = vmatprep.mubr.msk.f32.mxu0 %vm475_vm1, %v8346_v30  ;;  %v12841_v30 = vld [vmem:[%s11441_s14 + $0x142] sm:$0xff] }
 0x229   : > { %10434 = vmatmul.mubr.msk.f32.gmra.mrb[18].mxu1 %vm475_vm1, %v12395_v5  ;;  %v8855_v5 = vld [vmem:[%s11441_s14 + $0x20c] sm:$0xff] }
 0x22a   : > { %10436 = vmatprep.mubr.msk.f32.mxu1 %vm475_vm1, %v8851_v27  ;;  %v12851_v27 = vld [vmem:[%s11441_s14 + $0x162] sm:$0xff] }
 0x22b   : > { %9939 = vmatmul.mubr.msk.f32.gmra.mrb[52].mxu0 %vm475_vm1, %v8347_v50  ;;  %v12858_v50 = vld [vmem:[%s11441_s14 + $0x16a] sm:$0xff] }
 0x22c   : > { %9941 = vmatprep.mubr.msk.f32.mxu0 %vm475_vm1, %v8348_v7  ;;  %v12861_v7 = vld [vmem:[%s11441_s14 + $0x182] sm:$0xff] }
 0x22d   : > { %10437 = vmatmul.mubr.msk.f32.gmra.mrb[20].mxu1 %vm475_vm1, %v8852_v1  ;;  %v12868_v1 = vld [vmem:[%s11441_s14 + $0x18a] sm:$0xff] }
 0x22e   : > { %10439 = vmatprep.mubr.msk.f32.mxu1 %vm475_vm1, %v8853_v24  ;;  %v12871_v24 = vld [vmem:[%s11441_s14 + $0x1a2] sm:$0xff] }
 0x22f   : > { %9942 = vmatmul.mubr.msk.f32.gmra.mrb[54].mxu0 %vm475_vm1, %v8349_v54  ;;  %v12878_v54 = vld [vmem:[%s11441_s14 + $0x1aa] sm:$0xff] }
 0x230   : > { %9944 = vmatprep.mubr.msk.f32.mxu0 %vm475_vm1, %v8350_v17  ;;  %v12883_v17 = vld [vmem:[%s11441_s14 + $0xc6] sm:$0xff] }
 0x231   : > { %10440 = vmatmul.mubr.msk.f32.gmra.mrb[22].mxu1 %vm475_vm1, %v8854_v38  ;;  %v8531_v38 = vld [vmem:[%s13591_s3 + $0x18] sm:$0xf] }
 0x232   : > { %10442 = vmatprep.mubr.msk.f32.mxu1 %vm475_vm1, %v8855_v5  ;;  %v12891_v5 = vld [vmem:[%s11441_s14 + $0xce] sm:$0xff] }
 0x233   : > { %9945 = vmatmul.mubr.msk.f32.gmra.mrb[56].mxu0 %vm475_vm1, %v8351_v18  ;;  %v12897_v18 = vld [vmem:[%s11441_s14 + $0xe6] sm:$0xff] }
 0x234   : > { %9947 = vmatprep.mubr.msk.f32.mxu0 %vm475_vm1, %v8352_v19  ;;  %v12903_v19 = vld [vmem:[%s11441_s14 + $0xee] sm:$0xff] }
 0x235   : > { %10443 = vmatmul.mubr.msk.f32.gmra.mrb[24].mxu1 %vm475_vm1, %v8856_v57  ;;  %v12908_v57 = vld [vmem:[%s11441_s14 + $0x106] sm:$0xff] }
 0x236   : > { %10445 = vmatprep.mubr.msk.f32.mxu1 %vm475_vm1, %v8857_v2  ;;  %v12913_v2 = vld [vmem:[%s11441_s14 + $0x10e] sm:$0xff] }
 0x237   : > { %9948 = vmatmul.mubr.msk.f32.gmra.mrb[58].mxu0 %vm475_vm1, %v8353_v34  ;;  %v12918_v34 = vld [vmem:[%s11441_s14 + $0x126] sm:$0xff] }
 0x238   : > { %9950 = vmatprep.mubr.msk.f32.mxu0 %vm475_vm1, %v8354_v11  ;;  %v12923_v11 = vld [vmem:[%s11441_s14 + $0x12e] sm:$0xff] }
 0x239   : > { %10446 = vmatmul.mubr.msk.f32.gmra.mrb[26].mxu1 %vm475_vm1, %v8858_v4  ;;  %v12928_v4 = vld [vmem:[%s11441_s14 + $0x146] sm:$0xff] }
 0x23a   : > { %10448 = vmatprep.mubr.msk.f32.mxu1 %vm475_vm1, %v8859_v61  ;;  %v12933_v61 = vld [vmem:[%s11441_s14 + $0x14e] sm:$0xff] }
 0x23b   : > { %9951 = vmatmul.mubr.msk.f32.gmra.mrb[60].mxu0 %vm475_vm1, %v8355_v6  ;;  %v12938_v6 = vld [vmem:[%s11441_s14 + $0x166] sm:$0xff] }
 0x23c   : > { %9953 = vmatprep.mubr.msk.f32.mxu0 %vm475_vm1, %v8356_v8  ;;  %v12943_v8 = vld [vmem:[%s11441_s14 + $0x16e] sm:$0xff] }
 0x23d   : > { %10449 = vmatmul.mubr.msk.f32.gmra.mrb[28].mxu1 %vm475_vm1, %v8860_v9  ;;  %v12948_v9 = vld [vmem:[%s11441_s14 + $0x186] sm:$0xff] }
 0x23e   : > { %10451 = vmatprep.mubr.msk.f32.mxu1 %vm475_vm1, %v8861_v35  ;;  %v12953_v35 = vld [vmem:[%s11441_s14 + $0x18e] sm:$0xff] }
 0x23f   : > { %9954 = vmatmul.mubr.msk.f32.gmra.mrb[62].mxu0 %vm475_vm1, %v8357_v10  ;;  %v12958_v10 = vld [vmem:[%s11441_s14 + $0x1a6] sm:$0xff] }
 0x240   : > { %9958 = vmatprep.mubr.msk.f32.mxu0 %vm475_vm1, %v8326_v20  ;;  %v12963_v20 = vld [vmem:[%s11441_s14 + $0x1ae] sm:$0xff] }
 0x241   : > { %10452 = vmatmul.mubr.msk.f32.gmra.mrb[30].mxu1 %vm475_vm1, %v8862_v25  ;;  %v8565_v25 = vld [vmem:[%s13591_s3 + $0x1c] sm:$0xf] }
 0x243   : > { %9959 = vmatmul.mubr.msk.f32.vlgmr.msra.gmra.mrb[48].mxu0 %vm475_vm1, %v8327_v0 }
 0x244   : > { %9983 = vmatpush3.msk.msra.mxu0 %vm524_vm0, %v12664_v52  ;;  %9961 = vmatprep.mubr.msk.f32.mxu0 %vm475_vm1, %v8328_v31  ;;  %v12814_v52 = vld [vmem:[%s11441_s14 + $0x112] sm:$0xff] }
 0x245   : > { %10008 = vmatprep.subr.msk.mxu0 %vm524_vm0, %v8443_v12  ;;  %v12998_v31 = vld [vmem:[%s11441_s14 + $0x172] sm:$0xff] }
 0x247   : > { %9962 = vmatmul.mubr.msk.f32.gmra.mrb[50].mxu0 %vm475_vm1, %v8329_v59 }
 0x248   : > { %9964 = vmatprep.mubr.msk.f32.mxu0 %vm475_vm1, %v8330_v33  ;;  %v8599_v33 = vld [vmem:[%s13591_s3 + $0x20] sm:$0xf] }
 0x24b   : > { %9965 = vmatmul.mubr.msk.f32.gmra.mrb[52].mxu0 %vm475_vm1, %v8331_v39 }
 0x24c   : > { %9967 = vmatprep.mubr.msk.f32.mxu0 %vm475_vm1, %v8332_v41  ;;  %v13040_v41 = vld [vmem:[%s11441_s14 + $0x1ca] sm:$0xff] }
 0x24f   : > { %9968 = vmatmul.mubr.msk.f32.gmra.mrb[54].mxu0 %vm475_vm1, %v8333_v42 }
 0x250   : > { %9970 = vmatprep.mubr.msk.f32.mxu0 %vm475_vm1, %v8334_v36 }
 0x253   : > { %9971 = vmatmul.mubr.msk.f32.gmra.mrb[56].mxu0 %vm475_vm1, %v12755_v21 }
 0x254   : > { %9973 = vmatprep.mubr.msk.f32.mxu0 %vm475_vm1, %v8336_v44 }
 0x257   : > { %9974 = vmatmul.mubr.msk.f32.gmra.mrb[58].mxu0 %vm475_vm1, %v12762_v45 }
 0x258   : > { %9976 = vmatprep.mubr.msk.f32.mxu0 %vm475_vm1, %v8338_v53 }
 0x25b   : > { %9977 = vmatmul.mubr.msk.f32.gmra.mrb[60].mxu0 %vm475_vm1, %v12769_v15 }
 0x25c   : > { %9979 = vmatprep.mubr.msk.f32.mxu0 %vm475_vm1, %v8340_v56 }
 0x25f   : > { %9980 = vmatmul.mubr.msk.f32.gmra.mrb[62].mxu0 %vm475_vm1, %v12776_v46 }
 0x260   : > { %9984 = vmatprep.mubr.msk.f32.mxu0 %vm475_vm1, %v8327_v0  ;;  %v12991_v0 = vld [vmem:[%s11441_s14 + $0x152] sm:$0xff] }
 0x263   : > { %9985 = vmatmul.mubr.msk.f32.vlgmr.msra.gmra.mrb[48].mxu0 %vm475_vm1, %v8394_v47  ;;  %v8549_v47 = vld [vmem:[%s11441_s14 + $0x146] sm:$0xff] }
 0x264   : > { %10009 = vmatpush3.msk.msra.mxu0 %vm524_vm0, %v8443_v12  ;;  %9987 = vmatprep.mubr.msk.f32.mxu0 %vm475_vm1, %v8329_v59  ;;  %v13005_v12 = vld [vmem:[%s11441_s14 + $0x192] sm:$0xff] }
 0x265   : > { %10034 = vmatprep.subr.msk.mxu0 %vm524_vm0, %v8461_v26  ;;  %v13012_v59 = vld [vmem:[%s11441_s14 + $0x1b2] sm:$0xff] }
 0x267   : > { %9988 = vmatmul.mubr.msk.f32.gmra.mrb[50].mxu0 %vm475_vm1, %v8396_v23  ;;  %v8621_v23 = vld [vmem:[%s13595_s7 + $0x100] sm:$0xff] }
 0x268   : > { %9990 = vmatprep.mubr.msk.f32.mxu0 %vm475_vm1, %v8331_v39  ;;  %v8523_v39 = vld [vmem:[%s11441_s14 + $0x1c2] sm:$0xff] }
 0x26b   : > { %9991 = vmatmul.mubr.msk.f32.gmra.mrb[52].mxu0 %vm475_vm1, %v8398_v16  ;;  %v8622_v16 = vld [vmem:[%s13595_s7 + $0x108] sm:$0xff] }
 0x26c   : > { %9993 = vmatprep.mubr.msk.f32.mxu0 %vm475_vm1, %v8333_v42  ;;  %v8525_v42 = vld [vmem:[%s11441_s14 + $0x1e2] sm:$0xff] }
 0x26f   : > { %9994 = vmatmul.mubr.msk.f32.gmra.mrb[54].mxu0 %vm475_vm1, %v8400_v49  ;;  %v8550_v49 = vld [vmem:[%s11441_s14 + $0x14e] sm:$0xff] }
 0x270   : > { %9996 = vmatprep.mubr.msk.f32.mxu0 %vm475_vm1, %v12755_v21 }
 0x273   : > { %9997 = vmatmul.mubr.msk.f32.gmra.mrb[56].mxu0 %vm475_vm1, %v12800_v63 }
 0x274   : > { %9999 = vmatprep.mubr.msk.f32.mxu0 %vm475_vm1, %v12762_v45 }
 0x277   : > { %10000 = vmatmul.mubr.msk.f32.gmra.mrb[58].mxu0 %vm475_vm1, %v12807_v60 }
 0x278   : > { %10002 = vmatprep.mubr.msk.f32.mxu0 %vm475_vm1, %v12769_v15 }
 0x27b   : > { %10003 = vmatmul.mubr.msk.f32.gmra.mrb[60].mxu0 %vm475_vm1, %v12814_v52 }
 0x27c   : > { %10005 = vmatprep.mubr.msk.f32.mxu0 %vm475_vm1, %v12776_v46 }
 0x27f   : > { %10006 = vmatmul.mubr.msk.f32.gmra.mrb[62].mxu0 %vm475_vm1, %v12821_v55 }
 0x280   : > { %10010 = vmatprep.mubr.msk.f32.mxu0 %vm475_vm1, %v8334_v36  ;;  %v13047_v36 = vld [vmem:[%s11441_s14 + $0x1ea] sm:$0xff] }
 0x283   : > { %10011 = vmatmul.mubr.msk.f32.vlgmr.msra.gmra.mrb[48].mxu0 %vm475_vm1, %v12755_v21 }
 0x284   : > { %10035 = vmatpush3.msk.msra.mxu0 %vm524_vm0, %v8461_v26  ;;  %10013 = vmatprep.mubr.msk.f32.mxu0 %vm475_vm1, %v8336_v44  ;;  %v13054_v44 = vld [vmem:[%s11441_s14 + $0x20a] sm:$0xff] }
 0x285   : > { %10060 = vmatprep.subr.msk.mxu0 %vm524_vm0, %v8495_v58 }
 0x287   : > { %10014 = vmatmul.mubr.msk.f32.gmra.mrb[50].mxu0 %vm475_vm1, %v12762_v45 }
 0x288   : > { %10016 = vmatprep.mubr.msk.f32.mxu0 %vm475_vm1, %v8338_v53  ;;  %v8529_v53 = vld [vmem:[%s11441_s14 + $0x222] sm:$0xff] }
 0x28b   : > { %10017 = vmatmul.mubr.msk.f32.gmra.mrb[52].mxu0 %vm475_vm1, %v12769_v15 }
 0x28c   : > { %10019 = vmatprep.mubr.msk.f32.mxu0 %vm475_vm1, %v8340_v56  ;;  %v13065_v56 = vld [vmem:[%s11441_s14 + $0x22a] sm:$0xff] }
 0x28f   : > { %10020 = vmatmul.mubr.msk.f32.gmra.mrb[54].mxu0 %vm475_vm1, %v12776_v46 }
 0x290   : > { %10022 = vmatprep.mubr.msk.f32.mxu0 %vm475_vm1, %v12841_v30 }
 0x293   : > { %10023 = vmatmul.mubr.msk.f32.gmra.mrb[56].mxu0 %vm475_vm1, %v12848_v48 }
 0x294   : > { %10025 = vmatprep.mubr.msk.f32.mxu0 %vm475_vm1, %v12851_v27 }
 0x297   : > { %10026 = vmatmul.mubr.msk.f32.gmra.mrb[58].mxu0 %vm475_vm1, %v12858_v50 }
 0x298   : > { %10028 = vmatprep.mubr.msk.f32.mxu0 %vm475_vm1, %v12861_v7 }
 0x29b   : > { %10029 = vmatmul.mubr.msk.f32.gmra.mrb[60].mxu0 %vm475_vm1, %v12868_v1 }
 0x29c   : > { %10031 = vmatprep.mubr.msk.f32.mxu0 %vm475_vm1, %v12871_v24 }
 0x29f   : > { %10032 = vmatmul.mubr.msk.f32.gmra.mrb[62].mxu0 %vm475_vm1, %v12878_v54 }
 0x2a0   : > { %10036 = vmatprep.mubr.msk.f32.mxu0 %vm475_vm1, %v12883_v17 }
 0x2a3   : > { %10037 = vmatmul.mubr.msk.f32.vlgmr.msra.gmra.mrb[48].mxu0 %vm475_vm1, %v12891_v5 }
 0x2a4   : > { %10061 = vmatpush3.msk.msra.mxu0 %vm524_vm0, %v8495_v58  ;;  %10039 = vmatprep.mubr.msk.f32.mxu0 %vm475_vm1, %v12897_v18  ;;  %v8552_v58 = vld [vmem:[%s11441_s14 + $0x16e] sm:$0xff] }
 0x2a5   : > { %10086 = vmatprep.subr.msk.mxu0 %vm524_vm0, %v8531_v38 }
 0x2a7   : > { %10040 = vmatmul.mubr.msk.f32.gmra.mrb[50].mxu0 %vm475_vm1, %v12903_v19 }
 0x2a8   : > { %10042 = vmatprep.mubr.msk.f32.mxu0 %vm475_vm1, %v12908_v57 }
 0x2ab   : > { %10043 = vmatmul.mubr.msk.f32.gmra.mrb[52].mxu0 %vm475_vm1, %v12913_v2 }
 0x2ac   : > { %10045 = vmatprep.mubr.msk.f32.mxu0 %vm475_vm1, %v12918_v34 }
 0x2af   : > { %10046 = vmatmul.mubr.msk.f32.gmra.mrb[54].mxu0 %vm475_vm1, %v12923_v11 }
 0x2b0   : > { %10048 = vmatprep.mubr.msk.f32.mxu0 %vm475_vm1, %v12928_v4 }
 0x2b3   : > { %10049 = vmatmul.mubr.msk.f32.gmra.mrb[56].mxu0 %vm475_vm1, %v12933_v61 }
 0x2b4   : > { %10051 = vmatprep.mubr.msk.f32.mxu0 %vm475_vm1, %v12938_v6 }
 0x2b7   : > { %10052 = vmatmul.mubr.msk.f32.gmra.mrb[58].mxu0 %vm475_vm1, %v12943_v8 }
 0x2b8   : > { %10054 = vmatprep.mubr.msk.f32.mxu0 %vm475_vm1, %v12948_v9 }
 0x2bb   : > { %10055 = vmatmul.mubr.msk.f32.gmra.mrb[60].mxu0 %vm475_vm1, %v12953_v35 }
 0x2bc   : > { %10057 = vmatprep.mubr.msk.f32.mxu0 %vm475_vm1, %v12958_v10 }
 0x2bf   : > { %10058 = vmatmul.mubr.msk.f32.gmra.mrb[62].mxu0 %vm475_vm1, %v12963_v20 }
 0x2c0   : > { %10062 = vmatprep.mubr.msk.f32.mxu0 %vm475_vm1, %v12755_v21  ;;  %v8527_v21 = vld [vmem:[%s11441_s14 + $0x202] sm:$0xff] }
 0x2c3   : > { %10063 = vmatmul.mubr.msk.f32.vlgmr.msra.gmra.mrb[48].mxu0 %vm475_vm1, %v12800_v63 }
 0x2c4   : > { %10087 = vmatpush3.msk.msra.mxu0 %vm524_vm0, %v8531_v38  ;;  %10065 = vmatprep.mubr.msk.f32.mxu0 %vm475_vm1, %v12762_v45 }
 0x2c5   : > { %10112 = vmatprep.subr.msk.mxu0 %vm524_vm0, %v8565_v25 }
 0x2c7   : > { %10066 = vmatmul.mubr.msk.f32.gmra.mrb[50].mxu0 %vm475_vm1, %v12807_v60  ;;  %v8551_v60 = vld [vmem:[%s11441_s14 + $0x166] sm:$0xff] }
 0x2c8   : > { %10068 = vmatprep.mubr.msk.f32.mxu0 %vm475_vm1, %v12769_v15 }
 0x2cb   : > { %10069 = vmatmul.mubr.msk.f32.gmra.mrb[52].mxu0 %vm475_vm1, %v12814_v52 }
 0x2cc   : > { %10071 = vmatprep.mubr.msk.f32.mxu0 %vm475_vm1, %v12776_v46 }
 0x2cf   : > { %10072 = vmatmul.mubr.msk.f32.gmra.mrb[54].mxu0 %vm475_vm1, %v12821_v55  ;;  %v10600_v55 = vpack.c.bf16 %v8622_v16, %v8621_v23  ;;  %v8886_v23 = vld [vmem:[%s13595_s7 + $0x188] sm:$0xff] }
 0x2d0   : > { %10074 = vmatprep.mubr.msk.f32.mxu0 %vm475_vm1, %v12848_v48 }
 0x2d3   : > { %10075 = vmatmul.mubr.msk.f32.gmra.mrb[56].mxu0 %vm475_vm1, %v12991_v0 }
 0x2d4   : > { %10077 = vmatprep.mubr.msk.f32.mxu0 %vm475_vm1, %v12858_v50 }
 0x2d7   : > { %10078 = vmatmul.mubr.msk.f32.gmra.mrb[58].mxu0 %vm475_vm1, %v12998_v31 }
 0x2d8   : > { %10080 = vmatprep.mubr.msk.f32.mxu0 %vm475_vm1, %v12868_v1 }
 0x2db   : > { %10081 = vmatmul.mubr.msk.f32.gmra.mrb[60].mxu0 %vm475_vm1, %v13005_v12 }
 0x2dc   : > { %10083 = vmatprep.mubr.msk.f32.mxu0 %vm475_vm1, %v12878_v54 }
 0x2df   : > { %10084 = vmatmul.mubr.msk.f32.gmra.mrb[62].mxu0 %vm475_vm1, %v13012_v59 }
 0x2e0   : > { %10088 = vmatprep.mubr.msk.f32.mxu0 %vm475_vm1, %v12841_v30 }
 0x2e3   : > { %10089 = vmatmul.mubr.msk.f32.vlgmr.msra.gmra.mrb[48].mxu0 %vm475_vm1, %v12848_v48 }
 0x2e4   : > { %10113 = vmatpush3.msk.msra.mxu0 %vm524_vm0, %v8565_v25  ;;  %10091 = vmatprep.mubr.msk.f32.mxu0 %vm475_vm1, %v12851_v27 }
 0x2e5   : > { %10138 = vmatprep.subr.msk.mxu0 %vm524_vm0, %v8599_v33 }
 0x2e7   : > { %10092 = vmatmul.mubr.msk.f32.gmra.mrb[50].mxu0 %vm475_vm1, %v12858_v50 }
 0x2e8   : > { %10094 = vmatprep.mubr.msk.f32.mxu0 %vm475_vm1, %v12861_v7 }
 0x2eb   : > { %10095 = vmatmul.mubr.msk.f32.gmra.mrb[52].mxu0 %vm475_vm1, %v12868_v1 }
 0x2ec   : > { %10097 = vmatprep.mubr.msk.f32.mxu0 %vm475_vm1, %v12871_v24 }
 0x2ef   : > { %10098 = vmatmul.mubr.msk.f32.gmra.mrb[54].mxu0 %vm475_vm1, %v12878_v54 }
 0x2f0   : > { %10100 = vmatprep.mubr.msk.f32.mxu0 %vm475_vm1, %v8523_v39  ;;  %v8594_v39 = vld [vmem:[%s11441_s14 + $0x1f2] sm:$0xff] }
 0x2f3   : > { %10101 = vmatmul.mubr.msk.f32.gmra.mrb[56].mxu0 %vm475_vm1, %v13040_v41 }
 0x2f4   : > { %10103 = vmatprep.mubr.msk.f32.mxu0 %vm475_vm1, %v8525_v42  ;;  %v8633_v42 = vld [vmem:[%s13595_s7 + $0x160] sm:$0xff] }
 0x2f7   : > { %10104 = vmatmul.mubr.msk.f32.gmra.mrb[58].mxu0 %vm475_vm1, %v13047_v36 }
 0x2f8   : > { %10106 = vmatprep.mubr.msk.f32.mxu0 %vm475_vm1, %v8527_v21  ;;  %v13056_v45 = vpop.f32.mrb[16].mxu1 }
 0x2f9   : > { %v13059_v15 = vpop.f32.mrb[17].mxu1 }
 0x2fb   : > { %10107 = vmatmul.mubr.msk.f32.gmra.mrb[60].mxu0 %vm475_vm1, %v13054_v44 }
 0x2fc   : > { %10109 = vmatprep.mubr.msk.f32.mxu0 %vm475_vm1, %v8529_v53  ;;  %v13067_v46 = vpop.f32.mrb[18].mxu1  ;;  %v8636_v53 = vld [vmem:[%s13595_s7 + $0x178] sm:$0xff] }
 0x2fd   : > { %v13070_v26 = vpop.f32.mrb[19].mxu1 }
 0x2ff   : > { %10110 = vmatmul.mubr.msk.f32.gmra.mrb[62].mxu0 %vm475_vm1, %v13065_v56 }
 0x300   : > { %10114 = vmatprep.mubr.msk.f32.mxu0 %vm475_vm1, %v8549_v47  ;;  %v13082_v63 = vpop.f32.mrb[20].mxu1  ;;  %v8885_v47 = vld [vmem:[%s13595_s7 + $0x180] sm:$0xff] }
 0x301   : > { %v13085_v52 = vpop.f32.mrb[21].mxu1  ;;  %v10632_v16 = vpack.c.bf16 %v8886_v23, %v8885_v47 }
 0x303   : > { %10115 = vmatmul.mubr.msk.f32.vlgmr.msra.gmra.mrb[48].mxu0 %vm475_vm1, %v8550_v49  ;;  %v13219_v49 = vld [vmem:[%s13593_s5 + $0x2] ss:$0 sm:$0xff] }
 0x304   : > { %10139 = vmatpush3.msk.msra.mxu0 %vm524_vm0, %v8599_v33  ;;  %10117 = vmatprep.mubr.msk.f32.mxu0 %vm475_vm1, %v8551_v60  ;;  %v13091_v30 = vpop.f32.mrb[22].mxu1 }
 0x305   : > { %v13093_v27 = vpop.f32.mrb[23].mxu1  ;;  %10601 = vmatprep.subr.bf16.mxu0 %v10600_v55 }
 0x307   : > { %10118 = vmatmul.mubr.msk.f32.gmra.mrb[50].mxu0 %vm475_vm1, %v8552_v58 }
 0x308   : > { %10120 = vmatprep.mubr.msk.f32.mxu0 %vm475_vm1, %v12543_v62  ;;  %v13098_v7 = vpop.f32.mrb[24].mxu1 }
 0x309   : > { %v13100_v24 = vpop.f32.mrb[25].mxu1 }
 0x30b   : > { %10121 = vmatmul.mubr.msk.f32.gmra.mrb[52].mxu0 %vm475_vm1, %v12561_v32 }
 0x30c   : > { %10123 = vmatprep.mubr.msk.f32.mxu0 %vm475_vm1, %v12564_v22  ;;  %v13106_v38 = vpop.f32.mrb[26].mxu1 }
 0x30d   : > { %v13108_v25 = vpop.f32.mrb[27].mxu1 }
 0x30f   : > { %10124 = vmatmul.mubr.msk.f32.gmra.mrb[54].mxu0 %vm475_vm1, %v12580_v13  ;;  %v8623_v13 = vld [vmem:[%s13595_s7 + $0x110] sm:$0xff] }
 0x310   : > { %10126 = vmatprep.mubr.msk.f32.mxu0 %vm475_vm1, %v12585_v37  ;;  %v13114_v62 = vpop.f32.mrb[28].mxu1  ;;  %v8624_v37 = vld [vmem:[%s13595_s7 + $0x118] sm:$0xff] }
 0x311   : > { %v13116_v33 = vpop.f32.mrb[29].mxu1 }
 0x313   : > { %10127 = vmatmul.mubr.msk.f32.gmra.mrb[56].mxu0 %vm475_vm1, %v12598_v3  ;;  %v10604_v3 = vpack.c.bf16 %v8624_v37, %v8623_v13 }
 0x314   : > { %10129 = vmatprep.mubr.msk.f32.mxu0 %vm475_vm1, %v12601_v29  ;;  %v13122_v32 = vpop.f32.mrb[30].mxu1  ;;  %v8625_v29 = vld [vmem:[%s13595_s7 + $0x120] sm:$0xff] }
 0x315   : > { %v13124_v22 = vpop.f32.mrb[31].mxu1 }
 0x317   : > { %10130 = vmatmul.mubr.msk.f32.gmra.mrb[58].mxu0 %vm475_vm1, %v12614_v40  ;;  %v8626_v40 = vld [vmem:[%s13595_s7 + $0x128] sm:$0xff] }
 0x318   : > { %10132 = vmatprep.mubr.msk.f32.mxu0 %vm475_vm1, %v12617_v14  ;;  %v10608_v14 = vpack.c.bf16 %v8626_v40, %v8625_v29 }
 0x31b   : > { %10133 = vmatmul.mubr.msk.f32.gmra.mrb[60].mxu0 %vm475_vm1, %v12630_v43  ;;  %v8627_v43 = vld [vmem:[%s13595_s7 + $0x130] sm:$0xff] }
 0x31c   : > { %10135 = vmatprep.mubr.msk.f32.mxu0 %vm475_vm1, %v12633_v51  ;;  %v8628_v51 = vld [vmem:[%s13595_s7 + $0x138] sm:$0xff] }
 0x31f   : > { %10136 = vmatmul.mubr.msk.f32.gmra.mrb[62].mxu0 %vm475_vm1, %v12644_v28  ;;  %v10612_v28 = vpack.c.bf16 %v8628_v51, %v8627_v43  ;;  %v8888_v43 = vld [vmem:[%s13595_s7 + $0x198] sm:$0xff] }
 0x320   : > { %10140 = vmatprep.mubr.msk.f32.mxu0 %vm475_vm1, %v12848_v48  ;;  %v8629_v48 = vld [vmem:[%s13595_s7 + $0x140] sm:$0xff] }
 0x323   : > { %10141 = vmatmul.mubr.msk.f32.vlgmr.msra.gmra.mrb[48].mxu0 %vm475_vm1, %v12991_v0  ;;  %v8631_v0 = vld [vmem:[%s13595_s7 + $0x150] sm:$0xff] }
 0x324   : > { %10143 = vmatprep.mubr.msk.f32.mxu0 %vm475_vm1, %v12858_v50  ;;  %10603 = vmatpush3.bf16.msra.mxu0 %v10600_v55  ;;  %v8630_v50 = vld [vmem:[%s13595_s7 + $0x148] sm:$0xff]  ;;  %v13224_v55 = vld [vmem:[%s13594_s6 + $0x2] ss:$0 sm:$0xff] }
 0x325   : > { %10605 = vmatprep.subr.bf16.mxu0 %v10604_v3 }
 0x327   : > { %10144 = vmatmul.mubr.msk.f32.gmra.mrb[50].mxu0 %vm475_vm1, %v12998_v31  ;;  %v8632_v31 = vld [vmem:[%s13595_s7 + $0x158] sm:$0xff] }
 0x328   : > { %10146 = vmatprep.mubr.msk.f32.mxu0 %vm475_vm1, %v12868_v1  ;;  %10607 = vmatpush3.bf16.msra.mxu0 %v10604_v3  ;;  %v10616_v1 = vpack.c.bf16 %v8630_v50, %v8629_v48 }
 0x329   : > { %10609 = vmatprep.subr.bf16.mxu0 %v10608_v14 }
 0x32b   : > { %10147 = vmatmul.mubr.msk.f32.gmra.mrb[52].mxu0 %vm475_vm1, %v13005_v12  ;;  %v10620_v12 = vpack.c.bf16 %v8632_v31, %v8631_v0 }
 0x32c   : > { %10149 = vmatprep.mubr.msk.f32.mxu0 %vm475_vm1, %v12878_v54  ;;  %10611 = vmatpush3.bf16.msra.mxu0 %v10608_v14  ;;  %v8592_v54 = vld [vmem:[%s11441_s14 + $0x1d2] sm:$0xff] }
 0x32d   : > { %10613 = vmatprep.subr.bf16.mxu0 %v10612_v28  ;;  %v8887_v14 = vld [vmem:[%s13595_s7 + $0x190] sm:$0xff] }
 0x32e   : > { %v10636_v31 = vpack.c.bf16 %v8888_v43, %v8887_v14 }
 0x32f   : > { %10150 = vmatmul.mubr.msk.f32.gmra.mrb[54].mxu0 %vm475_vm1, %v13012_v59  ;;  %v8596_v59 = vld [vmem:[%s11441_s14 + $0x212] sm:$0xff] }
 0x330   : > { %10152 = vmatprep.mubr.msk.f32.mxu0 %vm475_vm1, %v13040_v41  ;;  %10615 = vmatpush3.bf16.msra.mxu0 %v10612_v28  ;;  %v8598_v41 = vld [vmem:[%s11441_s14 + $0x232] sm:$0xff]  ;;  %s8925_s14 = sshll.u32 %s11268_s29, 5 }
 0x331   : > { %10617 = vmatprep.subr.bf16.mxu0 %v10616_v1  ;;  %s7861_s28 = sadd.s32 %s8936_s23, %s8925_s14  ;;  %s11186_s23 = scalar_lea.vmem %s13530_s24, 2048 }
 0x332   : > { %s8926_s29 = sshll.u32 %s7861_s28, 7  ;;  %p11187_p13 = scmp.ne.s32.totalorder %s13530_s24, %s11186_s23 }
 0x333   : > { %10153 = vmatmul.mubr.msk.f32.gmra.mrb[56].mxu0 %vm475_vm1, %v8592_v54  ;;  %s13528_s19 = scalar_lea.hbm %s13601_s13, %s8926_s29  ;;  %s11282_s14 = smov [#allocation2]  }
 0x334   : > { %10155 = vmatprep.mubr.msk.f32.mxu0 %vm475_vm1, %v13047_v36  ;;  %10619 = vmatpush3.bf16.msra.mxu0 %v10616_v1  ;;  %v8634_v36 = vld [vmem:[%s13595_s7 + $0x168] sm:$0xff]  ;;  %p11188_p0 = pnand %p11187_p13, %p11406_p3  ;;  %s11190_s28 = sshll.u32 %s11282_s14, 4  ;;  %s11191_s28 = int_to_ptr.vmem [resolvable:$false] %s11190_s28 }
 0x335   : > { %10621 = vmatprep.subr.bf16.mxu0 %v10620_v12  ;;  %v10624_v21 = vpack.c.bf16 %v8634_v36, %v8633_v42  ;;  %s11192_s29 = scalar_lea.vmem %s11191_s28, 4096  ;;  %p11193_p2 = scmp.lt.s32.totalorder %s13530_s24, %s11191_s28 }
 0x336   : > { %p11189_p1 = pneg %p11188_p0  ;;  %p11194_p4 = scmp.lt.s32.totalorder %s11192_s29, %s11186_s23 }
 0x337   : > { %10156 = vmatmul.mubr.msk.f32.gmra.mrb[58].mxu0 %vm475_vm1, %v8594_v39  ;;  %v8889_v39 = vld [vmem:[%s13595_s7 + $0x1a0] sm:$0xff] }
 0x338   : > { %10158 = vmatprep.mubr.msk.f32.mxu0 %vm475_vm1, %v13054_v44  ;;  %10623 = vmatpush3.bf16.msra.mxu0 %v10620_v12  ;;  %v8635_v44 = vld [vmem:[%s13595_s7 + $0x170] sm:$0xff]  ;;  %p11195_p5 = por %p11194_p4, %p11193_p2 }
 0x339   : > { %10625 = vmatprep.subr.bf16.mxu0 %v10624_v21 }
 0x33a   : > { %p11196_p6 = pnand %p11195_p5, %p11189_p1 }
 0x33b   : > { %10159 = vmatmul.mubr.msk.f32.gmra.mrb[60].mxu0 %vm475_vm1, %v8596_v59  ;;  %v8890_v59 = vld [vmem:[%s13595_s7 + $0x1a8] sm:$0xff] }
 0x33c   : > { %10161 = vmatprep.mubr.msk.f32.mxu0 %vm475_vm1, %v13065_v56  ;;  %10627 = vmatpush3.bf16.msra.mxu0 %v10624_v21  ;;  %v10628_v56 = vpack.c.bf16 %v8636_v53, %v8635_v44 }
 0x33e   : > { %10629 = vmatprep.subr.bf16.mxu0 %v10628_v56 }
 0x33f   : > { %10162 = vmatmul.mubr.msk.f32.gmra.mrb[62].mxu0 %vm475_vm1, %v8598_v41 }
 0x340   : > { %10631 = vmatpush3.bf16.msra.mxu0 %v10628_v56  ;;  %v10640_v56 = vpack.c.bf16 %v8890_v59, %v8889_v39 }
 0x341   : > { %10633 = vmatprep.subr.bf16.mxu0 %v10632_v16 }
 0x3f6   : > { %v10142_v60 = vpop.f32.mrb[48].mxu0 }
 0x3f7   : > { %v5089_v58 = vmul.f32 %v10142_v60, %v13219_v49  ;;  %v4985_v13 = vpop.f32.mrb[49].mxu0  ;;  %v8891_v60 = vld [vmem:[%s13595_s7 + $0x1b0] sm:$0xff] }
 0x3f8   : > { %v5088_v37 = vmul.f32 %v13219_v49, %v4985_v13 }
 0x3f9   : > { %v5113_v3 = vadd.f32 %v13224_v55, %v5089_v58  ;;  %v8892_v58 = vld [vmem:[%s13595_s7 + $0x1b8] sm:$0xff] }
 0x3fa   : > { %v5112_v29 = vadd.f32 %v13224_v55, %v5088_v37  ;;  %v10145_v40 = vpop.f32.mrb[50].mxu0  ;;  %v10644_v14 = vpack.c.bf16 %v8892_v58, %v8891_v60 }
 0x3fb   : > { %v5091_v51 = vmul.f32 %v10145_v40, %v13219_v49  ;;  %v4995_v28 = vpop.f32.mrb[51].mxu0  ;;  %v5129_v1 = vmax.f32 %v5113_v3, 0.0 }
 0x3fc   : > { %v5128_v48 = vmax.f32 %v5112_v29, 0.0  ;;  %v5090_v50 = vmul.f32 %v13219_v49, %v4995_v28  ;;  %v8893_v28 = vld [vmem:[%s13595_s7 + $0x1c0] sm:$0xff] }
 0x3fd   : > { %v5115_v0 = vadd.f32 %v13224_v55, %v5091_v51 }
 0x3fe   : > { %v5114_v54 = vadd.f32 %v13224_v55, %v5090_v50  ;;  %v10148_v12 = vpop.f32.mrb[52].mxu0  ;;  %10196 = vmatprep.mubr.f32.mxu0 %v5128_v48  ;;  %v8894_v48 = vld [vmem:[%s13595_s7 + $0x1c8] sm:$0xff] }
 0x3ff   : > { %v5093_v41 = vmul.f32 %v10148_v12, %v13219_v49  ;;  %v5005_v42 = vpop.f32.mrb[53].mxu0  ;;  %10197 = vmatmul.mubr.f32.vlgmr.msra.gmra.mrb[32].mxu0 %v5129_v1  ;;  %v5131_v44 = vmax.f32 %v5115_v0, 0.0  ;;  %v10648_v39 = vpack.c.bf16 %v8894_v48, %v8893_v28 }
 0x400   : > { %v5130_v36 = vmax.f32 %v5114_v54, 0.0  ;;  %v5092_v21 = vmul.f32 %v13219_v49, %v5005_v42  ;;  %10635 = vmatpush3.bf16.msra.mxu0 %v10632_v16  ;;  %v8895_v42 = vld [vmem:[%s13595_s7 + $0x1d0] sm:$0xff] }
 0x401   : > { %v5117_v53 = vadd.f32 %v13224_v55, %v5093_v41  ;;  %10637 = vmatprep.subr.bf16.mxu0 %v10636_v31 }
 0x402   : > { %v5116_v47 = vadd.f32 %v13224_v55, %v5092_v21  ;;  %v10151_v23 = vpop.f32.mrb[54].mxu0  ;;  %10199 = vmatprep.mubr.f32.mxu0 %v5130_v36  ;;  %v8896_v36 = vld [vmem:[%s13595_s7 + $0x1d8] sm:$0xff] }
 0x403   : > { %v5095_v13 = vmul.f32 %v10151_v23, %v13219_v49  ;;  %v5015_v16 = vpop.f32.mrb[55].mxu0  ;;  %10200 = vmatmul.mubr.f32.gmra.mrb[34].mxu0 %v5131_v44  ;;  %v5133_v29 = vmax.f32 %v5117_v53, 0.0  ;;  %v10652_v60 = vpack.c.bf16 %v8896_v36, %v8895_v42 }
 0x404   : > { %v5132_v37 = vmax.f32 %v5116_v47, 0.0  ;;  %v5094_v3 = vmul.f32 %v13219_v49, %v5015_v16  ;;  %10639 = vmatpush3.bf16.msra.mxu0 %v10636_v31  ;;  %v8897_v16 = vld [vmem:[%s13595_s7 + $0x1e0] sm:$0xff] }
 0x405   : > { %v5119_v40 = vadd.f32 %v13224_v55, %v5095_v13  ;;  %10641 = vmatprep.subr.bf16.mxu0 %v10640_v56 }
 0x406   : > { %v5118_v43 = vadd.f32 %v13224_v55, %v5094_v3  ;;  %v10154_v51 = vpop.f32.mrb[56].mxu0  ;;  %10202 = vmatprep.mubr.f32.mxu0 %v5132_v37  ;;  %v8898_v37 = vld [vmem:[%s13595_s7 + $0x1e8] sm:$0xff]  ;;  %v13289_v3 = vld [vmem:[%s13593_s5 + $0x3] ss:$0 sm:$0xff] }
 0x407   : > { %v5097_v50 = vmul.f32 %v10154_v51, %v13219_v49  ;;  %v5025_v1 = vpop.f32.mrb[57].mxu0  ;;  %10203 = vmatmul.mubr.f32.gmra.mrb[36].mxu0 %v5133_v29  ;;  %v5135_v54 = vmax.f32 %v5119_v40, 0.0  ;;  %v10656_v48 = vpack.c.bf16 %v8898_v37, %v8897_v16  ;;  %v7309_v42 = vmul.f32 %v13056_v45, %v13289_v3 }
 0x408   : > { %v5134_v0 = vmax.f32 %v5118_v43, 0.0  ;;  %v5096_v31 = vmul.f32 %v13219_v49, %v5025_v1  ;;  %10643 = vmatpush3.bf16.msra.mxu0 %v10640_v56  ;;  %v7311_v45 = vmul.f32 %v13067_v46, %v13289_v3  ;;  %v7312_v16 = vmul.f32 %v13289_v3, %v13085_v52 }
 0x409   : > { %v5121_v12 = vadd.f32 %v13224_v55, %v5097_v50  ;;  %10645 = vmatprep.subr.bf16.mxu0 %v10644_v14  ;;  %v7308_v50 = vmul.f32 %v13289_v3, %v13059_v15  ;;  %v7313_v46 = vmul.f32 %v13082_v63, %v13289_v3  ;;  %v7314_v52 = vmul.f32 %v13289_v3, %v13093_v27 }
 0x40a   : > { %v5120_v59 = vadd.f32 %v13224_v55, %v5096_v31  ;;  %v10157_v41 = vpop.f32.mrb[58].mxu0  ;;  %10205 = vmatprep.mubr.f32.mxu0 %v5134_v0  ;;  %v8899_v31 = vld [vmem:[%s13595_s7 + $0x1f0] sm:$0xff] }
 0x40b   : > { %v5099_v21 = vmul.f32 %v10157_v41, %v13219_v49  ;;  %v5035_v44 = vpop.f32.mrb[59].mxu0  ;;  %10206 = vmatmul.mubr.f32.gmra.mrb[38].mxu0 %v5135_v54  ;;  %v5137_v47 = vmax.f32 %v5121_v12, 0.0  ;;  %v8900_v54 = vld [vmem:[%s13595_s7 + $0x1f8] sm:$0xff]  ;;  %v13306_v12 = vld [vmem:[%s13594_s6 + $0x3] ss:$0 sm:$0xff] }
 0x40c   : > { %v5136_v53 = vmax.f32 %v5120_v59, 0.0  ;;  %v5098_v56 = vmul.f32 %v13219_v49, %v5035_v44  ;;  %10647 = vmatpush3.bf16.msra.mxu0 %v10644_v14  ;;  %v10660_v44 = vpack.c.bf16 %v8900_v54, %v8899_v31  ;;  %v7335_v37 = vadd.f32 %v13306_v12, %v7311_v45 }
 0x40d   : > { %v5123_v23 = vadd.f32 %v13224_v55, %v5099_v21  ;;  %10649 = vmatprep.subr.bf16.mxu0 %v10648_v39  ;;  %v7338_v63 = vadd.f32 %v13306_v12, %v7314_v52 }
 0x40e   : > { %v5122_v58 = vadd.f32 %v13224_v55, %v5098_v56  ;;  %v10160_v13 = vpop.f32.mrb[60].mxu0  ;;  %10208 = vmatprep.mubr.f32.mxu0 %v5136_v53  ;;  %v7332_v53 = vadd.f32 %v13306_v12, %v7308_v50  ;;  %v7310_v56 = vmul.f32 %v13289_v3, %v13070_v26  ;;  %v7604_v26 = vld [vmem:[%s13598_s10] sm:$0xf] }
 0x40f   : > { %v5101_v29 = vmul.f32 %v10160_v13, %v13219_v49  ;;  %v5045_v40 = vpop.f32.mrb[61].mxu0  ;;  %10209 = vmatmul.mubr.f32.gmra.mrb[40].mxu0 %v5137_v47  ;;  %v5139_v51 = vmax.f32 %v5123_v23, 0.0 }
 0x410   : > { %v5138_v14 = vmax.f32 %v5122_v58, 0.0  ;;  %v5100_v43 = vmul.f32 %v13219_v49, %v5045_v40  ;;  %10651 = vmatpush3.bf16.msra.mxu0 %v10648_v39  ;;  %v7348_v58 = vmax.f32 %v7332_v53, 0.0  ;;  %v7334_v13 = vadd.f32 %v13306_v12, %v7310_v56 }
 0x411   : > { %v5125_v28 = vadd.f32 %v13224_v55, %v5101_v29  ;;  %10653 = vmatprep.subr.bf16.mxu0 %v10652_v60  ;;  %v7336_v40 = vadd.f32 %v13306_v12, %v7312_v16 }
 0x412   : > { %v5124_v1 = vadd.f32 %v13224_v55, %v5100_v43  ;;  %v10163_v0 = vpop.f32.mrb[62].mxu0  ;;  %10211 = vmatprep.mubr.f32.mxu0 %v5138_v14  ;;  %v7350_v29 = vmax.f32 %v7334_v13, 0.0  ;;  %v7351_v14 = vmax.f32 %v7335_v37, 0.0  ;;  %v7337_v43 = vadd.f32 %v13306_v12, %v7313_v46  ;;  %v13432_v13 = vld [vmem:[%s13600_s12] ss:$0 sm:$0xff] }
 0x413   : > { %v5103_v39 = vmul.f32 %v10163_v0, %v13219_v49  ;;  %v5055_v15 = vpop.f32.mrb[63].mxu0  ;;  %10212 = vmatmul.mubr.f32.gmra.mrb[42].mxu0 %v5139_v51  ;;  %v5141_v36 = vmax.f32 %v5125_v28, 0.0  ;;  %v7315_v51 = vmul.f32 %v13091_v30, %v13289_v3  ;;  %v7352_v28 = vmax.f32 %v7336_v40, 0.0 }
 0x414   : > { %v5140_v59 = vmax.f32 %v5124_v1, 0.0  ;;  %v5102_v41 = vmul.f32 %v13219_v49, %v5055_v15  ;;  %10655 = vmatpush3.bf16.msra.mxu0 %v10652_v60  ;;  %v7333_v49 = vadd.f32 %v13306_v12, %v7309_v42  ;;  %v7353_v50 = vmax.f32 %v7337_v43, 0.0 }
 0x415   : > { %v5127_v21 = vadd.f32 %v13224_v55, %v5103_v39  ;;  %10657 = vmatprep.subr.bf16.mxu0 %v10656_v48  ;;  %v7339_v27 = vadd.f32 %v13306_v12, %v7315_v51  ;;  %v7317_v1 = vmul.f32 %v13098_v7, %v13289_v3  ;;  %v7354_v0 = vmax.f32 %v7338_v63, 0.0 }
 0x416   : > { %v5126_v47 = vadd.f32 %v13224_v55, %v5102_v41  ;;  %10214 = vmatprep.mubr.f32.mxu0 %v5140_v59  ;;  %v7349_v55 = vmax.f32 %v7333_v49, 0.0  ;;  %v7318_v30 = vmul.f32 %v13289_v3, %v13108_v25  ;;  %v7320_v7 = vmul.f32 %v13289_v3, %v13116_v33 }
 0x417   : > { %10215 = vmatmul.mubr.f32.gmra.mrb[44].mxu0 %v5141_v36  ;;  %v5143_v60 = vmax.f32 %v5127_v21, 0.0  ;;  %v7355_v54 = vmax.f32 %v7339_v27, 0.0  ;;  %v7341_v39 = vadd.f32 %v13306_v12, %v7317_v1  ;;  %v7321_v25 = vmul.f32 %v13114_v62, %v13289_v3 }
 0x418   : > { %v5142_v23 = vmax.f32 %v5126_v47, 0.0  ;;  %10659 = vmatpush3.bf16.msra.mxu0 %v10656_v48  ;;  %v7316_v48 = vmul.f32 %v13289_v3, %v13100_v24  ;;  %v7319_v24 = vmul.f32 %v13106_v38, %v13289_v3  ;;  %v7342_v59 = vadd.f32 %v13306_v12, %v7318_v30 }
 0x419   : > { %10661 = vmatprep.subr.bf16.mxu0 %v10660_v44  ;;  %v7357_v41 = vmax.f32 %v7341_v39, 0.0  ;;  %v7344_v21 = vadd.f32 %v13306_v12, %v7320_v7  ;;  %v7322_v38 = vmul.f32 %v13289_v3, %v13124_v22  ;;  %v7345_v53 = vadd.f32 %v13306_v12, %v7321_v25 }
 0x41a   : > { %10217 = vmatprep.mubr.f32.mxu0 %v5142_v23  ;;  %v7340_v31 = vadd.f32 %v13306_v12, %v7316_v48  ;;  %v7343_v42 = vadd.f32 %v13306_v12, %v7319_v24  ;;  %v7358_v36 = vmax.f32 %v7342_v59, 0.0  ;;  %v7323_v33 = vmul.f32 %v13122_v32, %v13289_v3 }
 0x41b   : > { %10218 = vmatmul.mubr.f32.gmra.mrb[46].mxu0 %v5143_v60  ;;  %v7360_v56 = vmax.f32 %v7344_v21, 0.0  ;;  %v7346_v47 = vadd.f32 %v13306_v12, %v7322_v38  ;;  %v7361_v62 = vmax.f32 %v7345_v53, 0.0  ;;  %v13426_v60 = vld [vmem:[%s13599_s11] ss:$0 sm:$0xff] }
 0x41c   : > { %10663 = vmatpush3.bf16.msra.mxu0 %v10660_v44  ;;  %10486 = vmatprep.mubr.f32.mxu0 %v7348_v58  ;;  %v7356_v15 = vmax.f32 %v7340_v31, 0.0  ;;  %v7359_v44 = vmax.f32 %v7343_v42, 0.0  ;;  %v7347_v23 = vadd.f32 %v13306_v12, %v7323_v33  ;;  %v13420_v12 = vld [vmem:[%s13597_s9] ss:$0 sm:$0xff] }
 0x41d   : > { %10510 = vmatprep.subr.msk.mxu0 %vm524_vm0, %v7604_v26  ;;  %v7362_v49 = vmax.f32 %v7346_v47, 0.0 }
 0x41e   : > { %v7363_v22 = vmax.f32 %v7347_v23, 0.0 }
 0x41f   : > { %10487 = vmatmul.mubr.f32.vlgmr.msra.gmra.mrb[32].mxu0 %v7349_v55 }
 0x420   : > { %10511 = vmatpush3.msk.msra.mxu0 %vm524_vm0, %v7604_v26  ;;  %10489 = vmatprep.mubr.f32.mxu0 %v7350_v29 }
 0x423   : > { %10490 = vmatmul.mubr.f32.gmra.mrb[34].mxu0 %v7351_v14 }
 0x424   : > { %10492 = vmatprep.mubr.f32.mxu0 %v7352_v28 }
 0x427   : > { %10493 = vmatmul.mubr.f32.gmra.mrb[36].mxu0 %v7353_v50 }
 0x428   : > { %10495 = vmatprep.mubr.f32.mxu0 %v7354_v0 }
 0x42b   : > { %10496 = vmatmul.mubr.f32.gmra.mrb[38].mxu0 %v7355_v54 }
 0x42c   : > { %10498 = vmatprep.mubr.f32.mxu0 %v7356_v15 }
 0x42f   : > { %10499 = vmatmul.mubr.f32.gmra.mrb[40].mxu0 %v7357_v41 }
 0x430   : > { %10501 = vmatprep.mubr.f32.mxu0 %v7358_v36 }
 0x433   : > { %10502 = vmatmul.mubr.f32.gmra.mrb[42].mxu0 %v7359_v44 }
 0x434   : > { %10504 = vmatprep.mubr.f32.mxu0 %v7360_v56 }
 0x437   : > { %10505 = vmatmul.mubr.f32.gmra.mrb[44].mxu0 %v7361_v62 }
 0x438   : > { %10507 = vmatprep.mubr.f32.mxu0 %v7362_v49 }
 0x43b   : > { %10508 = vmatmul.mubr.f32.gmra.mrb[46].mxu0 %v7363_v22 }
 0x43c   : > { %10512 = vmatprep.mubr.msk.f32.mxu0 %vm475_vm1, %v12883_v17 }
 0x43f   : > { %10513 = vmatmul.mubr.msk.f32.vlgmr.msra.gmra.mrb[64].mxu0 %vm475_vm1, %v12891_v5 }
 0x440   : > { %10515 = vmatprep.mubr.msk.f32.mxu0 %vm475_vm1, %v12897_v18 }
 0x443   : > { %10516 = vmatmul.mubr.msk.f32.gmra.mrb[66].mxu0 %vm475_vm1, %v12903_v19 }
 0x444   : > { %10518 = vmatprep.mubr.msk.f32.mxu0 %vm475_vm1, %v12908_v57 }
 0x447   : > { %10519 = vmatmul.mubr.msk.f32.gmra.mrb[68].mxu0 %vm475_vm1, %v12913_v2 }
 0x448   : > { %10521 = vmatprep.mubr.msk.f32.mxu0 %vm475_vm1, %v12918_v34 }
 0x44b   : > { %10522 = vmatmul.mubr.msk.f32.gmra.mrb[70].mxu0 %vm475_vm1, %v12923_v11 }
 0x44c   : > { %10524 = vmatprep.mubr.msk.f32.mxu0 %vm475_vm1, %v12928_v4 }
 0x44f   : > { %10525 = vmatmul.mubr.msk.f32.gmra.mrb[72].mxu0 %vm475_vm1, %v12933_v61 }
 0x450   : > { %10527 = vmatprep.mubr.msk.f32.mxu0 %vm475_vm1, %v12938_v6 }
 0x453   : > { %10528 = vmatmul.mubr.msk.f32.gmra.mrb[74].mxu0 %vm475_vm1, %v12943_v8 }
 0x454   : > { %10530 = vmatprep.mubr.msk.f32.mxu0 %vm475_vm1, %v12948_v9 }
 0x457   : > { %10531 = vmatmul.mubr.msk.f32.gmra.mrb[76].mxu0 %vm475_vm1, %v12953_v35 }
 0x458   : > { %10533 = vmatprep.mubr.msk.f32.mxu0 %vm475_vm1, %v12958_v10  ;;  %v13410_v10 = vld [vmem:[%s13596_s8] ss:$0 sm:$0xff] }
 0x45b   : > { %10534 = vmatmul.mubr.msk.f32.gmra.mrb[78].mxu0 %vm475_vm1, %v12963_v20 }
 0x4f2   : > { %v10488_v17 = vpop.f32.mrb[32].mxu0 }
 0x4f3   : > { %v7447_v5 = vpop.f32.mrb[33].mxu0  ;;  %v7550_v32 = vmul.f32 %v10488_v17, %v13410_v10 }
 0x4f4   : > { %v7549_v45 = vmul.f32 %v13410_v10, %v7447_v5 }
 0x4f5   : > { %v7573_v16 = vadd.f32 %v13420_v12, %v7550_v32 }
 0x4f6   : > { %v10491_v18 = vpop.f32.mrb[34].mxu0  ;;  %v7572_v46 = vadd.f32 %v13420_v12, %v7549_v45 }
 0x4f7   : > { %v7457_v19 = vpop.f32.mrb[35].mxu0  ;;  %v7552_v26 = vmul.f32 %v10491_v18, %v13410_v10  ;;  %v7589_v63 = vmax.f32 %v7573_v16, 0.0 }
 0x4f8   : > { %v7551_v29 = vmul.f32 %v13410_v10, %v7457_v19  ;;  %v7588_v0 = vmax.f32 %v7572_v46, 0.0 }
 0x4f9   : > { %v7575_v48 = vadd.f32 %v13420_v12, %v7552_v26 }
 0x4fa   : > { %v10494_v57 = vpop.f32.mrb[36].mxu0  ;;  %v7574_v31 = vadd.f32 %v13420_v12, %v7551_v29 }
 0x4fb   : > { %v7467_v2 = vpop.f32.mrb[37].mxu0  ;;  %v7554_v14 = vmul.f32 %v10494_v57, %v13410_v10  ;;  %v7591_v25 = vmax.f32 %v7575_v48, 0.0 }
 0x4fc   : > { %v7553_v43 = vmul.f32 %v13410_v10, %v7467_v2  ;;  %v7590_v53 = vmax.f32 %v7574_v31, 0.0 }
 0x4fd   : > { %v7577_v15 = vadd.f32 %v13420_v12, %v7554_v14 }
 0x4fe   : > { %v10497_v34 = vpop.f32.mrb[38].mxu0  ;;  %v7576_v59 = vadd.f32 %v13420_v12, %v7553_v43 }
 0x4ff   : > { %v7477_v11 = vpop.f32.mrb[39].mxu0  ;;  %v7556_v36 = vmul.f32 %v10497_v34, %v13410_v10  ;;  %v7593_v49 = vmax.f32 %v7577_v15, 0.0 }
 0x500   : > { %v7555_v33 = vmul.f32 %v13410_v10, %v7477_v11  ;;  %v7592_v22 = vmax.f32 %v7576_v59, 0.0 }
 0x501   : > { %v7579_v19 = vadd.f32 %v13420_v12, %v7556_v36 }
 0x502   : > { %v13395_v4 = vpop.f32.mrb[40].mxu0  ;;  %v7578_v32 = vadd.f32 %v13420_v12, %v7555_v33 }
 0x503   : > { %v13397_v61 = vpop.f32.mrb[41].mxu0  ;;  %v7558_v57 = vmul.f32 %v13395_v4, %v13410_v10 }
 0x504   : > { %v7557_v45 = vmul.f32 %v13410_v10, %v13397_v61 }
 0x505   : > { %v7581_v61 = vadd.f32 %v13420_v12, %v7558_v57 }
 0x506   : > { %v13399_v6 = vpop.f32.mrb[42].mxu0 }
 0x507   : > { %v13401_v8 = vpop.f32.mrb[43].mxu0  ;;  %v7560_v4 = vmul.f32 %v13399_v6, %v13410_v10 }
 0x50a   : > { %v13403_v9 = vpop.f32.mrb[44].mxu0 }
 0x50b   : > { %v13405_v35 = vpop.f32.mrb[45].mxu0 }
 0x50e   : > { %v13412_v20 = vpop.f32.mrb[46].mxu0 }
 0x50f   : > { %v13415_v3 = vpop.f32.mrb[47].mxu0 }
 0x512   : > { %v10514_v58 = vpop.f32.mrb[64].mxu0 }
 0x513   : > { %v7761_v55 = vmul.f32 %v10514_v58, %v13426_v60  ;;  %v7674_v37 = vpop.f32.mrb[65].mxu0 }
 0x514   : > { %v7760_v40 = vmul.f32 %v13426_v60, %v7674_v37  ;;  %v7559_v37 = vmul.f32 %v13410_v10, %v13401_v8 }
 0x515   : > { %v7784_v52 = vadd.f32 %v13432_v13, %v7761_v55 }
 0x516   : > { %v7783_v51 = vadd.f32 %v13432_v13, %v7760_v40  ;;  %v10517_v28 = vpop.f32.mrb[66].mxu0 }
 0x517   : > { %v7800_v50 = vmax.f32 %v7784_v52, 0.0  ;;  %v7763_v27 = vmul.f32 %v10517_v28, %v13426_v60  ;;  %v7684_v1 = vpop.f32.mrb[67].mxu0  ;;  %v7595_v52 = vmax.f32 %v7579_v19, 0.0  ;;  %v7594_v28 = vmax.f32 %v7578_v32, 0.0 }
 0x518   : > { %v7799_v30 = vmax.f32 %v7783_v51, 0.0  ;;  %v7762_v54 = vmul.f32 %v13426_v60, %v7684_v1  ;;  %v7582_v1 = vadd.f32 %v13420_v12, %v7559_v37 }
 0x519   : > { %v7816_v39 = vadd.f32 %v7800_v50, %v7589_v63  ;;  %v7786_v24 = vadd.f32 %v13432_v13, %v7763_v27  ;;  %v7580_v63 = vadd.f32 %v13420_v12, %v7557_v45  ;;  %v7583_v27 = vadd.f32 %v13420_v12, %v7560_v4 }
 0x51a   : > { %v7815_v7 = vadd.f32 %v7799_v30, %v7588_v0  ;;  %v7785_v41 = vadd.f32 %v13432_v13, %v7762_v54  ;;  %v10520_v42 = vpop.f32.mrb[68].mxu0  ;;  %v7597_v54 = vmax.f32 %v7581_v61, 0.0 }
 0x51b   : > { %7832 = vst [vmem:[%s13455_s20 + $0x8] sm:$0xff] %v7816_v39  ;;  %v7802_v21 = vmax.f32 %v7786_v24, 0.0  ;;  %v7765_v38 = vmul.f32 %v10520_v42, %v13426_v60  ;;  %v7694_v44 = vpop.f32.mrb[69].mxu0  ;;  %v7562_v39 = vmul.f32 %v13403_v9, %v13410_v10  ;;  %v7598_v9 = vmax.f32 %v7582_v1, 0.0 }
 0x51c   : > { %7831 = vst [vmem:[%s13455_s20] sm:$0xff] %v7815_v7  ;;  %v7801_v56 = vmax.f32 %v7785_v41, 0.0  ;;  %v7764_v47 = vmul.f32 %v13426_v60, %v7694_v44  ;;  %v7596_v7 = vmax.f32 %v7580_v63, 0.0  ;;  %v7561_v41 = vmul.f32 %v13410_v10, %v13405_v35 }
 0x51d   : > { %v7818_v62 = vadd.f32 %v7802_v21, %v7591_v25  ;;  %v7788_v23 = vadd.f32 %v13432_v13, %v7765_v38  ;;  %v7599_v38 = vmax.f32 %v7583_v27, 0.0  ;;  %v7564_v35 = vmul.f32 %v13412_v20, %v13410_v10 }
 0x51e   : > { %v7817_v17 = vadd.f32 %v7801_v56, %v7590_v53  ;;  %v7787_v5 = vadd.f32 %v13432_v13, %v7764_v47  ;;  %v10523_v18 = vpop.f32.mrb[70].mxu0  ;;  %v7585_v56 = vadd.f32 %v13420_v12, %v7562_v39 }
 0x51f   : > { %7834 = vst [vmem:[%s13455_s20 + $0x18] sm:$0xff] %v7818_v62  ;;  %v7804_v2 = vmax.f32 %v7788_v23, 0.0  ;;  %v7767_v34 = vmul.f32 %v10523_v18, %v13426_v60  ;;  %v7704_v11 = vpop.f32.mrb[71].mxu0 }
 0x520   : > { %7833 = vst [vmem:[%s13455_s20 + $0x10] sm:$0xff] %v7817_v17  ;;  %v7803_v58 = vmax.f32 %v7787_v5, 0.0  ;;  %v7766_v16 = vmul.f32 %v13426_v60, %v7704_v11  ;;  %v7587_v11 = vadd.f32 %v13420_v12, %v7564_v35 }
 0x521   : > { %v7820_v26 = vadd.f32 %v7804_v2, %v7593_v49  ;;  %v7790_v55 = vadd.f32 %v13432_v13, %v7767_v34  ;;  %v7584_v49 = vadd.f32 %v13420_v12, %v7561_v41  ;;  %v7601_v34 = vmax.f32 %v7585_v56, 0.0 }
 0x522   : > { %v7819_v46 = vadd.f32 %v7803_v58, %v7592_v22  ;;  %v7789_v29 = vadd.f32 %v13432_v13, %v7766_v16  ;;  %v10526_v40 = vpop.f32.mrb[72].mxu0  ;;  %v7563_v22 = vmul.f32 %v13410_v10, %v13415_v3 }
 0x523   : > { %7836 = vst [vmem:[%s13455_s20 + $0x28] sm:$0xff] %v7820_v26  ;;  %v7806_v14 = vmax.f32 %v7790_v55, 0.0  ;;  %v7769_v43 = vmul.f32 %v10526_v40, %v13426_v60  ;;  %v7714_v51 = vpop.f32.mrb[73].mxu0  ;;  %v7600_v45 = vmax.f32 %v7584_v49, 0.0 }
 0x524   : > { %7835 = vst [vmem:[%s13455_s20 + $0x20] sm:$0xff] %v7819_v46  ;;  %v7805_v6 = vmax.f32 %v7789_v29, 0.0  ;;  %v7768_v8 = vmul.f32 %v13426_v60, %v7714_v51  ;;  %v7586_v58 = vadd.f32 %v13420_v12, %v7563_v22  ;;  %v7603_v29 = vmax.f32 %v7587_v11, 0.0 }
 0x525   : > { %v7822_v48 = vadd.f32 %v7806_v14, %v7595_v52  ;;  %v7792_v50 = vadd.f32 %v13432_v13, %v7769_v43 }
 0x526   : > { %v7821_v0 = vadd.f32 %v7805_v6, %v7594_v28  ;;  %v7791_v31 = vadd.f32 %v13432_v13, %v7768_v8  ;;  %v10529_v30 = vpop.f32.mrb[74].mxu0  ;;  %v7602_v12 = vmax.f32 %v7586_v58, 0.0 }
 0x527   : > { %7838 = vst [vmem:[%s13455_s20 + $0x38] sm:$0xff] %v7822_v48  ;;  %v7808_v24 = vmax.f32 %v7792_v50, 0.0  ;;  %v7771_v15 = vmul.f32 %v10529_v30, %v13426_v60  ;;  %v7724_v59 = vpop.f32.mrb[75].mxu0 }
 0x528   : > { %7837 = vst [vmem:[%s13455_s20 + $0x30] sm:$0xff] %v7821_v0  ;;  %v7807_v42 = vmax.f32 %v7791_v31, 0.0  ;;  %v7770_v25 = vmul.f32 %v13426_v60, %v7724_v59 }
 0x529   : > { %v7824_v36 = vadd.f32 %v7808_v24, %v7597_v54  ;;  %v7794_v21 = vadd.f32 %v13432_v13, %v7771_v15 }
 0x52a   : > { %v7823_v44 = vadd.f32 %v7807_v42, %v7596_v7  ;;  %v7793_v53 = vadd.f32 %v13432_v13, %v7770_v25  ;;  %v10532_v33 = vpop.f32.mrb[76].mxu0 }
 0x52b   : > { %7840 = vst [vmem:[%s13455_s20 + $0x48] sm:$0xff] %v7824_v36  ;;  %v7810_v47 = vmax.f32 %v7794_v21, 0.0  ;;  %v7773_v62 = vmul.f32 %v10532_v33, %v13426_v60  ;;  %v7734_v23 = vpop.f32.mrb[77].mxu0 }
 0x52c   : > { %7839 = vst [vmem:[%s13455_s20 + $0x40] sm:$0xff] %v7823_v44  ;;  %v7809_v17 = vmax.f32 %v7793_v53, 0.0  ;;  %v7772_v5 = vmul.f32 %v13426_v60, %v7734_v23 }
 0x52d   : > { %v7826_v18 = vadd.f32 %v7810_v47, %v7599_v38  ;;  %v7796_v20 = vadd.f32 %v13432_v13, %v7773_v62 }
 0x52e   : > { %v7825_v19 = vadd.f32 %v7809_v17, %v7598_v9  ;;  %v7795_v57 = vadd.f32 %v13432_v13, %v7772_v5  ;;  %v10535_v2 = vpop.f32.mrb[78].mxu0 }
 0x52f   : > { %7842 = vst [vmem:[%s13455_s20 + $0x58] sm:$0xff] %v7826_v18  ;;  %v7812_v10 = vmax.f32 %v7796_v20, 0.0  ;;  %v7775_v3 = vmul.f32 %v10535_v2, %v13426_v60  ;;  %v7744_v32 = vpop.f32.mrb[79].mxu0 }
 0x530   : > { %7841 = vst [vmem:[%s13455_s20 + $0x50] sm:$0xff] %v7825_v19  ;;  %v7811_v16 = vmax.f32 %v7795_v57, 0.0  ;;  %v7774_v26 = vmul.f32 %v13426_v60, %v7744_v32 }
 0x531   : > { %v7828_v55 = vadd.f32 %v7812_v10, %v7601_v34  ;;  %v7798_v4 = vadd.f32 %v13432_v13, %v7775_v3 }
 0x532   : > { %v7827_v37 = vadd.f32 %v7811_v16, %v7600_v45  ;;  %v7797_v46 = vadd.f32 %v13432_v13, %v7774_v26 }
 0x533   : > { %7844 = vst [vmem:[%s13455_s20 + $0x68] sm:$0xff] %v7828_v55  ;;  %v7814_v40 = vmax.f32 %v7798_v4, 0.0 }
 0x534   : > { %7843 = vst [vmem:[%s13455_s20 + $0x60] sm:$0xff] %v7827_v37  ;;  %v7813_v52 = vmax.f32 %v7797_v46, 0.0 }
 0x535   : > { %v7830_v61 = vadd.f32 %v7814_v40, %v7603_v29 }
 0x536   : > { %v7829_v60 = vadd.f32 %v7813_v52, %v7602_v12 }
 0x537   : > { %7846 = vst [vmem:[%s13455_s20 + $0x78] sm:$0xff] %v7830_v61 }
 0x538   : > { %7845 = vst [vmem:[%s13455_s20 + $0x70] sm:$0xff] %v7829_v60 }
 0x539   : > { %11199 = shalt.err (!%p11196_p6)
}
 0x53a   : > { %s11200_s30 = scalar_lea.hbm %s13528_s19, 2048  ;;  %s11204_s17 = scalar_lea.hbm %s13601_s13, 8192 }
 0x53b   : > { %p11201_p7 = scmp.ne.s32.totalorder %s13528_s19, %s11200_s30  ;;  %p11205_p11 = scmp.lt.u32.totalorder %s13528_s19, %s13601_s13 }
 0x53c   : > { %p11206_p12 = scmp.lt.u32.totalorder %s11204_s17, %s11200_s30  ;;  %p11208_p0 = scmp.lt.u32.totalorder %s11200_s30, %s13528_s19 }
 0x53d   : > { %p11202_p9 = pnand %p11201_p7, %p11406_p3 }
 0x53e   : > { %p11207_p13 = por %p11206_p12, %p11205_p11 }
 0x53f   : > { %p11203_p10 = pneg %p11202_p9 }
 0x540   : > { %p11209_p1 = por %p11208_p0, %p11207_p13 }
 0x542   : > { %p11210_p2 = pnand %p11209_p1, %p11203_p10 }
 0x544   : > { %11213 = shalt.err (!%p11210_p2)
}
 0x545   : > { %s11283_s23 = smov 128   ;;  %s11284_s29 = smov 8  }
 0x546   : > { %11097 = dma.vmem_to_hbm [thread:$0]  (%p11406_p3), %s13530_s24, 2048, %s13528_s19, %s13536_s22, %s11283_s23, %s11283_s23, %s11284_s29  }
 0x547 PF: > { %p11103_p4 = scmp.ge.s32.totalorder %s11280_s15, 2  ;;  %s7879_s16 = sand.u32 1, %s11252_s25  }
 0x548   : > { %s7880_s30 = scalar_lea.sflag [#allocation3], %s7879_s16 }
 0x549   : > { %p11100_p5 = pnand %p11103_p4, %p11415_p8 }
 0x54b   : > { %11247 = dma.done.wait (!%p11100_p5), %s7880_s30, 2048  }
 0x54c   : > { %11249 = vsyncadd (!%p11100_p5), %s7880_s30, 4294965248  ;;  %s26_s15 = sadd.s32 1, %s11280_s15   ;;  %s13639_s28 = sld [smem:[#allocation5_spill]] }
 0x54d   : > { %p23_p6 = scmp.ge.s32.totalorder %s26_s15, 6   ;;  %s13640_s29 = sld [smem:[#allocation6_spill]] }
 0x54e   : > { %s13641_s30 = sld [smem:[#allocation7_spill]]  ;;  %s13642_s14 = sld [smem:[#allocation8_spill]] }
 0x54f   : > { %s13643_s25 = smov %s11256_s26  ;;  %s13644_s26 = smov %s11260_s27 }
 0x550   : > { %s13645_s27 = smov %s11424_s18  ;;  %25 = sbr.rel (!%p23_p6) target bundleno = 5 (0x5), region = 147 }
 0x557   :  { %7885 = vsyncpa [#allocation3], 1 }
 0x558   :  { %7887 = vsyncpa [#allocation3 + $0x1], 1 }

</bundles_post_ra>
